<compile_context>
chip_gen: v7x
topology: tpu7x:2x2x1
jax: 0.10.0
libtpu: 0.0.40
codegen_flags: <defaults>
</compile_context>

<pallas_src>
import functools

import jax
import jax.numpy as jnp
from jax.experimental import pallas as pl
from jax.experimental.pallas import tpu as pltpu

F32 = jnp.float32
BF16 = jnp.bfloat16


# ---------------------------------------------------------------------------
# Generation-aware compiler params
# ---------------------------------------------------------------------------

def _compiler_params(num_grid_dims=1):
    """VMEM limit derived from the actual chip (v7x: 64 MiB/TC, v5e/v6e: 128 MiB)."""
    try:
        cap = int(pltpu.get_tpu_info().vmem_capacity_bytes)
    except Exception:  # older jax / query unavailable -> assume 128 MiB class
        cap = 128 * 1024 * 1024
    if cap <= 64 * 1024 * 1024:
        limit = int(cap * 0.6)                       # leave headroom on v7x
    else:
        limit = min(96 * 1024 * 1024, int(cap * 0.75))
    return pltpu.CompilerParams(
        dimension_semantics=("arbitrary",) * num_grid_dims,
        vmem_limit_bytes=limit)


# ---------------------------------------------------------------------------
# In-kernel helpers
# ---------------------------------------------------------------------------

def _ln(x, g, b):
    """LayerNorm; stats and affine in f32 (v5e has no bf16 VPU path)."""
    mu = jnp.mean(x, axis=-1, keepdims=True)
    xc = x - mu
    var = jnp.mean(xc * xc, axis=-1, keepdims=True)
    return xc * jax.lax.rsqrt(var + 1e-5) * g + b


def _mlp(x, w1, b1, w2, b2):
    """Linear -> SiLU -> Linear; bf16 MXU operands, f32 accumulation / activation."""
    h = jnp.dot(x.astype(BF16), w1, preferred_element_type=F32) + b1
    h = h * jax.nn.sigmoid(h)
    return jnp.dot(h.astype(BF16), w2, preferred_element_type=F32) + b2


def _gather_mat(idx_col, n_src):
    """(R,1) int32 row indices -> (R, n_src) bf16 one-hot gather matrix (exact in bf16)."""
    r = idx_col.shape[0]
    return (jax.lax.broadcasted_iota(jnp.int32, (r, n_src), 1) == idx_col).astype(BF16)


def _scatter_mat(idx_row, n_dst):
    """(1,C) int32 segment ids -> (n_dst, C) bf16 segment-sum matrix."""
    c = idx_row.shape[1]
    return (jax.lax.broadcasted_iota(jnp.int32, (n_dst, c), 0) == idx_row).astype(BF16)


# ---------------------------------------------------------------------------
# The single fused forward kernel (grid = (num_layers,))
# ---------------------------------------------------------------------------
#
# Packed parameter layouts:
#   emb_w   (8,128,128) bf16: 0 he_embed.gate.w1  1 he_embed.gate.w2
#                             2 he_deg.wp         3 he_deg.gate.w1   4 he_deg.gate.w2
#                             5 node_deg.wp       6 node_deg.gate.w1 7 node_deg.gate.w2
#   emb_b   (8,128)     f32 : 0/1 he_embed gate b1/b2, 2/3 he_deg gate b1/b2,
#                             4/5 node_deg gate b1/b2, 6/7 norm_he gain/bias
#   blk_w128     (L,7,128,128) bf16: 0 attn_hn.wp 1/2 attn_hn.gate.w1/w2
#                                    3 attn_nh.wp 4/5 attn_nh.gate.w1/w2  6 sc_proj
#   blk_wmid_in  (L,2,128,256) bf16: 0 ffn_n.w1  1 ffn_h.w1
#   blk_wmid_out (L,2,256,128) bf16: 0 ffn_n.w2  1 ffn_h.w2
#   blk_b128     (L,14,128)    f32 : 0-7 ln_n1.g/b ln_h1.g/b ln_n2.g/b ln_h2.g/b,
#                                    8/9 attn_hn gate b1/b2, 10/11 attn_nh gate b1/b2,
#                                    12 ffn_n.b2, 13 ffn_h.b2
#   blk_b256     (L,2,256)     f32 : 0 ffn_n.b1  1 ffn_h.b1
#   head_w       (2,128,128)   bf16: 0 w1, 1 w2 (lane-padded from width 1)
#   head_b       (2,128)       f32 : 0 b1, 1 b2

def _fwd_kernel(edge_vec_ref, off_ref, nemb_ref, v2e_n_ref, v2e_h_ref,
                e2v_h_ref, e2v_n_ref, batch_ref,
                sh_wp_ref, emb_w_ref, emb_b_ref,
                blk_w128_ref, blk_wmid_in_ref, blk_wmid_out_ref,
                blk_b128_ref, blk_b256_ref,
                head_w_ref, head_b_ref,
                out_ref,
                node_s, he_s, rbf_s, g_v2e_s, s_v2e_s, g_e2v_s, s_e2v_s,
                *, E, N, H, HE, B, NS, num_layers,
                inv_two_std2, inv_sqrt_he, inv_sqrt_nd, inv_sqrt_nodes):
    layer = pl.program_id(0)

    # ------------------------------------------------------------------ layer 0:
    # embedding stage; also builds the one-hot gather/scatter matrices once.
    @pl.when(layer == 0)
    def _embed():
        g_v2e_s[...] = _gather_mat(v2e_n_ref[...], N)      # (E, N)  member-node gather
        s_v2e_s[...] = _scatter_mat(v2e_h_ref[...], H)     # (H, E)  edges -> hyperedges
        g_e2v_s[...] = _gather_mat(e2v_h_ref[...], H)      # (HE, H) hyperedge gather
        s_e2v_s[...] = _scatter_mat(e2v_n_ref[...], N)     # (N, HE) incidences -> nodes

        # per-edge geometry --------------------------------------------------
        vec = edge_vec_ref[...]                            # (E, 3) f32
        x = vec[:, 0:1]
        y = vec[:, 1:2]
        z = vec[:, 2:3]
        r2 = x * x + y * y + z * z
        inv_r = jax.lax.rsqrt(r2 + 1e-12)                  # EUP rsqrt, no sqrt+divide
        r = r2 * inv_r
        xn, yn, zn = x * inv_r, y * inv_r, z * inv_r

        diff = r - off_ref[...]                            # (E, NB) lane-dense
        rbf = jnp.exp(-inv_two_std2 * diff * diff)
        rbf_b = rbf.astype(BF16)
        rbf_s[...] = rbf_b                                 # kept bf16 (only used as bf16)

        # spherical harmonics (l<=2, component norm): (E,16) x (16,Dh) MXU matmul,
        # K padded 9 -> 16; columns placed with iota selects (no 1-lane concatenate).
        s3 = 3.0 ** 0.5
        s5 = 5.0 ** 0.5
        s15 = 15.0 ** 0.5
        cols = (jnp.ones_like(xn), s3 * yn, s3 * zn, s3 * xn,
                s15 * xn * yn, s15 * yn * zn, (0.5 * s5) * (3.0 * zn * zn - 1.0),
                s15 * xn * zn, (0.5 * s15) * (xn * xn - yn * yn))
        lane = jax.lax.broadcasted_iota(jnp.int32, (E, 16), 1)
        sh = jnp.zeros((E, 16), F32)
        for k, c in enumerate(cols):
            sh = jnp.where(lane == k, c, sh)
        proj_sh = jnp.dot(sh.astype(BF16), sh_wp_ref[...], preferred_element_type=F32)

        emb_b = emb_b_ref[...]                             # (8, 128) f32 bias slab

        # hyperedge embedding: SH message, radially gated
        msg = proj_sh * _mlp(rbf_b, emb_w_ref[0], emb_b[0:1], emb_w_ref[1], emb_b[1:2])

        # hyperedge degree embedding: gathered node embeddings, radially gated
        src = jnp.dot(g_v2e_s[...], nemb_ref[...], preferred_element_type=F32)
        proj = jnp.dot(src.astype(BF16), emb_w_ref[2], preferred_element_type=F32)
        msg = msg + proj * _mlp(rbf_b, emb_w_ref[3], emb_b[2:3], emb_w_ref[4], emb_b[3:4])

        he0 = inv_sqrt_he * jnp.dot(s_v2e_s[...], msg.astype(BF16),
                                    preferred_element_type=F32)
        he_s[...] = he0                                    # residual stream (sc_he)

        # node degree embedding from LayerNorm'd hyperedge features
        he_n = _ln(he0, emb_b[6:7], emb_b[7:8])
        src2 = jnp.dot(g_e2v_s[...], he_n.astype(BF16), preferred_element_type=F32)
        src2b = src2.astype(BF16)
        proj2 = jnp.dot(src2b, emb_w_ref[5], preferred_element_type=F32)
        msg2 = proj2 * _mlp(src2b[:, :NS], emb_w_ref[6], emb_b[4:5],
                            emb_w_ref[7], emb_b[5:6])
        node_s[...] = nemb_ref[...].astype(F32) + inv_sqrt_nd * jnp.dot(
            s_e2v_s[...], msg2.astype(BF16), preferred_element_type=F32)

        out_ref[...] = jnp.zeros_like(out_ref)

    # ------------------------------------------------------------------ every layer:
    # one simplified TransBlock (pre-norm gated message passing + pre-norm FFNs).
    node = node_s[...]
    he = he_s[...]
    rbf_b = rbf_s[...]

    b128 = blk_b128_ref[0]                                 # (14, 128) f32
    b256 = blk_b256_ref[0]                                 # (2, 256)  f32

    n1 = _ln(node, b128[0:1], b128[1:2])
    h1 = _ln(he, b128[2:3], b128[3:4])

    # hyperedge -> node messages (stand-in for GraphAttention)
    src = jnp.dot(g_e2v_s[...], h1.astype(BF16), preferred_element_type=F32)
    srcb = src.astype(BF16)
    proj = jnp.dot(srcb, blk_w128_ref[0, 0], preferred_element_type=F32)
    msg = proj * _mlp(srcb[:, :NS], blk_w128_ref[0, 1], b128[8:9],
                      blk_w128_ref[0, 2], b128[9:10])
    node = node + inv_sqrt_nd * jnp.dot(s_e2v_s[...], msg.astype(BF16),
                                        preferred_element_type=F32)

    # node -> hyperedge messages (update_he_feature=True)
    src2 = jnp.dot(g_v2e_s[...], n1.astype(BF16), preferred_element_type=F32)
    proj2 = jnp.dot(src2.astype(BF16), blk_w128_ref[0, 3], preferred_element_type=F32)
    msg2 = proj2 * _mlp(rbf_b, blk_w128_ref[0, 4], b128[10:11],
                        blk_w128_ref[0, 5], b128[11:12])
    he = he + inv_sqrt_he * jnp.dot(s_v2e_s[...], msg2.astype(BF16),
                                    preferred_element_type=F32)

    # feed-forward sub-layers
    n2 = _ln(node, b128[4:5], b128[5:6])
    h2 = _ln(he, b128[6:7], b128[7:8])
    ffn_n = _mlp(n2, blk_wmid_in_ref[0, 0], b256[0:1], blk_wmid_out_ref[0, 0], b128[12:13])
    ffn_h = _mlp(h2, blk_wmid_in_ref[0, 1], b256[1:2], blk_wmid_out_ref[0, 1], b128[13:14])

    # shortcut projection only on the last block (output irreps change); exact 0/1 blend
    # so no scf branch is needed on the residual stream.
    is_last = layer == (num_layers - 1)
    w_last = is_last.astype(F32)
    sc = jnp.dot(node.astype(BF16), blk_w128_ref[0, 6], preferred_element_type=F32)
    node = w_last * sc + (1.0 - w_last) * node + ffn_n
    he = he + ffn_h

    node_s[...] = node
    he_s[...] = he

    # ------------------------------------------------------------------ last layer:
    # scalar head (Linear -> SiLU -> Linear, lane-padded output) + ScaledScatter.
    @pl.when(is_last)
    def _head():
        hb = head_b_ref[...]
        h = jnp.dot(node.astype(BF16), head_w_ref[0], preferred_element_type=F32) + hb[0:1]
        h = h * jax.nn.sigmoid(h)
        o = jnp.dot(h.astype(BF16), head_w_ref[1], preferred_element_type=F32) + hb[1:2]
        bsel = _scatter_mat(batch_ref[...], B)             # (B, N)
        out_ref[...] = inv_sqrt_nodes * jnp.dot(bsel, o.astype(BF16),
                                                preferred_element_type=F32)


# ---------------------------------------------------------------------------
# Parameters (deterministic synthetic init; Linear biases = 0, LayerNorm = (1,0),
# matching SE3Set._init_weights).  Matmul weights bf16, biases / LN f32, packed slabs.
# ---------------------------------------------------------------------------

def init_params(key, cfg):
    D = cfg['node_dim']
    Dh = cfg['he_dim']
    Df = cfg['node_feat_dim']
    NB = cfg['num_basis']
    NS = cfg['n_scalar']
    RH = cfg['radial_hidden']
    MID = cfg['mlp_mid']
    L = cfg['num_layers']
    T = cfg['num_atom_types']
    assert D == Dh == Df == NB == NS == RH == 128, "packed-slab layout assumes 128-wide dims"

    keys = iter(jax.random.split(key, 1024))

    def W(fi, fo, dtype=BF16):
        w = jax.random.normal(next(keys), (fi, fo), F32) / jnp.sqrt(float(fi))
        return w.astype(dtype)

    node_embed = W(T, D)                                   # row-gather embedding table

    # spherical-harmonic projection weight, K padded 9 -> 16 (zero pad rows)
    sh_w = jax.random.normal(next(keys), (9, Dh), F32) / 3.0
    sh_wp = jnp.zeros((16, Dh), F32).at[:9].set(sh_w).astype(BF16)

    emb_w = jnp.stack([
        W(NB, RH), W(RH, Dh),                              # he_embed radial gate
        W(D, Dh), W(NB, RH), W(RH, Dh),                    # he_deg proj + radial gate
        W(Dh, D), W(NS, RH), W(RH, D),                     # node_deg proj + scalar gate
    ])                                                      # (8,128,128) bf16
    emb_b = jnp.zeros((8, 128), F32).at[6].set(1.0)         # norm_he gain=1, rest 0

    blk_w128 = jnp.stack([
        jnp.stack([W(Dh, D), W(NS, RH), W(RH, D),          # attn_hn proj + gate
                   W(D, Dh), W(NB, RH), W(RH, Dh),         # attn_nh proj + gate
                   W(D, Df)])                              # sc_proj (used on last block)
        for _ in range(L)])                                 # (L,7,128,128)
    blk_wmid_in = jnp.stack([jnp.stack([W(D, MID), W(Dh, MID)]) for _ in range(L)])
    blk_wmid_out = jnp.stack(
        [jnp.stack([W(MID, Df if i == L - 1 else D), W(MID, Dh)]) for i in range(L)])
    blk_b128 = jnp.zeros((L, 14, 128), F32)
    for r in (0, 2, 4, 6):                                  # LayerNorm gains = 1
        blk_b128 = blk_b128.at[:, r].set(1.0)
    blk_b256 = jnp.zeros((L, 2, MID), F32)

    # head output (Df -> 1) padded to a lane-dense 128-wide slab; only column 0 is real.
    w2_col = jax.random.normal(next(keys), (Df, 1), F32) / jnp.sqrt(float(Df))
    head_w = jnp.stack([W(Df, Df), jnp.pad(w2_col, ((0, 0), (0, 127))).astype(BF16)])
    head_b = jnp.zeros((2, 128), F32)

    return dict(node_embed=node_embed, sh_wp=sh_wp, emb_w=emb_w, emb_b=emb_b,
                blk_w128=blk_w128, blk_wmid_in=blk_wmid_in, blk_wmid_out=blk_wmid_out,
                blk_b128=blk_b128, blk_b256=blk_b256, head_w=head_w, head_b=head_b)


# ---------------------------------------------------------------------------
# Forward pass: ONE pallas_call for the whole network
# ---------------------------------------------------------------------------

def se3set_forward(params, cfg, atom_z, pos, v2e_index, e2v_index, batch):
    N = atom_z.shape[0]
    HE = e2v_index.shape[1]          # hyperedge-center incidences (== num hyperedges here)
    H = HE
    E = v2e_index.shape[1]           # hyperedge-member incidences
    B = cfg['num_graphs']
    NS = cfg['n_scalar']
    NB = cfg['num_basis']
    D = cfg['node_dim']
    Dh = cfg['he_dim']
    MID = cfg['mlp_mid']
    L = cfg['num_layers']
    cutoff = float(cfg['max_radius'])

    # atom_z -> atom-type index -> embedding row gather (no one-hot matmul)
    table = -jnp.ones((cfg['max_atom_z'] + 1,), jnp.int32)
    table = table.at[cfg['atom_types']].set(
        jnp.arange(cfg['num_atom_types'], dtype=jnp.int32))
    node_atom = table[atom_z]
    node_embedding = params['node_embed'][node_atom]               # (N, D) bf16

    # edges: (center node of hyperedge, member node); self-loops removed by construction
    edge_src = e2v_index[1][v2e_index[1]]
    edge_dst = v2e_index[0]
    edge_vec = (pos[edge_dst] - pos[edge_src]).astype(F32)          # (E, 3)

    offsets = jnp.linspace(0.0, cutoff, NB, dtype=F32).reshape(1, NB)
    std = cutoff / float(NB)
    statics = dict(
        E=E, N=N, H=H, HE=HE, B=B, NS=NS, num_layers=L,
        inv_two_std2=0.5 / (std * std),
        inv_sqrt_he=1.0 / float(cfg['avg_hyperedge_degree']) ** 0.5,
        inv_sqrt_nd=1.0 / float(cfg['avg_node_degree']) ** 0.5,
        inv_sqrt_nodes=1.0 / float(cfg['avg_num_nodes']) ** 0.5)

    # index vectors, oriented for in-kernel iota one-hot gather/scatter construction
    v2e_n = v2e_index[0].astype(jnp.int32).reshape(E, 1)
    v2e_h = v2e_index[1].astype(jnp.int32).reshape(1, E)
    e2v_h = e2v_index[0].astype(jnp.int32).reshape(HE, 1)
    e2v_n = e2v_index[1].astype(jnp.int32).reshape(1, HE)
    batch_i = batch.astype(jnp.int32).reshape(1, N)

    c2 = lambda l: (0, 0)            # constant blocks: DMA'd once, VMEM-resident
    c3 = lambda l: (0, 0, 0)
    p3 = lambda l: (l, 0, 0)         # per-layer weight slices (double-buffer prefetched)
    p4 = lambda l: (l, 0, 0, 0)

    in_specs = [
        pl.BlockSpec((E, 3), c2),            # edge_vec
        pl.BlockSpec((1, NB), c2),           # RBF offsets
        pl.BlockSpec((N, D), c2),            # node embedding (bf16)
        pl.BlockSpec((E, 1), c2),            # v2e member-node index
        pl.BlockSpec((1, E), c2),            # v2e hyperedge index
        pl.BlockSpec((HE, 1), c2),           # e2v hyperedge index
        pl.BlockSpec((1, HE), c2),           # e2v center-node index
        pl.BlockSpec((1, N), c2),            # node -> graph index
        pl.BlockSpec((16, Dh), c2),          # SH projection weight (K padded 9 -> 16)
        pl.BlockSpec((8, 128, 128), c3),     # packed embed weights
        pl.BlockSpec((8, 128), c2),          # packed embed biases / norm_he
        pl.BlockSpec((1, 7, 128, 128), p4),  # per-layer 128x128 block weights
        pl.BlockSpec((1, 2, 128, MID), p4),  # per-layer FFN in weights
        pl.BlockSpec((1, 2, MID, 128), p4),  # per-layer FFN out weights
        pl.BlockSpec((1, 14, 128), p3),      # per-layer LN + bias slab (128-wide)
        pl.BlockSpec((1, 2, MID), p3),       # per-layer FFN hidden biases (256-wide)
        pl.BlockSpec((2, 128, 128), c3),     # head weights
        pl.BlockSpec((2, 128), c2),          # head biases
    ]
    scratch = [
        pltpu.VMEM((N, 128), F32),           # node residual stream (VMEM-resident)
        pltpu.VMEM((H, Dh), F32),            # hyperedge residual stream
        pltpu.VMEM((E, NB), BF16),           # rbf (bf16; only ever consumed as bf16)
        pltpu.VMEM((E, N), BF16),            # v2e gather one-hot (built once)
        pltpu.VMEM((H, E), BF16),            # v2e scatter one-hot
        pltpu.VMEM((HE, H), BF16),           # e2v gather one-hot
        pltpu.VMEM((N, HE), BF16),           # e2v scatter one-hot
    ]

    out_pad = pl.pallas_call(
        functools.partial(_fwd_kernel, **statics),
        grid=(L,),
        out_shape=jax.ShapeDtypeStruct((B, 128), F32),
        in_specs=in_specs,
        out_specs=pl.BlockSpec((B, 128), c2),
        scratch_shapes=scratch,
        compiler_params=_compiler_params(1),
    )(edge_vec, offsets, node_embedding, v2e_n, v2e_h, e2v_h, e2v_n, batch_i,
      params['sh_wp'], params['emb_w'], params['emb_b'],
      params['blk_w128'], params['blk_wmid_in'], params['blk_wmid_out'],
      params['blk_b128'], params['blk_b256'],
      params['head_w'], params['head_b'])

    outputs = out_pad[:, :1]          # only column 0 of the padded head output is real
    return outputs, None


# ---------------------------------------------------------------------------
# main
# ---------------------------------------------------------------------------

if __name__ == "__main__":
    cfg = {
        'node_dim': 128,          # lane-dense feature widths (multiples of 128)
        'he_dim': 128,
        'node_feat_dim': 128,
        'num_basis': 128,
        'radial_hidden': 128,
        'mlp_mid': 256,
        'n_scalar': 128,
        'num_layers': 2,
        'num_atom_types': 4,
        'max_atom_z': 9,
        'atom_types': jnp.array([1, 6, 7, 8], dtype=jnp.int32),
        'max_radius': 5.0,
        'avg_num_nodes': 4.0,
        'avg_node_degree': 2.0,
        'avg_hyperedge_degree': 2.0,
        'num_graphs': 2,
    }

    key = jax.random.PRNGKey(0)
    k_pos, k_param = jax.random.split(key, 2)

    # 2 graphs x 4 atoms
    B = cfg['num_graphs']
    nodes_per_graph = 4
    N = B * nodes_per_graph
    atom_z = jnp.array([1, 6, 6, 8, 7, 1, 6, 8], dtype=jnp.int32)
    pos = jax.random.normal(k_pos, (N, 3), F32) * 1.5
    batch = jnp.array([0, 0, 0, 0, 1, 1, 1, 1], dtype=jnp.int32)

    # node-wise hyperedges: hyperedge h is centered on node h; members are the next
    # two nodes in the same graph (self-member excluded, mirroring remove_self_loops).
    H = N
    e2v_index = jnp.stack([jnp.arange(H, dtype=jnp.int32),
                           jnp.arange(N, dtype=jnp.int32)])          # (2, H): [he, center]
    v2e_node, v2e_he = [], []
    for h in range(H):
        g = h // nodes_per_graph
        base = g * nodes_per_graph
        for d in (1, 2):
            v2e_node.append(base + (h - base + d) % nodes_per_graph)
            v2e_he.append(h)
    v2e_index = jnp.stack([jnp.array(v2e_node, dtype=jnp.int32),
                           jnp.array(v2e_he, dtype=jnp.int32)])      # (2, E), E = 16

    params = init_params(k_param, cfg)

    fwd = jax.jit(functools.partial(se3set_forward, params, cfg))
    outputs, forces = fwd(atom_z, pos, v2e_index, e2v_index, batch)
    jax.block_until_ready(outputs)
    assert outputs.shape == (B, 1) and forces is None
    print("KERNEL_OK")
</pallas_src>

<mosaic_0001>
module attributes {stable_mosaic.version = 11 : i64} {
  func.func @_fwd_kernel(%arg0: i32, %arg1: memref<16x3xf32, #tpu.memory_space<vmem>>, %arg2: memref<1x128xf32, #tpu.memory_space<vmem>>, %arg3: memref<8x128xbf16, #tpu.memory_space<vmem>>, %arg4: memref<16x1xi32, #tpu.memory_space<vmem>>, %arg5: memref<1x16xi32, #tpu.memory_space<vmem>>, %arg6: memref<8x1xi32, #tpu.memory_space<vmem>>, %arg7: memref<1x8xi32, #tpu.memory_space<vmem>>, %arg8: memref<1x8xi32, #tpu.memory_space<vmem>>, %arg9: memref<16x128xbf16, #tpu.memory_space<vmem>>, %arg10: memref<8x128x128xbf16, #tpu.memory_space<vmem>>, %arg11: memref<8x128xf32, #tpu.memory_space<vmem>>, %arg12: memref<1x7x128x128xbf16, #tpu.memory_space<vmem>>, %arg13: memref<1x2x128x256xbf16, #tpu.memory_space<vmem>>, %arg14: memref<1x2x256x128xbf16, #tpu.memory_space<vmem>>, %arg15: memref<1x14x128xf32, #tpu.memory_space<vmem>>, %arg16: memref<1x2x256xf32, #tpu.memory_space<vmem>>, %arg17: memref<2x128x128xbf16, #tpu.memory_space<vmem>>, %arg18: memref<2x128xf32, #tpu.memory_space<vmem>>, %arg19: memref<2x128xf32, #tpu.memory_space<vmem>>, %arg20: memref<8x128xf32, #tpu.memory_space<vmem>>, %arg21: memref<8x128xf32, #tpu.memory_space<vmem>>, %arg22: memref<16x128xbf16, #tpu.memory_space<vmem>>, %arg23: memref<16x8xbf16, #tpu.memory_space<vmem>>, %arg24: memref<8x16xbf16, #tpu.memory_space<vmem>>, %arg25: memref<8x8xbf16, #tpu.memory_space<vmem>>, %arg26: memref<8x8xbf16, #tpu.memory_space<vmem>>) attributes {dimension_semantics = [#tpu.dimension_semantics<arbitrary>], iteration_bounds = array<i64: 2>, scalar_prefetch = 0 : i64, scratch_operands = 7 : i64, tpu.core_type = #tpu.core_type<tc>, window_params = [{pipeline_mode = #tpu.pipeline_mode<synchronous>, transform_indices = @transform_0, window_bounds = array<i64: 16, 3>}, {pipeline_mode = #tpu.pipeline_mode<synchronous>, transform_indices = @transform_1, window_bounds = array<i64: 1, 128>}, {pipeline_mode = #tpu.pipeline_mode<synchronous>, transform_indices = @transform_2, window_bounds = array<i64: 8, 128>}, {pipeline_mode = #tpu.pipeline_mode<synchronous>, transform_indices = @transform_3, window_bounds = array<i64: 16, 1>}, {pipeline_mode = #tpu.pipeline_mode<synchronous>, transform_indices = @transform_4, window_bounds = array<i64: 1, 16>}, {pipeline_mode = #tpu.pipeline_mode<synchronous>, transform_indices = @transform_5, window_bounds = array<i64: 8, 1>}, {pipeline_mode = #tpu.pipeline_mode<synchronous>, transform_indices = @transform_6, window_bounds = array<i64: 1, 8>}, {pipeline_mode = #tpu.pipeline_mode<synchronous>, transform_indices = @transform_7, window_bounds = array<i64: 1, 8>}, {pipeline_mode = #tpu.pipeline_mode<synchronous>, transform_indices = @transform_8, window_bounds = array<i64: 16, 128>}, {pipeline_mode = #tpu.pipeline_mode<synchronous>, transform_indices = @transform_9, window_bounds = array<i64: 8, 128, 128>}, {pipeline_mode = #tpu.pipeline_mode<synchronous>, transform_indices = @transform_10, window_bounds = array<i64: 8, 128>}, {transform_indices = @transform_11, window_bounds = array<i64: 1, 7, 128, 128>}, {transform_indices = @transform_12, window_bounds = array<i64: 1, 2, 128, 256>}, {transform_indices = @transform_13, window_bounds = array<i64: 1, 2, 256, 128>}, {transform_indices = @transform_14, window_bounds = array<i64: 1, 14, 128>}, {transform_indices = @transform_15, window_bounds = array<i64: 1, 2, 256>}, {pipeline_mode = #tpu.pipeline_mode<synchronous>, transform_indices = @transform_16, window_bounds = array<i64: 2, 128, 128>}, {pipeline_mode = #tpu.pipeline_mode<synchronous>, transform_indices = @transform_17, window_bounds = array<i64: 2, 128>}, {pipeline_mode = #tpu.pipeline_mode<synchronous>, transform_indices = @transform_18, window_bounds = array<i64: 2, 128>}]} {
    %c0_i32 = arith.constant 0 : i32
    %0 = arith.cmpi eq, %arg0, %c0_i32 : i32
    %1 = arith.extui %0 : i1 to i32
    %c0_i32_0 = arith.constant 0 : i32
    %2 = arith.cmpi ne, %1, %c0_i32_0 : i32
    scf.if %2 {
      %c0_104 = arith.constant 0 : index
      %c0_105 = arith.constant 0 : index
      %223 = vector.load %arg4[%c0_104, %c0_105] : memref<16x1xi32, #tpu.memory_space<vmem>>, vector<16x1xi32>
      %224 = tpu.iota {dimensions = array<i32: 1>} : vector<16x8xi32>
      %225 = vector.broadcast %223 : vector<16x1xi32> to vector<16x8xi32>
      %226 = arith.cmpi eq, %224, %225 : vector<16x8xi32>
      %227 = arith.extui %226 : vector<16x8xi1> to vector<16x8xi32>
      %228 = arith.sitofp %227 : vector<16x8xi32> to vector<16x8xf32>
      %229 = arith.truncf %228 : vector<16x8xf32> to vector<16x8xbf16>
      %c0_106 = arith.constant 0 : index
      %c0_107 = arith.constant 0 : index
      %230 = vector.load %arg23[%c0_106, %c0_107] : memref<16x8xbf16, #tpu.memory_space<vmem>>, vector<16x8xbf16>
      tpu.vector_store %arg23[%c0_106, %c0_107], %229 {strides = array<i32>} : memref<16x8xbf16, #tpu.memory_space<vmem>>, vector<16x8xbf16>,
      %c0_108 = arith.constant 0 : index
      %c0_109 = arith.constant 0 : index
      %231 = vector.load %arg5[%c0_108, %c0_109] : memref<1x16xi32, #tpu.memory_space<vmem>>, vector<1x16xi32>
      %232 = tpu.iota {dimensions = array<i32: 0>} : vector<8x16xi32>
      %233 = vector.broadcast %231 : vector<1x16xi32> to vector<8x16xi32>
      %234 = arith.cmpi eq, %232, %233 : vector<8x16xi32>
      %235 = arith.extui %234 : vector<8x16xi1> to vector<8x16xi32>
      %236 = arith.sitofp %235 : vector<8x16xi32> to vector<8x16xf32>
      %237 = arith.truncf %236 : vector<8x16xf32> to vector<8x16xbf16>
      %c0_110 = arith.constant 0 : index
      %c0_111 = arith.constant 0 : index
      %238 = vector.load %arg24[%c0_110, %c0_111] : memref<8x16xbf16, #tpu.memory_space<vmem>>, vector<8x16xbf16>
      tpu.vector_store %arg24[%c0_110, %c0_111], %237 {strides = array<i32>} : memref<8x16xbf16, #tpu.memory_space<vmem>>, vector<8x16xbf16>,
      %c0_112 = arith.constant 0 : index
      %c0_113 = arith.constant 0 : index
      %239 = vector.load %arg6[%c0_112, %c0_113] : memref<8x1xi32, #tpu.memory_space<vmem>>, vector<8x1xi32>
      %240 = tpu.iota {dimensions = array<i32: 1>} : vector<8x8xi32>
      %241 = vector.broadcast %239 : vector<8x1xi32> to vector<8x8xi32>
      %242 = arith.cmpi eq, %240, %241 : vector<8x8xi32>
      %243 = arith.extui %242 : vector<8x8xi1> to vector<8x8xi32>
      %244 = arith.sitofp %243 : vector<8x8xi32> to vector<8x8xf32>
      %245 = arith.truncf %244 : vector<8x8xf32> to vector<8x8xbf16>
      %c0_114 = arith.constant 0 : index
      %c0_115 = arith.constant 0 : index
      %246 = vector.load %arg25[%c0_114, %c0_115] : memref<8x8xbf16, #tpu.memory_space<vmem>>, vector<8x8xbf16>
      tpu.vector_store %arg25[%c0_114, %c0_115], %245 {strides = array<i32>} : memref<8x8xbf16, #tpu.memory_space<vmem>>, vector<8x8xbf16>,
      %c0_116 = arith.constant 0 : index
      %c0_117 = arith.constant 0 : index
      %247 = vector.load %arg7[%c0_116, %c0_117] : memref<1x8xi32, #tpu.memory_space<vmem>>, vector<1x8xi32>
      %248 = tpu.iota {dimensions = array<i32: 0>} : vector<8x8xi32>
      %249 = vector.broadcast %247 : vector<1x8xi32> to vector<8x8xi32>
      %250 = arith.cmpi eq, %248, %249 : vector<8x8xi32>
      %251 = arith.extui %250 : vector<8x8xi1> to vector<8x8xi32>
      %252 = arith.sitofp %251 : vector<8x8xi32> to vector<8x8xf32>
      %253 = arith.truncf %252 : vector<8x8xf32> to vector<8x8xbf16>
      %c0_118 = arith.constant 0 : index
      %c0_119 = arith.constant 0 : index
      %254 = vector.load %arg26[%c0_118, %c0_119] : memref<8x8xbf16, #tpu.memory_space<vmem>>, vector<8x8xbf16>
      tpu.vector_store %arg26[%c0_118, %c0_119], %253 {strides = array<i32>} : memref<8x8xbf16, #tpu.memory_space<vmem>>, vector<8x8xbf16>,
      %c0_120 = arith.constant 0 : index
      %c0_121 = arith.constant 0 : index
      %255 = vector.load %arg1[%c0_120, %c0_121] : memref<16x3xf32, #tpu.memory_space<vmem>>, vector<16x3xf32>
      %256 = vector.extract_strided_slice %255 {offsets = [0, 0], sizes = [16, 1], strides = [1, 1]} : vector<16x3xf32> to vector<16x1xf32>
      %257 = vector.extract_strided_slice %255 {offsets = [0, 1], sizes = [16, 1], strides = [1, 1]} : vector<16x3xf32> to vector<16x1xf32>
      %258 = vector.extract_strided_slice %255 {offsets = [0, 2], sizes = [16, 1], strides = [1, 1]} : vector<16x3xf32> to vector<16x1xf32>
      %259 = arith.mulf %256, %256 : vector<16x1xf32>
      %260 = arith.mulf %257, %257 : vector<16x1xf32>
      %261 = arith.addf %259, %260 : vector<16x1xf32>
      %262 = arith.mulf %258, %258 : vector<16x1xf32>
      %263 = arith.addf %261, %262 : vector<16x1xf32>
      %cst_122 = arith.constant 9.99999996E-13 : f32
      %264 = vector.broadcast %cst_122 : f32 to vector<16x1xf32>
      %265 = arith.addf %263, %264 : vector<16x1xf32>
      %266 = math.rsqrt %265 : vector<16x1xf32>
      %267 = arith.mulf %263, %266 : vector<16x1xf32>
      %268 = arith.mulf %256, %266 : vector<16x1xf32>
      %269 = arith.mulf %257, %266 : vector<16x1xf32>
      %270 = arith.mulf %258, %266 : vector<16x1xf32>
      %c0_123 = arith.constant 0 : index
      %c0_124 = arith.constant 0 : index
      %271 = vector.load %arg2[%c0_123, %c0_124] : memref<1x128xf32, #tpu.memory_space<vmem>>, vector<1x128xf32>
      %272 = vector.broadcast %267 : vector<16x1xf32> to vector<16x128xf32>
      %273 = vector.broadcast %271 : vector<1x128xf32> to vector<16x128xf32>
      %274 = arith.subf %272, %273 : vector<16x128xf32>
      %cst_125 = arith.constant -3.276800e+02 : f32
      %275 = vector.broadcast %cst_125 : f32 to vector<16x128xf32>
      %276 = arith.mulf %275, %274 : vector<16x128xf32>
      %277 = arith.mulf %276, %274 : vector<16x128xf32>
      %278 = math.exp %277 : vector<16x128xf32>
      %279 = arith.truncf %278 : vector<16x128xf32> to vector<16x128xbf16>
      %c0_126 = arith.constant 0 : index
      %c0_127 = arith.constant 0 : index
      %280 = vector.load %arg22[%c0_126, %c0_127] : memref<16x128xbf16, #tpu.memory_space<vmem>>, vector<16x128xbf16>
      tpu.vector_store %arg22[%c0_126, %c0_127], %279 {strides = array<i32>} : memref<16x128xbf16, #tpu.memory_space<vmem>>, vector<16x128xbf16>,
      %cst_128 = arith.constant 1.000000e+00 : f32
      %281 = vector.broadcast %cst_128 : f32 to vector<16x1xf32>
      %cst_129 = arith.constant 1.73205078 : f32
      %282 = vector.broadcast %cst_129 : f32 to vector<16x1xf32>
      %283 = arith.mulf %282, %269 : vector<16x1xf32>
      %cst_130 = arith.constant 1.73205078 : f32
      %284 = vector.broadcast %cst_130 : f32 to vector<16x1xf32>
      %285 = arith.mulf %284, %270 : vector<16x1xf32>
      %cst_131 = arith.constant 1.73205078 : f32
      %286 = vector.broadcast %cst_131 : f32 to vector<16x1xf32>
      %287 = arith.mulf %286, %268 : vector<16x1xf32>
      %cst_132 = arith.constant 3.87298346 : f32
      %288 = vector.broadcast %cst_132 : f32 to vector<16x1xf32>
      %289 = arith.mulf %288, %268 : vector<16x1xf32>
      %290 = arith.mulf %289, %269 : vector<16x1xf32>
      %cst_133 = arith.constant 3.87298346 : f32
      %291 = vector.broadcast %cst_133 : f32 to vector<16x1xf32>
      %292 = arith.mulf %291, %269 : vector<16x1xf32>
      %293 = arith.mulf %292, %270 : vector<16x1xf32>
      %cst_134 = arith.constant 3.000000e+00 : f32
      %294 = vector.broadcast %cst_134 : f32 to vector<16x1xf32>
      %295 = arith.mulf %294, %270 : vector<16x1xf32>
      %296 = arith.mulf %295, %270 : vector<16x1xf32>
      %cst_135 = arith.constant 1.000000e+00 : f32
      %297 = vector.broadcast %cst_135 : f32 to vector<16x1xf32>
      %298 = arith.subf %296, %297 : vector<16x1xf32>
      %cst_136 = arith.constant 1.11803401 : f32
      %299 = vector.broadcast %cst_136 : f32 to vector<16x1xf32>
      %300 = arith.mulf %299, %298 : vector<16x1xf32>
      %cst_137 = arith.constant 3.87298346 : f32
      %301 = vector.broadcast %cst_137 : f32 to vector<16x1xf32>
      %302 = arith.mulf %301, %268 : vector<16x1xf32>
      %303 = arith.mulf %302, %270 : vector<16x1xf32>
      %304 = arith.mulf %268, %268 : vector<16x1xf32>
      %305 = arith.mulf %269, %269 : vector<16x1xf32>
      %306 = arith.subf %304, %305 : vector<16x1xf32>
      %cst_138 = arith.constant 1.93649173 : f32
      %307 = vector.broadcast %cst_138 : f32 to vector<16x1xf32>
      %308 = arith.mulf %307, %306 : vector<16x1xf32>
      %309 = tpu.iota {dimensions = array<i32: 1>} : vector<16x16xi32>
      %cst_139 = arith.constant 0.000000e+00 : f32
      %310 = vector.broadcast %cst_139 : f32 to vector<16x16xf32>
      %c0_i32_140 = arith.constant 0 : i32
      %311 = vector.broadcast %c0_i32_140 : i32 to vector<16x16xi32>
      %312 = arith.cmpi eq, %309, %311 : vector<16x16xi32>
      %313 = vector.shape_cast %281 : vector<16x1xf32> to vector<16x1xf32>
      %314 = vector.broadcast %313 : vector<16x1xf32> to vector<16x16xf32>
      %315 = arith.select %312, %314, %310 : vector<16x16xi1>, vector<16x16xf32>
      %c1_i32_141 = arith.constant 1 : i32
      %316 = vector.broadcast %c1_i32_141 : i32 to vector<16x16xi32>
      %317 = arith.cmpi eq, %309, %316 : vector<16x16xi32>
      %318 = vector.shape_cast %283 : vector<16x1xf32> to vector<16x1xf32>
      %319 = vector.broadcast %318 : vector<16x1xf32> to vector<16x16xf32>
      %320 = arith.select %317, %319, %315 : vector<16x16xi1>, vector<16x16xf32>
      %c2_i32 = arith.constant 2 : i32
      %321 = vector.broadcast %c2_i32 : i32 to vector<16x16xi32>
      %322 = arith.cmpi eq, %309, %321 : vector<16x16xi32>
      %323 = vector.shape_cast %285 : vector<16x1xf32> to vector<16x1xf32>
      %324 = vector.broadcast %323 : vector<16x1xf32> to vector<16x16xf32>
      %325 = arith.select %322, %324, %320 : vector<16x16xi1>, vector<16x16xf32>
      %c3_i32 = arith.constant 3 : i32
      %326 = vector.broadcast %c3_i32 : i32 to vector<16x16xi32>
      %327 = arith.cmpi eq, %309, %326 : vector<16x16xi32>
      %328 = vector.shape_cast %287 : vector<16x1xf32> to vector<16x1xf32>
      %329 = vector.broadcast %328 : vector<16x1xf32> to vector<16x16xf32>
      %330 = arith.select %327, %329, %325 : vector<16x16xi1>, vector<16x16xf32>
      %c4_i32 = arith.constant 4 : i32
      %331 = vector.broadcast %c4_i32 : i32 to vector<16x16xi32>
      %332 = arith.cmpi eq, %309, %331 : vector<16x16xi32>
      %333 = vector.shape_cast %290 : vector<16x1xf32> to vector<16x1xf32>
      %334 = vector.broadcast %333 : vector<16x1xf32> to vector<16x16xf32>
      %335 = arith.select %332, %334, %330 : vector<16x16xi1>, vector<16x16xf32>
      %c5_i32 = arith.constant 5 : i32
      %336 = vector.broadcast %c5_i32 : i32 to vector<16x16xi32>
      %337 = arith.cmpi eq, %309, %336 : vector<16x16xi32>
      %338 = vector.shape_cast %293 : vector<16x1xf32> to vector<16x1xf32>
      %339 = vector.broadcast %338 : vector<16x1xf32> to vector<16x16xf32>
      %340 = arith.select %337, %339, %335 : vector<16x16xi1>, vector<16x16xf32>
      %c6_i32 = arith.constant 6 : i32
      %341 = vector.broadcast %c6_i32 : i32 to vector<16x16xi32>
      %342 = arith.cmpi eq, %309, %341 : vector<16x16xi32>
      %343 = vector.shape_cast %300 : vector<16x1xf32> to vector<16x1xf32>
      %344 = vector.broadcast %343 : vector<16x1xf32> to vector<16x16xf32>
      %345 = arith.select %342, %344, %340 : vector<16x16xi1>, vector<16x16xf32>
      %c7_i32 = arith.constant 7 : i32
      %346 = vector.broadcast %c7_i32 : i32 to vector<16x16xi32>
      %347 = arith.cmpi eq, %309, %346 : vector<16x16xi32>
      %348 = vector.shape_cast %303 : vector<16x1xf32> to vector<16x1xf32>
      %349 = vector.broadcast %348 : vector<16x1xf32> to vector<16x16xf32>
      %350 = arith.select %347, %349, %345 : vector<16x16xi1>, vector<16x16xf32>
      %c8_i32 = arith.constant 8 : i32
      %351 = vector.broadcast %c8_i32 : i32 to vector<16x16xi32>
      %352 = arith.cmpi eq, %309, %351 : vector<16x16xi32>
      %353 = vector.shape_cast %308 : vector<16x1xf32> to vector<16x1xf32>
      %354 = vector.broadcast %353 : vector<16x1xf32> to vector<16x16xf32>
      %355 = arith.select %352, %354, %350 : vector<16x16xi1>, vector<16x16xf32>
      %356 = arith.truncf %355 : vector<16x16xf32> to vector<16x16xbf16>
      %c0_142 = arith.constant 0 : index
      %c0_143 = arith.constant 0 : index
      %357 = vector.load %arg9[%c0_142, %c0_143] : memref<16x128xbf16, #tpu.memory_space<vmem>>, vector<16x128xbf16>
      %cst_144 = arith.constant dense<0.000000e+00> : vector<16x128xf32>
      %358 = tpu.matmul %356, %357, %cst_144 {dimension_numbers = #tpu.dot_dimension_numbers<[1], [0], [0], [1], [0, 0, 1, 1], [], []>} : vector<16x16xbf16>, vector<16x128xbf16>, vector<16x128xf32> -> vector<16x128xf32>
      %c0_145 = arith.constant 0 : index
      %c0_146 = arith.constant 0 : index
      %359 = vector.load %arg11[%c0_145, %c0_146] : memref<8x128xf32, #tpu.memory_space<vmem>>, vector<8x128xf32>
      %c0_147 = arith.constant 0 : index
      %c0_148 = arith.constant 0 : index
      %c0_149 = arith.constant 0 : index
      %360 = vector.load %arg10[%c0_147, %c0_148, %c0_149] : memref<8x128x128xbf16, #tpu.memory_space<vmem>>, vector<1x128x128xbf16>
      %361 = vector.shape_cast %360 : vector<1x128x128xbf16> to vector<128x128xbf16>
      %362 = vector.extract_strided_slice %359 {offsets = [0, 0], sizes = [1, 128], strides = [1, 1]} : vector<8x128xf32> to vector<1x128xf32>
      %c1_150 = arith.constant 1 : index
      %c0_151 = arith.constant 0 : index
      %c0_152 = arith.constant 0 : index
      %363 = vector.load %arg10[%c1_150, %c0_151, %c0_152] : memref<8x128x128xbf16, #tpu.memory_space<vmem>>, vector<1x128x128xbf16>
      %364 = vector.shape_cast %363 : vector<1x128x128xbf16> to vector<128x128xbf16>
      %365 = vector.extract_strided_slice %359 {offsets = [1, 0], sizes = [1, 128], strides = [1, 1]} : vector<8x128xf32> to vector<1x128xf32>
      %cst_153 = arith.constant dense<0.000000e+00> : vector<16x128xf32>
      %366 = tpu.matmul %279, %361, %cst_153 {dimension_numbers = #tpu.dot_dimension_numbers<[1], [0], [0], [1], [0, 0, 1, 1], [], []>} : vector<16x128xbf16>, vector<128x128xbf16>, vector<16x128xf32> -> vector<16x128xf32>
      %367 = vector.broadcast %362 : vector<1x128xf32> to vector<16x128xf32>
      %368 = arith.addf %366, %367 : vector<16x128xf32>
      %369 = arith.negf %368 : vector<16x128xf32>
      %370 = math.exp %369 : vector<16x128xf32>
      %cst_154 = arith.constant 1.000000e+00 : f32
      %371 = vector.broadcast %cst_154 : f32 to vector<16x128xf32>
      %372 = arith.addf %371, %370 : vector<16x128xf32>
      %373 = arith.divf %371, %372 : vector<16x128xf32>
      %374 = arith.mulf %368, %373 : vector<16x128xf32>
      %375 = arith.truncf %374 : vector<16x128xf32> to vector<16x128xbf16>
      %cst_155 = arith.constant dense<0.000000e+00> : vector<16x128xf32>
      %376 = tpu.matmul %375, %364, %cst_155 {dimension_numbers = #tpu.dot_dimension_numbers<[1], [0], [0], [1], [0, 0, 1, 1], [], []>} : vector<16x128xbf16>, vector<128x128xbf16>, vector<16x128xf32> -> vector<16x128xf32>
      %377 = vector.broadcast %365 : vector<1x128xf32> to vector<16x128xf32>
      %378 = arith.addf %376, %377 : vector<16x128xf32>
      %379 = arith.mulf %358, %378 : vector<16x128xf32>
      %c0_156 = arith.constant 0 : index
      %c0_157 = arith.constant 0 : index
      %380 = vector.load %arg23[%c0_156, %c0_157] : memref<16x8xbf16, #tpu.memory_space<vmem>>, vector<16x8xbf16>
      %c0_158 = arith.constant 0 : index
      %c0_159 = arith.constant 0 : index
      %381 = vector.load %arg3[%c0_158, %c0_159] : memref<8x128xbf16, #tpu.memory_space<vmem>>, vector<8x128xbf16>
      %cst_160 = arith.constant dense<0.000000e+00> : vector<16x128xf32>
      %382 = tpu.matmul %380, %381, %cst_160 {dimension_numbers = #tpu.dot_dimension_numbers<[1], [0], [0], [1], [0, 0, 1, 1], [], []>} : vector<16x8xbf16>, vector<8x128xbf16>, vector<16x128xf32> -> vector<16x128xf32>
      %383 = arith.truncf %382 : vector<16x128xf32> to vector<16x128xbf16>
      %c2_161 = arith.constant 2 : index
      %c0_162 = arith.constant 0 : index
      %c0_163 = arith.constant 0 : index
      %384 = vector.load %arg10[%c2_161, %c0_162, %c0_163] : memref<8x128x128xbf16, #tpu.memory_space<vmem>>, vector<1x128x128xbf16>
      %385 = vector.shape_cast %384 : vector<1x128x128xbf16> to vector<128x128xbf16>
      %cst_164 = arith.constant dense<0.000000e+00> : vector<16x128xf32>
      %386 = tpu.matmul %383, %385, %cst_164 {dimension_numbers = #tpu.dot_dimension_numbers<[1], [0], [0], [1], [0, 0, 1, 1], [], []>} : vector<16x128xbf16>, vector<128x128xbf16>, vector<16x128xf32> -> vector<16x128xf32>
      %c3_165 = arith.constant 3 : index
      %c0_166 = arith.constant 0 : index
      %c0_167 = arith.constant 0 : index
      %387 = vector.load %arg10[%c3_165, %c0_166, %c0_167] : memref<8x128x128xbf16, #tpu.memory_space<vmem>>, vector<1x128x128xbf16>
      %388 = vector.shape_cast %387 : vector<1x128x128xbf16> to vector<128x128xbf16>
      %389 = vector.extract_strided_slice %359 {offsets = [2, 0], sizes = [1, 128], strides = [1, 1]} : vector<8x128xf32> to vector<1x128xf32>
      %c4_168 = arith.constant 4 : index
      %c0_169 = arith.constant 0 : index
      %c0_170 = arith.constant 0 : index
      %390 = vector.load %arg10[%c4_168, %c0_169, %c0_170] : memref<8x128x128xbf16, #tpu.memory_space<vmem>>, vector<1x128x128xbf16>
      %391 = vector.shape_cast %390 : vector<1x128x128xbf16> to vector<128x128xbf16>
      %392 = vector.extract_strided_slice %359 {offsets = [3, 0], sizes = [1, 128], strides = [1, 1]} : vector<8x128xf32> to vector<1x128xf32>
      %cst_171 = arith.constant dense<0.000000e+00> : vector<16x128xf32>
      %393 = tpu.matmul %279, %388, %cst_171 {dimension_numbers = #tpu.dot_dimension_numbers<[1], [0], [0], [1], [0, 0, 1, 1], [], []>} : vector<16x128xbf16>, vector<128x128xbf16>, vector<16x128xf32> -> vector<16x128xf32>
      %394 = vector.broadcast %389 : vector<1x128xf32> to vector<16x128xf32>
      %395 = arith.addf %393, %394 : vector<16x128xf32>
      %396 = arith.negf %395 : vector<16x128xf32>
      %397 = math.exp %396 : vector<16x128xf32>
      %cst_172 = arith.constant 1.000000e+00 : f32
      %398 = vector.broadcast %cst_172 : f32 to vector<16x128xf32>
      %399 = arith.addf %398, %397 : vector<16x128xf32>
      %400 = arith.divf %398, %399 : vector<16x128xf32>
      %401 = arith.mulf %395, %400 : vector<16x128xf32>
      %402 = arith.truncf %401 : vector<16x128xf32> to vector<16x128xbf16>
      %cst_173 = arith.constant dense<0.000000e+00> : vector<16x128xf32>
      %403 = tpu.matmul %402, %391, %cst_173 {dimension_numbers = #tpu.dot_dimension_numbers<[1], [0], [0], [1], [0, 0, 1, 1], [], []>} : vector<16x128xbf16>, vector<128x128xbf16>, vector<16x128xf32> -> vector<16x128xf32>
      %404 = vector.broadcast %392 : vector<1x128xf32> to vector<16x128xf32>
      %405 = arith.addf %403, %404 : vector<16x128xf32>
      %406 = arith.mulf %386, %405 : vector<16x128xf32>
      %407 = arith.addf %379, %406 : vector<16x128xf32>
      %c0_174 = arith.constant 0 : index
      %c0_175 = arith.constant 0 : index
      %408 = vector.load %arg24[%c0_174, %c0_175] : memref<8x16xbf16, #tpu.memory_space<vmem>>, vector<8x16xbf16>
      %409 = arith.truncf %407 : vector<16x128xf32> to vector<16x128xbf16>
      %cst_176 = arith.constant dense<0.000000e+00> : vector<8x128xf32>
      %410 = tpu.matmul %408, %409, %cst_176 {dimension_numbers = #tpu.dot_dimension_numbers<[1], [0], [0], [1], [0, 0, 1, 1], [], []>} : vector<8x16xbf16>, vector<16x128xbf16>, vector<8x128xf32> -> vector<8x128xf32>
      %cst_177 = arith.constant 0.707106769 : f32
      %411 = vector.broadcast %cst_177 : f32 to vector<8x128xf32>
      %412 = arith.mulf %411, %410 : vector<8x128xf32>
      %c0_178 = arith.constant 0 : index
      %c0_179 = arith.constant 0 : index
      %413 = vector.load %arg21[%c0_178, %c0_179] : memref<8x128xf32, #tpu.memory_space<vmem>>, vector<8x128xf32>
      tpu.vector_store %arg21[%c0_178, %c0_179], %412 {strides = array<i32>} : memref<8x128xf32, #tpu.memory_space<vmem>>, vector<8x128xf32>,
      %414 = vector.extract_strided_slice %359 {offsets = [6, 0], sizes = [1, 128], strides = [1, 1]} : vector<8x128xf32> to vector<1x128xf32>
      %415 = vector.extract_strided_slice %359 {offsets = [7, 0], sizes = [1, 128], strides = [1, 1]} : vector<8x128xf32> to vector<1x128xf32>
      %cst_180 = arith.constant dense<0.000000e+00> : vector<8xf32>
      %416 = vector.multi_reduction <add>, %412, %cst_180 [1] : vector<8x128xf32> to vector<8xf32>
      %417 = vector.shape_cast %416 : vector<8xf32> to vector<8x1xf32>
      %cst_181 = arith.constant 1.280000e+02 : f32
      %418 = vector.broadcast %cst_181 : f32 to vector<8x1xf32>
      %419 = arith.divf %417, %418 : vector<8x1xf32>
      %420 = vector.broadcast %419 : vector<8x1xf32> to vector<8x128xf32>
      %421 = arith.subf %412, %420 : vector<8x128xf32>
      %422 = arith.mulf %421, %421 : vector<8x128xf32>
      %cst_182 = arith.constant dense<0.000000e+00> : vector<8xf32>
      %423 = vector.multi_reduction <add>, %422, %cst_182 [1] : vector<8x128xf32> to vector<8xf32>
      %424 = vector.shape_cast %423 : vector<8xf32> to vector<8x1xf32>
      %cst_183 = arith.constant 1.280000e+02 : f32
      %425 = vector.broadcast %cst_183 : f32 to vector<8x1xf32>
      %426 = arith.divf %424, %425 : vector<8x1xf32>
      %cst_184 = arith.constant 9.99999974E-6 : f32
      %427 = vector.broadcast %cst_184 : f32 to vector<8x1xf32>
      %428 = arith.addf %426, %427 : vector<8x1xf32>
      %429 = math.rsqrt %428 : vector<8x1xf32>
      %430 = vector.broadcast %429 : vector<8x1xf32> to vector<8x128xf32>
      %431 = arith.mulf %421, %430 : vector<8x128xf32>
      %432 = vector.broadcast %414 : vector<1x128xf32> to vector<8x128xf32>
      %433 = arith.mulf %431, %432 : vector<8x128xf32>
      %434 = vector.broadcast %415 : vector<1x128xf32> to vector<8x128xf32>
      %435 = arith.addf %433, %434 : vector<8x128xf32>
      %c0_185 = arith.constant 0 : index
      %c0_186 = arith.constant 0 : index
      %436 = vector.load %arg25[%c0_185, %c0_186] : memref<8x8xbf16, #tpu.memory_space<vmem>>, vector<8x8xbf16>
      %437 = arith.truncf %435 : vector<8x128xf32> to vector<8x128xbf16>
      %cst_187 = arith.constant dense<0.000000e+00> : vector<8x128xf32>
      %438 = tpu.matmul %436, %437, %cst_187 {dimension_numbers = #tpu.dot_dimension_numbers<[1], [0], [0], [1], [0, 0, 1, 1], [], []>} : vector<8x8xbf16>, vector<8x128xbf16>, vector<8x128xf32> -> vector<8x128xf32>
      %439 = arith.truncf %438 : vector<8x128xf32> to vector<8x128xbf16>
      %c5_188 = arith.constant 5 : index
      %c0_189 = arith.constant 0 : index
      %c0_190 = arith.constant 0 : index
      %440 = vector.load %arg10[%c5_188, %c0_189, %c0_190] : memref<8x128x128xbf16, #tpu.memory_space<vmem>>, vector<1x128x128xbf16>
      %441 = vector.shape_cast %440 : vector<1x128x128xbf16> to vector<128x128xbf16>
      %cst_191 = arith.constant dense<0.000000e+00> : vector<8x128xf32>
      %442 = tpu.matmul %439, %441, %cst_191 {dimension_numbers = #tpu.dot_dimension_numbers<[1], [0], [0], [1], [0, 0, 1, 1], [], []>} : vector<8x128xbf16>, vector<128x128xbf16>, vector<8x128xf32> -> vector<8x128xf32>
      %c6_192 = arith.constant 6 : index
      %c0_193 = arith.constant 0 : index
      %c0_194 = arith.constant 0 : index
      %443 = vector.load %arg10[%c6_192, %c0_193, %c0_194] : memref<8x128x128xbf16, #tpu.memory_space<vmem>>, vector<1x128x128xbf16>
      %444 = vector.shape_cast %443 : vector<1x128x128xbf16> to vector<128x128xbf16>
      %445 = vector.extract_strided_slice %359 {offsets = [4, 0], sizes = [1, 128], strides = [1, 1]} : vector<8x128xf32> to vector<1x128xf32>
      %c7 = arith.constant 7 : index
      %c0_195 = arith.constant 0 : index
      %c0_196 = arith.constant 0 : index
      %446 = vector.load %arg10[%c7, %c0_195, %c0_196] : memref<8x128x128xbf16, #tpu.memory_space<vmem>>, vector<1x128x128xbf16>
      %447 = vector.shape_cast %446 : vector<1x128x128xbf16> to vector<128x128xbf16>
      %448 = vector.extract_strided_slice %359 {offsets = [5, 0], sizes = [1, 128], strides = [1, 1]} : vector<8x128xf32> to vector<1x128xf32>
      %cst_197 = arith.constant dense<0.000000e+00> : vector<8x128xf32>
      %449 = tpu.matmul %439, %444, %cst_197 {dimension_numbers = #tpu.dot_dimension_numbers<[1], [0], [0], [1], [0, 0, 1, 1], [], []>} : vector<8x128xbf16>, vector<128x128xbf16>, vector<8x128xf32> -> vector<8x128xf32>
      %450 = vector.broadcast %445 : vector<1x128xf32> to vector<8x128xf32>
      %451 = arith.addf %449, %450 : vector<8x128xf32>
      %452 = arith.negf %451 : vector<8x128xf32>
      %453 = math.exp %452 : vector<8x128xf32>
      %cst_198 = arith.constant 1.000000e+00 : f32
      %454 = vector.broadcast %cst_198 : f32 to vector<8x128xf32>
      %455 = arith.addf %454, %453 : vector<8x128xf32>
      %456 = arith.divf %454, %455 : vector<8x128xf32>
      %457 = arith.mulf %451, %456 : vector<8x128xf32>
      %458 = arith.truncf %457 : vector<8x128xf32> to vector<8x128xbf16>
      %cst_199 = arith.constant dense<0.000000e+00> : vector<8x128xf32>
      %459 = tpu.matmul %458, %447, %cst_199 {dimension_numbers = #tpu.dot_dimension_numbers<[1], [0], [0], [1], [0, 0, 1, 1], [], []>} : vector<8x128xbf16>, vector<128x128xbf16>, vector<8x128xf32> -> vector<8x128xf32>
      %460 = vector.broadcast %448 : vector<1x128xf32> to vector<8x128xf32>
      %461 = arith.addf %459, %460 : vector<8x128xf32>
      %462 = arith.mulf %442, %461 : vector<8x128xf32>
      %c0_200 = arith.constant 0 : index
      %c0_201 = arith.constant 0 : index
      %463 = vector.load %arg3[%c0_200, %c0_201] : memref<8x128xbf16, #tpu.memory_space<vmem>>, vector<8x128xbf16>
      %464 = arith.extf %463 : vector<8x128xbf16> to vector<8x128xf32>
      %c0_202 = arith.constant 0 : index
      %c0_203 = arith.constant 0 : index
      %465 = vector.load %arg26[%c0_202, %c0_203] : memref<8x8xbf16, #tpu.memory_space<vmem>>, vector<8x8xbf16>
      %466 = arith.truncf %462 : vector<8x128xf32> to vector<8x128xbf16>
      %cst_204 = arith.constant dense<0.000000e+00> : vector<8x128xf32>
      %467 = tpu.matmul %465, %466, %cst_204 {dimension_numbers = #tpu.dot_dimension_numbers<[1], [0], [0], [1], [0, 0, 1, 1], [], []>} : vector<8x8xbf16>, vector<8x128xbf16>, vector<8x128xf32> -> vector<8x128xf32>
      %cst_205 = arith.constant 0.707106769 : f32
      %468 = vector.broadcast %cst_205 : f32 to vector<8x128xf32>
      %469 = arith.mulf %468, %467 : vector<8x128xf32>
      %470 = arith.addf %464, %469 : vector<8x128xf32>
      %c0_206 = arith.constant 0 : index
      %c0_207 = arith.constant 0 : index
      %471 = vector.load %arg20[%c0_206, %c0_207] : memref<8x128xf32, #tpu.memory_space<vmem>>, vector<8x128xf32>
      tpu.vector_store %arg20[%c0_206, %c0_207], %470 {strides = array<i32>} : memref<8x128xf32, #tpu.memory_space<vmem>>, vector<8x128xf32>,
      %cst_208 = arith.constant 0.000000e+00 : f32
      %472 = vector.broadcast %cst_208 : f32 to vector<2x128xf32>
      %c0_209 = arith.constant 0 : index
      %c0_210 = arith.constant 0 : index
      %473 = vector.load %arg19[%c0_209, %c0_210] : memref<2x128xf32, #tpu.memory_space<vmem>>, vector<2x128xf32>
      tpu.vector_store %arg19[%c0_209, %c0_210], %472 {strides = array<i32>} : memref<2x128xf32, #tpu.memory_space<vmem>>, vector<2x128xf32>,
    } else {
    }
    %c0 = arith.constant 0 : index
    %c0_1 = arith.constant 0 : index
    %3 = vector.load %arg20[%c0, %c0_1] : memref<8x128xf32, #tpu.memory_space<vmem>>, vector<8x128xf32>
    %c0_2 = arith.constant 0 : index
    %c0_3 = arith.constant 0 : index
    %4 = vector.load %arg21[%c0_2, %c0_3] : memref<8x128xf32, #tpu.memory_space<vmem>>, vector<8x128xf32>
    %c0_4 = arith.constant 0 : index
    %c0_5 = arith.constant 0 : index
    %5 = vector.load %arg22[%c0_4, %c0_5] : memref<16x128xbf16, #tpu.memory_space<vmem>>, vector<16x128xbf16>
    %c0_6 = arith.constant 0 : index
    %c0_7 = arith.constant 0 : index
    %c0_8 = arith.constant 0 : index
    %6 = vector.load %arg15[%c0_6, %c0_7, %c0_8] : memref<1x14x128xf32, #tpu.memory_space<vmem>>, vector<1x14x128xf32>
    %7 = vector.shape_cast %6 : vector<1x14x128xf32> to vector<14x128xf32>
    %c0_9 = arith.constant 0 : index
    %c0_10 = arith.constant 0 : index
    %c0_11 = arith.constant 0 : index
    %8 = vector.load %arg16[%c0_9, %c0_10, %c0_11] : memref<1x2x256xf32, #tpu.memory_space<vmem>>, vector<1x2x256xf32>
    %9 = vector.shape_cast %8 : vector<1x2x256xf32> to vector<2x256xf32>
    %10 = vector.extract_strided_slice %7 {offsets = [0, 0], sizes = [1, 128], strides = [1, 1]} : vector<14x128xf32> to vector<1x128xf32>
    %11 = vector.extract_strided_slice %7 {offsets = [1, 0], sizes = [1, 128], strides = [1, 1]} : vector<14x128xf32> to vector<1x128xf32>
    %cst = arith.constant dense<0.000000e+00> : vector<8xf32>
    %12 = vector.multi_reduction <add>, %3, %cst [1] : vector<8x128xf32> to vector<8xf32>
    %13 = vector.shape_cast %12 : vector<8xf32> to vector<8x1xf32>
    %cst_12 = arith.constant 1.280000e+02 : f32
    %14 = vector.broadcast %cst_12 : f32 to vector<8x1xf32>
    %15 = arith.divf %13, %14 : vector<8x1xf32>
    %16 = vector.broadcast %15 : vector<8x1xf32> to vector<8x128xf32>
    %17 = arith.subf %3, %16 : vector<8x128xf32>
    %18 = arith.mulf %17, %17 : vector<8x128xf32>
    %cst_13 = arith.constant dense<0.000000e+00> : vector<8xf32>
    %19 = vector.multi_reduction <add>, %18, %cst_13 [1] : vector<8x128xf32> to vector<8xf32>
    %20 = vector.shape_cast %19 : vector<8xf32> to vector<8x1xf32>
    %cst_14 = arith.constant 1.280000e+02 : f32
    %21 = vector.broadcast %cst_14 : f32 to vector<8x1xf32>
    %22 = arith.divf %20, %21 : vector<8x1xf32>
    %cst_15 = arith.constant 9.99999974E-6 : f32
    %23 = vector.broadcast %cst_15 : f32 to vector<8x1xf32>
    %24 = arith.addf %22, %23 : vector<8x1xf32>
    %25 = math.rsqrt %24 : vector<8x1xf32>
    %26 = vector.broadcast %25 : vector<8x1xf32> to vector<8x128xf32>
    %27 = arith.mulf %17, %26 : vector<8x128xf32>
    %28 = vector.broadcast %10 : vector<1x128xf32> to vector<8x128xf32>
    %29 = arith.mulf %27, %28 : vector<8x128xf32>
    %30 = vector.broadcast %11 : vector<1x128xf32> to vector<8x128xf32>
    %31 = arith.addf %29, %30 : vector<8x128xf32>
    %32 = vector.extract_strided_slice %7 {offsets = [2, 0], sizes = [1, 128], strides = [1, 1]} : vector<14x128xf32> to vector<1x128xf32>
    %33 = vector.extract_strided_slice %7 {offsets = [3, 0], sizes = [1, 128], strides = [1, 1]} : vector<14x128xf32> to vector<1x128xf32>
    %cst_16 = arith.constant dense<0.000000e+00> : vector<8xf32>
    %34 = vector.multi_reduction <add>, %4, %cst_16 [1] : vector<8x128xf32> to vector<8xf32>
    %35 = vector.shape_cast %34 : vector<8xf32> to vector<8x1xf32>
    %cst_17 = arith.constant 1.280000e+02 : f32
    %36 = vector.broadcast %cst_17 : f32 to vector<8x1xf32>
    %37 = arith.divf %35, %36 : vector<8x1xf32>
    %38 = vector.broadcast %37 : vector<8x1xf32> to vector<8x128xf32>
    %39 = arith.subf %4, %38 : vector<8x128xf32>
    %40 = arith.mulf %39, %39 : vector<8x128xf32>
    %cst_18 = arith.constant dense<0.000000e+00> : vector<8xf32>
    %41 = vector.multi_reduction <add>, %40, %cst_18 [1] : vector<8x128xf32> to vector<8xf32>
    %42 = vector.shape_cast %41 : vector<8xf32> to vector<8x1xf32>
    %cst_19 = arith.constant 1.280000e+02 : f32
    %43 = vector.broadcast %cst_19 : f32 to vector<8x1xf32>
    %44 = arith.divf %42, %43 : vector<8x1xf32>
    %cst_20 = arith.constant 9.99999974E-6 : f32
    %45 = vector.broadcast %cst_20 : f32 to vector<8x1xf32>
    %46 = arith.addf %44, %45 : vector<8x1xf32>
    %47 = math.rsqrt %46 : vector<8x1xf32>
    %48 = vector.broadcast %47 : vector<8x1xf32> to vector<8x128xf32>
    %49 = arith.mulf %39, %48 : vector<8x128xf32>
    %50 = vector.broadcast %32 : vector<1x128xf32> to vector<8x128xf32>
    %51 = arith.mulf %49, %50 : vector<8x128xf32>
    %52 = vector.broadcast %33 : vector<1x128xf32> to vector<8x128xf32>
    %53 = arith.addf %51, %52 : vector<8x128xf32>
    %c0_21 = arith.constant 0 : index
    %c0_22 = arith.constant 0 : index
    %54 = vector.load %arg25[%c0_21, %c0_22] : memref<8x8xbf16, #tpu.memory_space<vmem>>, vector<8x8xbf16>
    %55 = arith.truncf %53 : vector<8x128xf32> to vector<8x128xbf16>
    %cst_23 = arith.constant dense<0.000000e+00> : vector<8x128xf32>
    %56 = tpu.matmul %54, %55, %cst_23 {dimension_numbers = #tpu.dot_dimension_numbers<[1], [0], [0], [1], [0, 0, 1, 1], [], []>} : vector<8x8xbf16>, vector<8x128xbf16>, vector<8x128xf32> -> vector<8x128xf32>
    %57 = arith.truncf %56 : vector<8x128xf32> to vector<8x128xbf16>
    %c0_24 = arith.constant 0 : index
    %c0_25 = arith.constant 0 : index
    %c0_26 = arith.constant 0 : index
    %c0_27 = arith.constant 0 : index
    %58 = vector.load %arg12[%c0_24, %c0_25, %c0_26, %c0_27] : memref<1x7x128x128xbf16, #tpu.memory_space<vmem>>, vector<1x1x128x128xbf16>
    %59 = vector.shape_cast %58 : vector<1x1x128x128xbf16> to vector<128x128xbf16>
    %cst_28 = arith.constant dense<0.000000e+00> : vector<8x128xf32>
    %60 = tpu.matmul %57, %59, %cst_28 {dimension_numbers = #tpu.dot_dimension_numbers<[1], [0], [0], [1], [0, 0, 1, 1], [], []>} : vector<8x128xbf16>, vector<128x128xbf16>, vector<8x128xf32> -> vector<8x128xf32>
    %c0_29 = arith.constant 0 : index
    %c1 = arith.constant 1 : index
    %c0_30 = arith.constant 0 : index
    %c0_31 = arith.constant 0 : index
    %61 = vector.load %arg12[%c0_29, %c1, %c0_30, %c0_31] : memref<1x7x128x128xbf16, #tpu.memory_space<vmem>>, vector<1x1x128x128xbf16>
    %62 = vector.shape_cast %61 : vector<1x1x128x128xbf16> to vector<128x128xbf16>
    %63 = vector.extract_strided_slice %7 {offsets = [8, 0], sizes = [1, 128], strides = [1, 1]} : vector<14x128xf32> to vector<1x128xf32>
    %c0_32 = arith.constant 0 : index
    %c2 = arith.constant 2 : index
    %c0_33 = arith.constant 0 : index
    %c0_34 = arith.constant 0 : index
    %64 = vector.load %arg12[%c0_32, %c2, %c0_33, %c0_34] : memref<1x7x128x128xbf16, #tpu.memory_space<vmem>>, vector<1x1x128x128xbf16>
    %65 = vector.shape_cast %64 : vector<1x1x128x128xbf16> to vector<128x128xbf16>
    %66 = vector.extract_strided_slice %7 {offsets = [9, 0], sizes = [1, 128], strides = [1, 1]} : vector<14x128xf32> to vector<1x128xf32>
    %cst_35 = arith.constant dense<0.000000e+00> : vector<8x128xf32>
    %67 = tpu.matmul %57, %62, %cst_35 {dimension_numbers = #tpu.dot_dimension_numbers<[1], [0], [0], [1], [0, 0, 1, 1], [], []>} : vector<8x128xbf16>, vector<128x128xbf16>, vector<8x128xf32> -> vector<8x128xf32>
    %68 = vector.broadcast %63 : vector<1x128xf32> to vector<8x128xf32>
    %69 = arith.addf %67, %68 : vector<8x128xf32>
    %70 = arith.negf %69 : vector<8x128xf32>
    %71 = math.exp %70 : vector<8x128xf32>
    %cst_36 = arith.constant 1.000000e+00 : f32
    %72 = vector.broadcast %cst_36 : f32 to vector<8x128xf32>
    %73 = arith.addf %72, %71 : vector<8x128xf32>
    %74 = arith.divf %72, %73 : vector<8x128xf32>
    %75 = arith.mulf %69, %74 : vector<8x128xf32>
    %76 = arith.truncf %75 : vector<8x128xf32> to vector<8x128xbf16>
    %cst_37 = arith.constant dense<0.000000e+00> : vector<8x128xf32>
    %77 = tpu.matmul %76, %65, %cst_37 {dimension_numbers = #tpu.dot_dimension_numbers<[1], [0], [0], [1], [0, 0, 1, 1], [], []>} : vector<8x128xbf16>, vector<128x128xbf16>, vector<8x128xf32> -> vector<8x128xf32>
    %78 = vector.broadcast %66 : vector<1x128xf32> to vector<8x128xf32>
    %79 = arith.addf %77, %78 : vector<8x128xf32>
    %80 = arith.mulf %60, %79 : vector<8x128xf32>
    %c0_38 = arith.constant 0 : index
    %c0_39 = arith.constant 0 : index
    %81 = vector.load %arg26[%c0_38, %c0_39] : memref<8x8xbf16, #tpu.memory_space<vmem>>, vector<8x8xbf16>
    %82 = arith.truncf %80 : vector<8x128xf32> to vector<8x128xbf16>
    %cst_40 = arith.constant dense<0.000000e+00> : vector<8x128xf32>
    %83 = tpu.matmul %81, %82, %cst_40 {dimension_numbers = #tpu.dot_dimension_numbers<[1], [0], [0], [1], [0, 0, 1, 1], [], []>} : vector<8x8xbf16>, vector<8x128xbf16>, vector<8x128xf32> -> vector<8x128xf32>
    %cst_41 = arith.constant 0.707106769 : f32
    %84 = vector.broadcast %cst_41 : f32 to vector<8x128xf32>
    %85 = arith.mulf %84, %83 : vector<8x128xf32>
    %86 = arith.addf %3, %85 : vector<8x128xf32>
    %c0_42 = arith.constant 0 : index
    %c0_43 = arith.constant 0 : index
    %87 = vector.load %arg23[%c0_42, %c0_43] : memref<16x8xbf16, #tpu.memory_space<vmem>>, vector<16x8xbf16>
    %88 = arith.truncf %31 : vector<8x128xf32> to vector<8x128xbf16>
    %cst_44 = arith.constant dense<0.000000e+00> : vector<16x128xf32>
    %89 = tpu.matmul %87, %88, %cst_44 {dimension_numbers = #tpu.dot_dimension_numbers<[1], [0], [0], [1], [0, 0, 1, 1], [], []>} : vector<16x8xbf16>, vector<8x128xbf16>, vector<16x128xf32> -> vector<16x128xf32>
    %90 = arith.truncf %89 : vector<16x128xf32> to vector<16x128xbf16>
    %c0_45 = arith.constant 0 : index
    %c3 = arith.constant 3 : index
    %c0_46 = arith.constant 0 : index
    %c0_47 = arith.constant 0 : index
    %91 = vector.load %arg12[%c0_45, %c3, %c0_46, %c0_47] : memref<1x7x128x128xbf16, #tpu.memory_space<vmem>>, vector<1x1x128x128xbf16>
    %92 = vector.shape_cast %91 : vector<1x1x128x128xbf16> to vector<128x128xbf16>
    %cst_48 = arith.constant dense<0.000000e+00> : vector<16x128xf32>
    %93 = tpu.matmul %90, %92, %cst_48 {dimension_numbers = #tpu.dot_dimension_numbers<[1], [0], [0], [1], [0, 0, 1, 1], [], []>} : vector<16x128xbf16>, vector<128x128xbf16>, vector<16x128xf32> -> vector<16x128xf32>
    %c0_49 = arith.constant 0 : index
    %c4 = arith.constant 4 : index
    %c0_50 = arith.constant 0 : index
    %c0_51 = arith.constant 0 : index
    %94 = vector.load %arg12[%c0_49, %c4, %c0_50, %c0_51] : memref<1x7x128x128xbf16, #tpu.memory_space<vmem>>, vector<1x1x128x128xbf16>
    %95 = vector.shape_cast %94 : vector<1x1x128x128xbf16> to vector<128x128xbf16>
    %96 = vector.extract_strided_slice %7 {offsets = [10, 0], sizes = [1, 128], strides = [1, 1]} : vector<14x128xf32> to vector<1x128xf32>
    %c0_52 = arith.constant 0 : index
    %c5 = arith.constant 5 : index
    %c0_53 = arith.constant 0 : index
    %c0_54 = arith.constant 0 : index
    %97 = vector.load %arg12[%c0_52, %c5, %c0_53, %c0_54] : memref<1x7x128x128xbf16, #tpu.memory_space<vmem>>, vector<1x1x128x128xbf16>
    %98 = vector.shape_cast %97 : vector<1x1x128x128xbf16> to vector<128x128xbf16>
    %99 = vector.extract_strided_slice %7 {offsets = [11, 0], sizes = [1, 128], strides = [1, 1]} : vector<14x128xf32> to vector<1x128xf32>
    %cst_55 = arith.constant dense<0.000000e+00> : vector<16x128xf32>
    %100 = tpu.matmul %5, %95, %cst_55 {dimension_numbers = #tpu.dot_dimension_numbers<[1], [0], [0], [1], [0, 0, 1, 1], [], []>} : vector<16x128xbf16>, vector<128x128xbf16>, vector<16x128xf32> -> vector<16x128xf32>
    %101 = vector.broadcast %96 : vector<1x128xf32> to vector<16x128xf32>
    %102 = arith.addf %100, %101 : vector<16x128xf32>
    %103 = arith.negf %102 : vector<16x128xf32>
    %104 = math.exp %103 : vector<16x128xf32>
    %cst_56 = arith.constant 1.000000e+00 : f32
    %105 = vector.broadcast %cst_56 : f32 to vector<16x128xf32>
    %106 = arith.addf %105, %104 : vector<16x128xf32>
    %107 = arith.divf %105, %106 : vector<16x128xf32>
    %108 = arith.mulf %102, %107 : vector<16x128xf32>
    %109 = arith.truncf %108 : vector<16x128xf32> to vector<16x128xbf16>
    %cst_57 = arith.constant dense<0.000000e+00> : vector<16x128xf32>
    %110 = tpu.matmul %109, %98, %cst_57 {dimension_numbers = #tpu.dot_dimension_numbers<[1], [0], [0], [1], [0, 0, 1, 1], [], []>} : vector<16x128xbf16>, vector<128x128xbf16>, vector<16x128xf32> -> vector<16x128xf32>
    %111 = vector.broadcast %99 : vector<1x128xf32> to vector<16x128xf32>
    %112 = arith.addf %110, %111 : vector<16x128xf32>
    %113 = arith.mulf %93, %112 : vector<16x128xf32>
    %c0_58 = arith.constant 0 : index
    %c0_59 = arith.constant 0 : index
    %114 = vector.load %arg24[%c0_58, %c0_59] : memref<8x16xbf16, #tpu.memory_space<vmem>>, vector<8x16xbf16>
    %115 = arith.truncf %113 : vector<16x128xf32> to vector<16x128xbf16>
    %cst_60 = arith.constant dense<0.000000e+00> : vector<8x128xf32>
    %116 = tpu.matmul %114, %115, %cst_60 {dimension_numbers = #tpu.dot_dimension_numbers<[1], [0], [0], [1], [0, 0, 1, 1], [], []>} : vector<8x16xbf16>, vector<16x128xbf16>, vector<8x128xf32> -> vector<8x128xf32>
    %cst_61 = arith.constant 0.707106769 : f32
    %117 = vector.broadcast %cst_61 : f32 to vector<8x128xf32>
    %118 = arith.mulf %117, %116 : vector<8x128xf32>
    %119 = arith.addf %4, %118 : vector<8x128xf32>
    %120 = vector.extract_strided_slice %7 {offsets = [4, 0], sizes = [1, 128], strides = [1, 1]} : vector<14x128xf32> to vector<1x128xf32>
    %121 = vector.extract_strided_slice %7 {offsets = [5, 0], sizes = [1, 128], strides = [1, 1]} : vector<14x128xf32> to vector<1x128xf32>
    %cst_62 = arith.constant dense<0.000000e+00> : vector<8xf32>
    %122 = vector.multi_reduction <add>, %86, %cst_62 [1] : vector<8x128xf32> to vector<8xf32>
    %123 = vector.shape_cast %122 : vector<8xf32> to vector<8x1xf32>
    %cst_63 = arith.constant 1.280000e+02 : f32
    %124 = vector.broadcast %cst_63 : f32 to vector<8x1xf32>
    %125 = arith.divf %123, %124 : vector<8x1xf32>
    %126 = vector.broadcast %125 : vector<8x1xf32> to vector<8x128xf32>
    %127 = arith.subf %86, %126 : vector<8x128xf32>
    %128 = arith.mulf %127, %127 : vector<8x128xf32>
    %cst_64 = arith.constant dense<0.000000e+00> : vector<8xf32>
    %129 = vector.multi_reduction <add>, %128, %cst_64 [1] : vector<8x128xf32> to vector<8xf32>
    %130 = vector.shape_cast %129 : vector<8xf32> to vector<8x1xf32>
    %cst_65 = arith.constant 1.280000e+02 : f32
    %131 = vector.broadcast %cst_65 : f32 to vector<8x1xf32>
    %132 = arith.divf %130, %131 : vector<8x1xf32>
    %cst_66 = arith.constant 9.99999974E-6 : f32
    %133 = vector.broadcast %cst_66 : f32 to vector<8x1xf32>
    %134 = arith.addf %132, %133 : vector<8x1xf32>
    %135 = math.rsqrt %134 : vector<8x1xf32>
    %136 = vector.broadcast %135 : vector<8x1xf32> to vector<8x128xf32>
    %137 = arith.mulf %127, %136 : vector<8x128xf32>
    %138 = vector.broadcast %120 : vector<1x128xf32> to vector<8x128xf32>
    %139 = arith.mulf %137, %138 : vector<8x128xf32>
    %140 = vector.broadcast %121 : vector<1x128xf32> to vector<8x128xf32>
    %141 = arith.addf %139, %140 : vector<8x128xf32>
    %142 = vector.extract_strided_slice %7 {offsets = [6, 0], sizes = [1, 128], strides = [1, 1]} : vector<14x128xf32> to vector<1x128xf32>
    %143 = vector.extract_strided_slice %7 {offsets = [7, 0], sizes = [1, 128], strides = [1, 1]} : vector<14x128xf32> to vector<1x128xf32>
    %cst_67 = arith.constant dense<0.000000e+00> : vector<8xf32>
    %144 = vector.multi_reduction <add>, %119, %cst_67 [1] : vector<8x128xf32> to vector<8xf32>
    %145 = vector.shape_cast %144 : vector<8xf32> to vector<8x1xf32>
    %cst_68 = arith.constant 1.280000e+02 : f32
    %146 = vector.broadcast %cst_68 : f32 to vector<8x1xf32>
    %147 = arith.divf %145, %146 : vector<8x1xf32>
    %148 = vector.broadcast %147 : vector<8x1xf32> to vector<8x128xf32>
    %149 = arith.subf %119, %148 : vector<8x128xf32>
    %150 = arith.mulf %149, %149 : vector<8x128xf32>
    %cst_69 = arith.constant dense<0.000000e+00> : vector<8xf32>
    %151 = vector.multi_reduction <add>, %150, %cst_69 [1] : vector<8x128xf32> to vector<8xf32>
    %152 = vector.shape_cast %151 : vector<8xf32> to vector<8x1xf32>
    %cst_70 = arith.constant 1.280000e+02 : f32
    %153 = vector.broadcast %cst_70 : f32 to vector<8x1xf32>
    %154 = arith.divf %152, %153 : vector<8x1xf32>
    %cst_71 = arith.constant 9.99999974E-6 : f32
    %155 = vector.broadcast %cst_71 : f32 to vector<8x1xf32>
    %156 = arith.addf %154, %155 : vector<8x1xf32>
    %157 = math.rsqrt %156 : vector<8x1xf32>
    %158 = vector.broadcast %157 : vector<8x1xf32> to vector<8x128xf32>
    %159 = arith.mulf %149, %158 : vector<8x128xf32>
    %160 = vector.broadcast %142 : vector<1x128xf32> to vector<8x128xf32>
    %161 = arith.mulf %159, %160 : vector<8x128xf32>
    %162 = vector.broadcast %143 : vector<1x128xf32> to vector<8x128xf32>
    %163 = arith.addf %161, %162 : vector<8x128xf32>
    %c0_72 = arith.constant 0 : index
    %c0_73 = arith.constant 0 : index
    %c0_74 = arith.constant 0 : index
    %c0_75 = arith.constant 0 : index
    %164 = vector.load %arg13[%c0_72, %c0_73, %c0_74, %c0_75] : memref<1x2x128x256xbf16, #tpu.memory_space<vmem>>, vector<1x1x128x256xbf16>
    %165 = vector.shape_cast %164 : vector<1x1x128x256xbf16> to vector<128x256xbf16>
    %166 = vector.extract_strided_slice %9 {offsets = [0, 0], sizes = [1, 256], strides = [1, 1]} : vector<2x256xf32> to vector<1x256xf32>
    %c0_76 = arith.constant 0 : index
    %c0_77 = arith.constant 0 : index
    %c0_78 = arith.constant 0 : index
    %c0_79 = arith.constant 0 : index
    %167 = vector.load %arg14[%c0_76, %c0_77, %c0_78, %c0_79] : memref<1x2x256x128xbf16, #tpu.memory_space<vmem>>, vector<1x1x256x128xbf16>
    %168 = vector.shape_cast %167 : vector<1x1x256x128xbf16> to vector<256x128xbf16>
    %169 = vector.extract_strided_slice %7 {offsets = [12, 0], sizes = [1, 128], strides = [1, 1]} : vector<14x128xf32> to vector<1x128xf32>
    %170 = arith.truncf %141 : vector<8x128xf32> to vector<8x128xbf16>
    %cst_80 = arith.constant dense<0.000000e+00> : vector<8x256xf32>
    %171 = tpu.matmul %170, %165, %cst_80 {dimension_numbers = #tpu.dot_dimension_numbers<[1], [0], [0], [1], [0, 0, 1, 1], [], []>} : vector<8x128xbf16>, vector<128x256xbf16>, vector<8x256xf32> -> vector<8x256xf32>
    %172 = vector.broadcast %166 : vector<1x256xf32> to vector<8x256xf32>
    %173 = arith.addf %171, %172 : vector<8x256xf32>
    %174 = arith.negf %173 : vector<8x256xf32>
    %175 = math.exp %174 : vector<8x256xf32>
    %cst_81 = arith.constant 1.000000e+00 : f32
    %176 = vector.broadcast %cst_81 : f32 to vector<8x256xf32>
    %177 = arith.addf %176, %175 : vector<8x256xf32>
    %178 = arith.divf %176, %177 : vector<8x256xf32>
    %179 = arith.mulf %173, %178 : vector<8x256xf32>
    %180 = arith.truncf %179 : vector<8x256xf32> to vector<8x256xbf16>
    %cst_82 = arith.constant dense<0.000000e+00> : vector<8x128xf32>
    %181 = tpu.matmul %180, %168, %cst_82 {dimension_numbers = #tpu.dot_dimension_numbers<[1], [0], [0], [1], [0, 0, 1, 1], [], []>} : vector<8x256xbf16>, vector<256x128xbf16>, vector<8x128xf32> -> vector<8x128xf32>
    %182 = vector.broadcast %169 : vector<1x128xf32> to vector<8x128xf32>
    %183 = arith.addf %181, %182 : vector<8x128xf32>
    %c0_83 = arith.constant 0 : index
    %c1_84 = arith.constant 1 : index
    %c0_85 = arith.constant 0 : index
    %c0_86 = arith.constant 0 : index
    %184 = vector.load %arg13[%c0_83, %c1_84, %c0_85, %c0_86] : memref<1x2x128x256xbf16, #tpu.memory_space<vmem>>, vector<1x1x128x256xbf16>
    %185 = vector.shape_cast %184 : vector<1x1x128x256xbf16> to vector<128x256xbf16>
    %186 = vector.extract_strided_slice %9 {offsets = [1, 0], sizes = [1, 256], strides = [1, 1]} : vector<2x256xf32> to vector<1x256xf32>
    %c0_87 = arith.constant 0 : index
    %c1_88 = arith.constant 1 : index
    %c0_89 = arith.constant 0 : index
    %c0_90 = arith.constant 0 : index
    %187 = vector.load %arg14[%c0_87, %c1_88, %c0_89, %c0_90] : memref<1x2x256x128xbf16, #tpu.memory_space<vmem>>, vector<1x1x256x128xbf16>
    %188 = vector.shape_cast %187 : vector<1x1x256x128xbf16> to vector<256x128xbf16>
    %189 = vector.extract_strided_slice %7 {offsets = [13, 0], sizes = [1, 128], strides = [1, 1]} : vector<14x128xf32> to vector<1x128xf32>
    %190 = arith.truncf %163 : vector<8x128xf32> to vector<8x128xbf16>
    %cst_91 = arith.constant dense<0.000000e+00> : vector<8x256xf32>
    %191 = tpu.matmul %190, %185, %cst_91 {dimension_numbers = #tpu.dot_dimension_numbers<[1], [0], [0], [1], [0, 0, 1, 1], [], []>} : vector<8x128xbf16>, vector<128x256xbf16>, vector<8x256xf32> -> vector<8x256xf32>
    %192 = vector.broadcast %186 : vector<1x256xf32> to vector<8x256xf32>
    %193 = arith.addf %191, %192 : vector<8x256xf32>
    %194 = arith.negf %193 : vector<8x256xf32>
    %195 = math.exp %194 : vector<8x256xf32>
    %cst_92 = arith.constant 1.000000e+00 : f32
    %196 = vector.broadcast %cst_92 : f32 to vector<8x256xf32>
    %197 = arith.addf %196, %195 : vector<8x256xf32>
    %198 = arith.divf %196, %197 : vector<8x256xf32>
    %199 = arith.mulf %193, %198 : vector<8x256xf32>
    %200 = arith.truncf %199 : vector<8x256xf32> to vector<8x256xbf16>
    %cst_93 = arith.constant dense<0.000000e+00> : vector<8x128xf32>
    %201 = tpu.matmul %200, %188, %cst_93 {dimension_numbers = #tpu.dot_dimension_numbers<[1], [0], [0], [1], [0, 0, 1, 1], [], []>} : vector<8x256xbf16>, vector<256x128xbf16>, vector<8x128xf32> -> vector<8x128xf32>
    %202 = vector.broadcast %189 : vector<1x128xf32> to vector<8x128xf32>
    %203 = arith.addf %201, %202 : vector<8x128xf32>
    %c1_i32 = arith.constant 1 : i32
    %204 = arith.cmpi eq, %arg0, %c1_i32 : i32
    %205 = arith.extui %204 : i1 to i32
    %206 = arith.sitofp %205 : i32 to f32
    %207 = arith.truncf %86 : vector<8x128xf32> to vector<8x128xbf16>
    %c0_94 = arith.constant 0 : index
    %c6 = arith.constant 6 : index
    %c0_95 = arith.constant 0 : index
    %c0_96 = arith.constant 0 : index
    %208 = vector.load %arg12[%c0_94, %c6, %c0_95, %c0_96] : memref<1x7x128x128xbf16, #tpu.memory_space<vmem>>, vector<1x1x128x128xbf16>
    %209 = vector.shape_cast %208 : vector<1x1x128x128xbf16> to vector<128x128xbf16>
    %cst_97 = arith.constant dense<0.000000e+00> : vector<8x128xf32>
    %210 = tpu.matmul %207, %209, %cst_97 {dimension_numbers = #tpu.dot_dimension_numbers<[1], [0], [0], [1], [0, 0, 1, 1], [], []>} : vector<8x128xbf16>, vector<128x128xbf16>, vector<8x128xf32> -> vector<8x128xf32>
    %211 = vector.broadcast %206 : f32 to vector<8x128xf32>
    %212 = arith.mulf %211, %210 : vector<8x128xf32>
    %cst_98 = arith.constant 1.000000e+00 : f32
    %213 = arith.subf %cst_98, %206 : f32
    %214 = vector.broadcast %213 : f32 to vector<8x128xf32>
    %215 = arith.mulf %214, %86 : vector<8x128xf32>
    %216 = arith.addf %212, %215 : vector<8x128xf32>
    %217 = arith.addf %216, %183 : vector<8x128xf32>
    %218 = arith.addf %119, %203 : vector<8x128xf32>
    %c0_99 = arith.constant 0 : index
    %c0_100 = arith.constant 0 : index
    %219 = vector.load %arg20[%c0_99, %c0_100] : memref<8x128xf32, #tpu.memory_space<vmem>>, vector<8x128xf32>
    tpu.vector_store %arg20[%c0_99, %c0_100], %217 {strides = array<i32>} : memref<8x128xf32, #tpu.memory_space<vmem>>, vector<8x128xf32>,
    %c0_101 = arith.constant 0 : index
    %c0_102 = arith.constant 0 : index
    %220 = vector.load %arg21[%c0_101, %c0_102] : memref<8x128xf32, #tpu.memory_space<vmem>>, vector<8x128xf32>
    tpu.vector_store %arg21[%c0_101, %c0_102], %218 {strides = array<i32>} : memref<8x128xf32, #tpu.memory_space<vmem>>, vector<8x128xf32>,
    %221 = arith.extui %204 : i1 to i32
    %c0_i32_103 = arith.constant 0 : i32
    %222 = arith.cmpi ne, %221, %c0_i32_103 : i32
    scf.if %222 {
      %c0_104 = arith.constant 0 : index
      %c0_105 = arith.constant 0 : index
      %223 = vector.load %arg18[%c0_104, %c0_105] : memref<2x128xf32, #tpu.memory_space<vmem>>, vector<2x128xf32>
      %224 = arith.truncf %217 : vector<8x128xf32> to vector<8x128xbf16>
      %c0_106 = arith.constant 0 : index
      %c0_107 = arith.constant 0 : index
      %c0_108 = arith.constant 0 : index
      %225 = vector.load %arg17[%c0_106, %c0_107, %c0_108] : memref<2x128x128xbf16, #tpu.memory_space<vmem>>, vector<1x128x128xbf16>
      %226 = vector.shape_cast %225 : vector<1x128x128xbf16> to vector<128x128xbf16>
      %cst_109 = arith.constant dense<0.000000e+00> : vector<8x128xf32>
      %227 = tpu.matmul %224, %226, %cst_109 {dimension_numbers = #tpu.dot_dimension_numbers<[1], [0], [0], [1], [0, 0, 1, 1], [], []>} : vector<8x128xbf16>, vector<128x128xbf16>, vector<8x128xf32> -> vector<8x128xf32>
      %228 = vector.extract_strided_slice %223 {offsets = [0, 0], sizes = [1, 128], strides = [1, 1]} : vector<2x128xf32> to vector<1x128xf32>
      %229 = vector.broadcast %228 : vector<1x128xf32> to vector<8x128xf32>
      %230 = arith.addf %227, %229 : vector<8x128xf32>
      %231 = arith.negf %230 : vector<8x128xf32>
      %232 = math.exp %231 : vector<8x128xf32>
      %cst_110 = arith.constant 1.000000e+00 : f32
      %233 = vector.broadcast %cst_110 : f32 to vector<8x128xf32>
      %234 = arith.addf %233, %232 : vector<8x128xf32>
      %235 = arith.divf %233, %234 : vector<8x128xf32>
      %236 = arith.mulf %230, %235 : vector<8x128xf32>
      %237 = arith.truncf %236 : vector<8x128xf32> to vector<8x128xbf16>
      %c1_111 = arith.constant 1 : index
      %c0_112 = arith.constant 0 : index
      %c0_113 = arith.constant 0 : index
      %238 = vector.load %arg17[%c1_111, %c0_112, %c0_113] : memref<2x128x128xbf16, #tpu.memory_space<vmem>>, vector<1x128x128xbf16>
      %239 = vector.shape_cast %238 : vector<1x128x128xbf16> to vector<128x128xbf16>
      %cst_114 = arith.constant dense<0.000000e+00> : vector<8x128xf32>
      %240 = tpu.matmul %237, %239, %cst_114 {dimension_numbers = #tpu.dot_dimension_numbers<[1], [0], [0], [1], [0, 0, 1, 1], [], []>} : vector<8x128xbf16>, vector<128x128xbf16>, vector<8x128xf32> -> vector<8x128xf32>
      %241 = vector.extract_strided_slice %223 {offsets = [1, 0], sizes = [1, 128], strides = [1, 1]} : vector<2x128xf32> to vector<1x128xf32>
      %242 = vector.broadcast %241 : vector<1x128xf32> to vector<8x128xf32>
      %243 = arith.addf %240, %242 : vector<8x128xf32>
      %c0_115 = arith.constant 0 : index
      %c0_116 = arith.constant 0 : index
      %244 = vector.load %arg8[%c0_115, %c0_116] : memref<1x8xi32, #tpu.memory_space<vmem>>, vector<1x8xi32>
      %245 = tpu.iota {dimensions = array<i32: 0>} : vector<2x8xi32>
      %246 = vector.broadcast %244 : vector<1x8xi32> to vector<2x8xi32>
      %247 = arith.cmpi eq, %245, %246 : vector<2x8xi32>
      %248 = arith.extui %247 : vector<2x8xi1> to vector<2x8xi32>
      %249 = arith.sitofp %248 : vector<2x8xi32> to vector<2x8xf32>
      %250 = arith.truncf %249 : vector<2x8xf32> to vector<2x8xbf16>
      %251 = arith.truncf %243 : vector<8x128xf32> to vector<8x128xbf16>
      %cst_117 = arith.constant dense<0.000000e+00> : vector<2x128xf32>
      %252 = tpu.matmul %250, %251, %cst_117 {dimension_numbers = #tpu.dot_dimension_numbers<[1], [0], [0], [1], [0, 0, 1, 1], [], []>} : vector<2x8xbf16>, vector<8x128xbf16>, vector<2x128xf32> -> vector<2x128xf32>
      %cst_118 = arith.constant 5.000000e-01 : f32
      %253 = vector.broadcast %cst_118 : f32 to vector<2x128xf32>
      %254 = arith.mulf %253, %252 : vector<2x128xf32>
      %c0_119 = arith.constant 0 : index
      %c0_120 = arith.constant 0 : index
      %255 = vector.load %arg19[%c0_119, %c0_120] : memref<2x128xf32, #tpu.memory_space<vmem>>, vector<2x128xf32>
      tpu.vector_store %arg19[%c0_119, %c0_120], %254 {strides = array<i32>} : memref<2x128xf32, #tpu.memory_space<vmem>>, vector<2x128xf32>,
    } else {
    }
    return
  }
  func.func @transform_0(%arg0: i32) -> (i32, i32) {
    %c0_i32 = arith.constant 0 : i32
    %c0_i32_0 = arith.constant 0 : i32
    %c0_i32_1 = arith.constant 0 : i32
    return %c0_i32, %c0_i32_0 : i32, i32
  }
  func.func @transform_1(%arg0: i32) -> (i32, i32) {
    %c0_i32 = arith.constant 0 : i32
    %c0_i32_0 = arith.constant 0 : i32
    %c0_i32_1 = arith.constant 0 : i32
    return %c0_i32, %c0_i32_0 : i32, i32
  }
  func.func @transform_2(%arg0: i32) -> (i32, i32) {
    %c0_i32 = arith.constant 0 : i32
    %c0_i32_0 = arith.constant 0 : i32
    %c0_i32_1 = arith.constant 0 : i32
    return %c0_i32, %c0_i32_0 : i32, i32
  }
  func.func @transform_3(%arg0: i32) -> (i32, i32) {
    %c0_i32 = arith.constant 0 : i32
    %c0_i32_0 = arith.constant 0 : i32
    %c0_i32_1 = arith.constant 0 : i32
    return %c0_i32, %c0_i32_0 : i32, i32
  }
  func.func @transform_4(%arg0: i32) -> (i32, i32) {
    %c0_i32 = arith.constant 0 : i32
    %c0_i32_0 = arith.constant 0 : i32
    %c0_i32_1 = arith.constant 0 : i32
    return %c0_i32, %c0_i32_0 : i32, i32
  }
  func.func @transform_5(%arg0: i32) -> (i32, i32) {
    %c0_i32 = arith.constant 0 : i32
    %c0_i32_0 = arith.constant 0 : i32
    %c0_i32_1 = arith.constant 0 : i32
    return %c0_i32, %c0_i32_0 : i32, i32
  }
  func.func @transform_6(%arg0: i32) -> (i32, i32) {
    %c0_i32 = arith.constant 0 : i32
    %c0_i32_0 = arith.constant 0 : i32
    %c0_i32_1 = arith.constant 0 : i32
    return %c0_i32, %c0_i32_0 : i32, i32
  }
  func.func @transform_7(%arg0: i32) -> (i32, i32) {
    %c0_i32 = arith.constant 0 : i32
    %c0_i32_0 = arith.constant 0 : i32
    %c0_i32_1 = arith.constant 0 : i32
    return %c0_i32, %c0_i32_0 : i32, i32
  }
  func.func @transform_8(%arg0: i32) -> (i32, i32) {
    %c0_i32 = arith.constant 0 : i32
    %c0_i32_0 = arith.constant 0 : i32
    %c0_i32_1 = arith.constant 0 : i32
    return %c0_i32, %c0_i32_0 : i32, i32
  }
  func.func @transform_9(%arg0: i32) -> (i32, i32, i32) {
    %c0_i32 = arith.constant 0 : i32
    %c0_i32_0 = arith.constant 0 : i32
    %c0_i32_1 = arith.constant 0 : i32
    %c0_i32_2 = arith.constant 0 : i32
    return %c0_i32, %c0_i32_0, %c0_i32_1 : i32, i32, i32
  }
  func.func @transform_10(%arg0: i32) -> (i32, i32) {
    %c0_i32 = arith.constant 0 : i32
    %c0_i32_0 = arith.constant 0 : i32
    %c0_i32_1 = arith.constant 0 : i32
    return %c0_i32, %c0_i32_0 : i32, i32
  }
  func.func @transform_11(%arg0: i32) -> (i32, i32, i32, i32) {
    %c0_i32 = arith.constant 0 : i32
    %c0_i32_0 = arith.constant 0 : i32
    %c0_i32_1 = arith.constant 0 : i32
    %c0_i32_2 = arith.constant 0 : i32
    return %arg0, %c0_i32, %c0_i32_0, %c0_i32_1 : i32, i32, i32, i32
  }
  func.func @transform_12(%arg0: i32) -> (i32, i32, i32, i32) {
    %c0_i32 = arith.constant 0 : i32
    %c0_i32_0 = arith.constant 0 : i32
    %c0_i32_1 = arith.constant 0 : i32
    %c0_i32_2 = arith.constant 0 : i32
    return %arg0, %c0_i32, %c0_i32_0, %c0_i32_1 : i32, i32, i32, i32
  }
  func.func @transform_13(%arg0: i32) -> (i32, i32, i32, i32) {
    %c0_i32 = arith.constant 0 : i32
    %c0_i32_0 = arith.constant 0 : i32
    %c0_i32_1 = arith.constant 0 : i32
    %c0_i32_2 = arith.constant 0 : i32
    return %arg0, %c0_i32, %c0_i32_0, %c0_i32_1 : i32, i32, i32, i32
  }
  func.func @transform_14(%arg0: i32) -> (i32, i32, i32) {
    %c0_i32 = arith.constant 0 : i32
    %c0_i32_0 = arith.constant 0 : i32
    %c0_i32_1 = arith.constant 0 : i32
    return %arg0, %c0_i32, %c0_i32_0 : i32, i32, i32
  }
  func.func @transform_15(%arg0: i32) -> (i32, i32, i32) {
    %c0_i32 = arith.constant 0 : i32
    %c0_i32_0 = arith.constant 0 : i32
    %c0_i32_1 = arith.constant 0 : i32
    return %arg0, %c0_i32, %c0_i32_0 : i32, i32, i32
  }
  func.func @transform_16(%arg0: i32) -> (i32, i32, i32) {
    %c0_i32 = arith.constant 0 : i32
    %c0_i32_0 = arith.constant 0 : i32
    %c0_i32_1 = arith.constant 0 : i32
    %c0_i32_2 = arith.constant 0 : i32
    return %c0_i32, %c0_i32_0, %c0_i32_1 : i32, i32, i32
  }
  func.func @transform_17(%arg0: i32) -> (i32, i32) {
    %c0_i32 = arith.constant 0 : i32
    %c0_i32_0 = arith.constant 0 : i32
    %c0_i32_1 = arith.constant 0 : i32
    return %c0_i32, %c0_i32_0 : i32, i32
  }
  func.func @transform_18(%arg0: i32) -> (i32, i32) {
    %c0_i32 = arith.constant 0 : i32
    %c0_i32_0 = arith.constant 0 : i32
    %c0_i32_1 = arith.constant 0 : i32
    return %c0_i32, %c0_i32_0 : i32, i32
  }
}

</mosaic_0001>

<bundles_post_ra>
// kernel: sub.5
= control target key start
LH: loop header
LB: loop body
LE: loop exit
PB: predicated region body
PF: predicated region fallthrough
CT: control target
= control target key end

     0   :  { %3 = vsyncpa [#allocation1], 0  ;;  %s104_s0 = inlined_call_operand.vmem [shape: f32[16,3], index: 0, kind: input, shape index: {}]   ;;  %s105_s1 = inlined_call_operand.vmem [shape: f32[16,3], index: 1, kind: input, shape index: {}]   ;;  %s106_s2 = inlined_call_operand.hbm [shape: f32[16,3], index: 2, kind: output, shape index: {}]  }
   0x1   :  { %v4_v0 = vld [vmem:[%s104_s0] sm:$0xff]  ;;  %v33_v3 = vld [vmem:[%s104_s0 + $0x8] sm:$0xff] }
   0x2   :  { %v5_v1 = vld [vmem:[%s105_s1] sm:$0xff]  ;;  %v34_v4 = vld [vmem:[%s105_s1 + $0x8] sm:$0xff]  ;;  %s62_s1 = smov [#allocation0]  }
   0x3   :  { %v8_v2 = vsub.f32 %v4_v0, %v5_v1  ;;  %s24_s16 = sshll.u32 %s62_s1, 4  ;;  %v17_v5 = vsub.f32 %v33_v3, %v34_v4  ;;  %s25_s16 = int_to_ptr.vmem [resolvable:$true] %s24_s16 }
   0x4   :  { %s38_s17 = scalar_lea.vmem %s25_s16, 256  ;;  %p43_p1 = scmp.lt.s32.totalorder %s25_s16, %s25_s16 }
   0x5   :  { %10 = vst [vmem:[#allocation0] sm:$0xff] %v8_v2  ;;  %20 = vst [vmem:[#allocation0 + $0x8] sm:$0xff] %v17_v5  ;;  %p39_p0 = scmp.ne.s32.totalorder %s25_s16, %s38_s17  ;;  %p44_p2 = scmp.lt.s32.totalorder %s38_s17, %s38_s17 }
   0x7   :  { %p45_p3 = por %p44_p2, %p43_p1 }
   0x9   :  { %p46_p4 = pnand %p45_p3, %p39_p0 }
   0xb   :  { %49 = shalt.err (!%p46_p4)
}
   0xc   :  { %s50_s20 = scalar_lea.hbm %s106_s2, 256 }
   0xd   :  { %p51_p5 = scmp.ne.s32.totalorder %s106_s2, %s50_s20  ;;  %p54_p6 = scmp.lt.u32.totalorder %s50_s20, %s106_s2 }
   0xf   :  { %p56_p7 = pnand %p54_p6, %p51_p5 }
  0x11   :  { %59 = shalt.err (!%p56_p7)
}
  0x12   :  { %s63_s25 = smov 128   ;;  %s64_s26 = smov 8  }
  0x13   :  { %30 = dma.vmem_to_hbm [thread:$0]  %s25_s16, 256, %s106_s2, [#allocation1], %s63_s25, %s63_s25, %s64_s26  }
  0x14   :  { %60 = dma.done.wait [#allocation1], 256  }
  0x15   :  { %61 = vsyncadd [#allocation1], 4294967040 }
  0x16   :  { %32 = vsyncpa [#allocation1], 1 }

// kernel: se3set_forward.1
= control target key start
LH: loop header
LB: loop body
LE: loop exit
PB: predicated region body
PF: predicated region fallthrough
CT: control target
= control target key end

     0   :  { %s8293_s0 = inlined_call_operand.hbm [shape: f32[16,3], index: 0, kind: input, shape index: {}]   ;;  %s8294_s1 = inlined_call_operand.hbm [shape: f32[1,128], index: 1, kind: input, shape index: {}]   ;;  %s8295_s2 = inlined_call_operand.hbm [shape: bf16[8,128], index: 2, kind: input, shape index: {}]   ;;  %s8296_s3 = inlined_call_operand.hbm [shape: s32[16,1], index: 3, kind: input, shape index: {}]   ;;  %s8297_s4 = inlined_call_operand.hbm [shape: s32[1,16], index: 4, kind: input, shape index: {}]   ;;  %s8298_s5 = inlined_call_operand.hbm [shape: s32[8,1], index: 5, kind: input, shape index: {}]   ;;  %s8299_s6 = inlined_call_operand.hbm [shape: s32[1,8], index: 6, kind: input, shape index: {}]   ;;  %s8300_s7 = inlined_call_operand.hbm [shape: s32[1,8], index: 7, kind: input, shape index: {}]   ;;  %s8301_s8 = inlined_call_operand.hbm [shape: bf16[16,128], index: 8, kind: input, shape index: {}]   ;;  %s8302_s9 = inlined_call_operand.hbm [shape: bf16[8,128,128], index: 9, kind: input, shape index: {}]   ;;  %s8303_s10 = inlined_call_operand.hbm [shape: f32[8,128], index: 10, kind: input, shape index: {}]   ;;  %s8304_s11 = inlined_call_operand.hbm [shape: bf16[2,7,128,128], index: 11, kind: input, shape index: {}]   ;;  %s8305_s12 = inlined_call_operand.hbm [shape: bf16[2,2,128,256], index: 12, kind: input, shape index: {}]   ;;  %s8306_s13 = inlined_call_operand.hbm [shape: bf16[2,2,256,128], index: 13, kind: input, shape index: {}]   ;;  %s8307_s14 = inlined_call_operand.hbm [shape: f32[2,14,128], index: 14, kind: input, shape index: {}]   ;;  %s8308_s15 = inlined_call_operand.hbm [shape: f32[2,2,256], index: 15, kind: input, shape index: {}]   ;;  %s8309_s16 = inlined_call_operand.hbm [shape: bf16[2,128,128], index: 16, kind: input, shape index: {}]   ;;  %s8310_s17 = inlined_call_operand.hbm [shape: f32[2,128], index: 17, kind: input, shape index: {}]   ;;  %s8311_s18 = inlined_call_operand.hbm [shape: f32[2,128], index: 18, kind: output, shape index: {}]  }
   0x1   :  { %8356 = sst [smem:[#allocation59_spill]] %s8293_s0 }
   0x2   :  { %8357 = sst [smem:[#allocation60_spill]] %s8294_s1 }
   0x3   :  { %8358 = sst [smem:[#allocation61_spill]] %s8295_s2 }
   0x4   :  { %8359 = sst [smem:[#allocation62_spill]] %s8296_s3 }
   0x5   :  { %8360 = sst [smem:[#allocation63_spill]] %s8297_s4 }
   0x6   :  { %8361 = sst [smem:[#allocation64_spill]] %s8298_s5 }
   0x7   :  { %8362 = sst [smem:[#allocation65_spill]] %s8300_s7 }
   0x8   :  { %8363 = sst [smem:[#allocation66_spill]] %s8302_s9 }
   0x9   :  { %8364 = sst [smem:[#allocation67_spill]] %s8303_s10 }
   0xa   :  { %8365 = sst [smem:[#allocation68_spill]] %s8304_s11 }
   0xb   :  { %8366 = sst [smem:[#allocation69_spill]] %s8306_s13 }
   0xc   :  { %8367 = sst [smem:[#allocation70_spill]] %s8307_s14 }
   0xd   :  { %8368 = sst [smem:[#allocation71_spill]] %s8308_s15 }
   0xe   :  { %8369 = sst [smem:[#allocation72_spill]] %s8309_s16 }
   0xf   :  { %8370 = sst [smem:[#allocation73_spill]] %s8310_s17 }
  0x10   :  { %8371 = sst [smem:[#allocation74_spill]] %s8311_s18 }
  0x11   :  { %23 = vsyncpa [#allocation10], 0 }
  0x12   :  { %24 = vsyncpa [#allocation13], 0 }
  0x13   :  { %25 = vsyncpa [#allocation16], 0 }
  0x14   :  { %26 = vsyncpa [#allocation19], 0 }
  0x15   :  { %27 = vsyncpa [#allocation22], 0 }
  0x16   :  { %28 = vsyncpa [#allocation25], 0 }
  0x17   :  { %29 = vsyncpa [#allocation28], 0 }
  0x18   :  { %31 = vsyncpa [#allocation28 + $0x1], 0 }
  0x19   :  { %32 = vsyncpa [#allocation31], 0 }
  0x1a   :  { %34 = vsyncpa [#allocation31 + $0x1], 0 }
  0x1b   :  { %35 = vsyncpa [#allocation34], 0 }
  0x1c   :  { %37 = vsyncpa [#allocation34 + $0x1], 0 }
  0x1d   :  { %38 = vsyncpa [#allocation37], 0 }
  0x1e   :  { %39 = vsyncpa [#allocation11], 0  ;;  %s7093_s27 = smov 0   ;;  %s7095_s28 = smov 0  }
  0x1f   :  { %s7097_s29 = smov 0   ;;  %s7099_s30 = smov 0  }
  0x20 LB: > { %8372 = sst [smem:[#allocation51_spill]] %s6951_s28  ;;  %s6961_s0 = smov [#allocation12]   ;;  %s6959_s30 = sphi %s7099_s30, %s8442_s30   ;;  %s6955_s29 = sphi %s7097_s29, %s8445_s29   ;;  %s6951_s28 = sphi %s7095_s28, %s8444_s28   ;;  %s6947_s27 = sphi %s7093_s27, %s8443_s27  }
  0x21   : > { %8373 = sst [smem:[#allocation52_spill]] %s6955_s29  ;;  %s500_s19 = sshll.u32 %s6961_s0, 4  ;;  %s501_s19 = int_to_ptr.vmem [resolvable:$true] %s500_s19 }
  0x22   : > { %8374 = sst [smem:[#allocation53_spill]] %s6959_s30  ;;  %s7114_s1 = sadd.s32 4294967295, %s6959_s30  }
  0x23   : > { %8375 = sst [smem:[#allocation54_spill]] %s7114_s1  ;;  %p4734_p0 = scmp.ge.s32.totalorder %s6959_s30, 1 }
  0x24   : > { %p8319_p1 = scmp.eq.s32.totalorder %s7114_s1, 0  ;;  %p474_p2 = scmp.lt.s32.totalorder %s6959_s30, 3 }
  0x25   : > { %s6962_s21 = smov [#allocation15]   ;;  %s6963_s23 = smov [#allocation18]  }
  0x26   : > { %p7120_p4 = pnand %p4734_p0, %p474_p2  ;;  %s521_s22 = sshll.u32 %s6962_s21, 4  ;;  %s7132_s22 = int_to_ptr.vmem [resolvable:$true] %s521_s22 }
  0x27   : > { %s546_s24 = sshll.u32 %s6963_s23, 4  ;;  %s8379_s0 = sld [smem:[#allocation60_spill]]  ;;  %s7134_s24 = int_to_ptr.vmem [resolvable:$true] %s546_s24 }
  0x28   : > { %s8376_s20 = scalar_select %p7120_p4, 1, 0 }
  0x29   : > { %p5856_p5 = pneg %p7120_p4 }
  0x2a   : > { %8377 = sst [smem:[#allocation55_spill]] %s8376_s20 }
  0x2b   : > { %p7128_p6 = pnand %p5856_p5, %p8319_p1 }
  0x2d   : > { %s8378_s2 = scalar_select %p7128_p6, 1, 0 }
  0x2e   : > { %s6341_s18 = scalar_lea.hbm %s8379_s0, 16  ;;  %p7144_p8 = pneg %p7128_p6 }
  0x2f   : > { %p6342_p7 = scmp.ne.s32.totalorder %s8379_s0, %s6341_s18  ;;  %p6348_p11 = scmp.lt.u32.totalorder %s6341_s18, %s8379_s0 }
  0x30   : > { %s8380_s21 = scalar_select %p7144_p8, 1, 0 }
  0x31   : > { %p6344_p9 = pnand %p7144_p8, %p6342_p7 }
  0x33   : > { %p6345_p10 = pneg %p6344_p9 }
  0x35   : > { %p6350_p12 = pnand %p6348_p11, %p6345_p10 }
  0x37   : > { %6353 = shalt.err (!%p6350_p12)
}
  0x38   : > { %s6354_s25 = scalar_lea.vmem %s501_s19, 16  ;;  %s6361_s15 = scalar_lea.vmem %s501_s19, 32 }
  0x39   : > { %p6355_p13 = scmp.ne.s32.totalorder %s501_s19, %s6354_s25  ;;  %p6362_p5 = scmp.lt.s32.totalorder %s501_s19, %s501_s19 }
  0x3a   : > { %p6363_p3 = scmp.lt.s32.totalorder %s6361_s15, %s6354_s25 }
  0x3b   : > { %p6357_p0 = pnand %p6355_p13, %p7144_p8 }
  0x3c   : > { %p6364_p1 = por %p6363_p3, %p6362_p5 }
  0x3d   : > { %p6358_p2 = pneg %p6357_p0 }
  0x3f   : > { %p6365_p4 = pnand %p6364_p1, %p6358_p2 }
  0x41   : > { %6368 = shalt.err (!%p6365_p4)
}
  0x42   : > { %5862 = dma.hbm_to_vmem [thread:$0]  (!%p7128_p6), %s8379_s0, 16, %s501_s19, [#allocation13]  }
  0x43   : > { %s8381_s3 = sld [smem:[#allocation62_spill]] }
  0x49   : > { %s6369_s23 = scalar_lea.hbm %s8381_s3, 256 }
  0x4a   : > { %p6370_p7 = scmp.ne.s32.totalorder %s8381_s3, %s6369_s23  ;;  %p6376_p1 = scmp.lt.u32.totalorder %s6369_s23, %s8381_s3 }
  0x4c   : > { %p6372_p9 = pnand %p6370_p7, %p7144_p8 }
  0x4e   : > { %p6373_p3 = pneg %p6372_p9 }
  0x50   : > { %p6378_p4 = pnand %p6376_p1, %p6373_p3 }
  0x52   : > { %6381 = shalt.err (!%p6378_p4)
}
  0x53   : > { %s6382_s19 = scalar_lea.vmem %s7132_s22, 256  ;;  %p6390_p13 = scmp.lt.s32.totalorder %s7132_s22, %s7132_s22 }
  0x54   : > { %p6383_p10 = scmp.ne.s32.totalorder %s7132_s22, %s6382_s19  ;;  %p6391_p0 = scmp.lt.s32.totalorder %s6382_s19, %s6382_s19 }
  0x56   : > { %p6385_p11 = pnand %p6383_p10, %p7144_p8  ;;  %p6392_p2 = por %p6391_p0, %p6390_p13 }
  0x58   : > { %p6386_p12 = pneg %p6385_p11 }
  0x5a   : > { %p6393_p5 = pnand %p6392_p2, %p6386_p12 }
  0x5c   : > { %6396 = shalt.err (!%p6393_p5)
}
  0x5d   : > { %s8324_s10 = smov 128   ;;  %s8326_s17 = smov 8  }
  0x5e   : > { %5868 = dma.hbm_to_vmem [thread:$0]  (!%p7128_p6), %s8381_s3, 256, %s7132_s22, [#allocation16], %s8324_s10, %s8324_s10, %s8326_s17  }
  0x5f   : > { %s8382_s5 = sld [smem:[#allocation64_spill]] }
  0x65   : > { %s6397_s23 = scalar_lea.hbm %s8382_s5, 128 }
  0x66   : > { %p6398_p7 = scmp.ne.s32.totalorder %s8382_s5, %s6397_s23  ;;  %p6404_p1 = scmp.lt.u32.totalorder %s6397_s23, %s8382_s5 }
  0x68   : > { %p6400_p9 = pnand %p6398_p7, %p7144_p8 }
  0x6a   : > { %p6401_p3 = pneg %p6400_p9 }
  0x6c   : > { %p6406_p4 = pnand %p6404_p1, %p6401_p3 }
  0x6e   : > { %6409 = shalt.err (!%p6406_p4)
}
  0x6f   : > { %s6410_s22 = scalar_lea.vmem %s7134_s24, 128  ;;  %p6418_p13 = scmp.lt.s32.totalorder %s7134_s24, %s7134_s24 }
  0x70   : > { %p6411_p10 = scmp.ne.s32.totalorder %s7134_s24, %s6410_s22  ;;  %p6419_p0 = scmp.lt.s32.totalorder %s6410_s22, %s6410_s22 }
  0x72   : > { %p6413_p11 = pnand %p6411_p10, %p7144_p8  ;;  %p6420_p2 = por %p6419_p0, %p6418_p13 }
  0x74   : > { %p6414_p12 = pneg %p6413_p11 }
  0x76   : > { %p6421_p5 = pnand %p6420_p2, %p6414_p12 }
  0x78   : > { %6424 = shalt.err (!%p6421_p5)
}
  0x79   : > { %5874 = dma.hbm_to_vmem [thread:$0]  (!%p7128_p6), %s8382_s5, 128, %s7134_s24, [#allocation19]  }
  0x7a   : > { %s6966_s26 = smov [#allocation21]   ;;  %s8383_s7 = sld [smem:[#allocation65_spill]] }
  0x7b   : > { %s568_s14 = sshll.u32 %s6966_s26, 4  ;;  %s569_s14 = int_to_ptr.vmem [resolvable:$true] %s568_s14 }
  0x80   : > { %s6425_s25 = scalar_lea.hbm %s8383_s7, 16 }
  0x81   : > { %p6426_p7 = scmp.ne.s32.totalorder %s8383_s7, %s6425_s25  ;;  %p6432_p1 = scmp.lt.u32.totalorder %s6425_s25, %s8383_s7 }
  0x83   : > { %p6428_p9 = pnand %p6426_p7, %p7144_p8 }
  0x85   : > { %p6429_p3 = pneg %p6428_p9 }
  0x87   : > { %p6434_p4 = pnand %p6432_p1, %p6429_p3 }
  0x89   : > { %6437 = shalt.err (!%p6434_p4)
}
  0x8a   : > { %s6438_s24 = scalar_lea.vmem %s569_s14, 16  ;;  %s6445_s0 = scalar_lea.vmem %s569_s14, 32 }
  0x8b   : > { %p6439_p10 = scmp.ne.s32.totalorder %s569_s14, %s6438_s24  ;;  %p6446_p13 = scmp.lt.s32.totalorder %s569_s14, %s569_s14 }
  0x8c   : > { %p6447_p0 = scmp.lt.s32.totalorder %s6445_s0, %s6438_s24 }
  0x8d   : > { %p6441_p11 = pnand %p6439_p10, %p7144_p8 }
  0x8e   : > { %p6448_p2 = por %p6447_p0, %p6446_p13 }
  0x8f   : > { %p6442_p12 = pneg %p6441_p11 }
  0x91   : > { %p6449_p5 = pnand %p6448_p2, %p6442_p12 }
  0x93   : > { %6452 = shalt.err (!%p6449_p5)
}
  0x94   : > { %5880 = dma.hbm_to_vmem [thread:$0]  (!%p7128_p6), %s8383_s7, 16, %s569_s14, [#allocation22]  }
  0x95   : > { %s6967_s10 = smov [#allocation24]   ;;  %s6968_s23 = smov [#allocation35]  }
  0x96   : > { %s591_s18 = sshll.u32 %s6967_s10, 4  ;;  %s615_s25 = sshll.u32 %s6968_s23, 4  ;;  %s592_s18 = int_to_ptr.vmem [resolvable:$true] %s591_s18  ;;  %s7227_s25 = int_to_ptr.vmem [resolvable:$true] %s615_s25 }
  0x97   : > { %s8384_s9 = sld [smem:[#allocation66_spill]] }
  0x9d   : > { %s6453_s22 = scalar_lea.hbm %s8384_s9, 8192 }
  0x9e   : > { %p6454_p7 = scmp.ne.s32.totalorder %s8384_s9, %s6453_s22  ;;  %p6460_p1 = scmp.lt.u32.totalorder %s6453_s22, %s8384_s9 }
  0xa0   : > { %p6456_p9 = pnand %p6454_p7, %p7144_p8 }
  0xa2   : > { %p6457_p3 = pneg %p6456_p9 }
  0xa4   : > { %p6462_p4 = pnand %p6460_p1, %p6457_p3 }
  0xa6   : > { %6465 = shalt.err (!%p6462_p4)
}
  0xa7   : > { %s6466_s26 = scalar_lea.vmem %s592_s18, 8192  ;;  %p6474_p13 = scmp.lt.s32.totalorder %s592_s18, %s592_s18 }
  0xa8   : > { %p6467_p10 = scmp.ne.s32.totalorder %s592_s18, %s6466_s26  ;;  %p6475_p0 = scmp.lt.s32.totalorder %s6466_s26, %s6466_s26 }
  0xaa   : > { %p6469_p11 = pnand %p6467_p10, %p7144_p8  ;;  %p6476_p2 = por %p6475_p0, %p6474_p13 }
  0xac   : > { %p6470_p12 = pneg %p6469_p11 }
  0xae   : > { %p6477_p5 = pnand %p6476_p2, %p6470_p12 }
  0xb0   : > { %6480 = shalt.err (!%p6477_p5)
}
  0xb1   : > { %s8328_s10 = smov 64   ;;  %s8330_s23 = smov 4  }
  0xb2   : > { %5886 = dma.hbm_to_vmem [thread:$0]  (!%p7128_p6), %s8384_s9, 8192, %s592_s18, [#allocation25], %s8328_s10, %s8328_s10, %s8330_s23  }
  0xb3   : > { %s8385_s16 = sld [smem:[#allocation72_spill]] }
  0xb9   : > { %s6481_s0 = scalar_lea.hbm %s8385_s16, 2048 }
  0xba   : > { %p6482_p7 = scmp.ne.s32.totalorder %s8385_s16, %s6481_s0  ;;  %p6488_p1 = scmp.lt.u32.totalorder %s6481_s0, %s8385_s16 }
  0xbc   : > { %p6484_p9 = pnand %p6482_p7, %p7144_p8 }
  0xbe   : > { %p6485_p3 = pneg %p6484_p9 }
  0xc0   : > { %p6490_p4 = pnand %p6488_p1, %p6485_p3 }
  0xc2   : > { %6493 = shalt.err (!%p6490_p4)
}
  0xc3   : > { %s6494_s18 = scalar_lea.vmem %s7227_s25, 2048  ;;  %p6502_p13 = scmp.lt.s32.totalorder %s7227_s25, %s7227_s25 }
  0xc4   : > { %p6495_p10 = scmp.ne.s32.totalorder %s7227_s25, %s6494_s18  ;;  %p6503_p0 = scmp.lt.s32.totalorder %s6494_s18, %s6494_s18 }
  0xc6   : > { %p6497_p11 = pnand %p6495_p10, %p7144_p8  ;;  %p6504_p2 = por %p6503_p0, %p6502_p13 }
  0xc8   : > { %p6498_p12 = pneg %p6497_p11 }
  0xca   : > { %p6505_p5 = pnand %p6504_p2, %p6498_p12 }
  0xcc   : > { %6508 = shalt.err (!%p6505_p5)
}
  0xcd   : > { %5892 = dma.hbm_to_vmem [thread:$0]  (!%p7128_p6), %s8385_s16, 2048, %s7227_s25, [#allocation34], %s8328_s10, %s8328_s10, %s8330_s23  }
  0xce   : > { %s7277_s19 = sadd.s32 1, %s6959_s30   ;;  %s283_s22 = sadd.s32 1, %s6955_s29 }
  0xcf   : > { %8386 = sst [smem:[#allocation56_spill]] %s7277_s19  ;;  %s280_s24 = ssub.s32 %s6959_s30, %s7277_s19 }
  0xd0   : > { %p290_p7 = scmp.ne.s32.totalorder %s6955_s29, %s6951_s28  ;;  %p281_p9 = scmp.eq.s32.totalorder %s280_s24, 0 }
  0xd1   : > { %p291_p3 = scmp.eq.s32.totalorder %s6959_s30, 0  ;;  %p296_p1 = scmp.ne.s32.totalorder %s6951_s28, %s6947_s27 }
  0xd2   : > { %p5925_p4 = scmp.lt.s32.totalorder %s6959_s30, 2  ;;  %p8388_p11 = scmp.eq.s32.totalorder %s7114_s1, 0 }
  0xd3   : > { %s7289_s0 = scalar_select %p281_p9, %s6955_s29, %s283_s22  }
  0xd4   : > { %p292_p10 = por %p291_p3, %p290_p7  ;;  %p7293_p12 = por %p8388_p11, %p296_p1 }
  0xd5   : > { %8387 = sst [smem:[#allocation57_spill]] %s7289_s0  ;;  %s7298_s14 = sand.u32 1, %s6959_s30  }
  0xd6   : > { %s8389_s20 = scalar_select %p7293_p12, 1, 0 }
  0xd7   : > { %s7301_s25 = sand.u32 1, %s6955_s29   ;;  %s5788_s18 = smul.u32 7168, %s6959_s30 }
  0xd8   : > { %8390 = sst [smem:[#allocation58_spill]] %s8389_s20  ;;  %s5787_s26 = smul.u32 448, %s7301_s25 }
  0xd9   : > { %p7305_p13 = pnand %p5925_p4, %p292_p10  ;;  %s8392_s11 = sld [smem:[#allocation68_spill]] }
  0xda   : > { %s644_s10 = scalar_lea.vmem [#allocation27], %s5787_s26  ;;  %s8340_s3 = scalar_lea.sflag [#allocation28], %s7298_s14 }
  0xdb   : > { %s8391_s27 = scalar_select %p7305_p13, 1, 0 }
  0xdc   : > { %s651_s23 = sshll.u32 %s644_s10, 4  ;;  %p7322_p2 = pneg %p7305_p13  ;;  %s7315_s23 = int_to_ptr.vmem [resolvable:$true] %s651_s23 }
  0xde   : > { %s8393_s7 = scalar_select %p7322_p2, 1, 0 }
  0xdf   : > { %s7313_s24 = scalar_lea.hbm %s8392_s11, %s5788_s18  ;;  %s6514_s22 = scalar_lea.hbm %s8392_s11, 14336 }
  0xe0   : > { %s6509_s5 = scalar_lea.hbm %s7313_s24, 7168  ;;  %p6515_p9 = scmp.lt.u32.totalorder %s7313_s24, %s8392_s11 }
  0xe1   : > { %p6510_p0 = scmp.ne.s32.totalorder %s7313_s24, %s6509_s5  ;;  %p6516_p3 = scmp.lt.u32.totalorder %s6514_s22, %s6509_s5 }
  0xe2   : > { %p6518_p4 = scmp.lt.u32.totalorder %s6509_s5, %s7313_s24 }
  0xe3   : > { %p6512_p5 = pnand %p7322_p2, %p6510_p0  ;;  %p6517_p1 = por %p6516_p3, %p6515_p9 }
  0xe5   : > { %p6513_p7 = pneg %p6512_p5  ;;  %p6519_p10 = por %p6518_p4, %p6517_p1 }
  0xe7   : > { %p6520_p11 = pnand %p6519_p10, %p6513_p7 }
  0xe9   : > { %6523 = shalt.err (!%p6520_p11)
}
  0xea   : > { %s6524_s17 = scalar_lea.vmem %s7315_s23, 7168  ;;  %s6971_s18 = smov [#allocation27]  }
  0xeb   : > { %p6525_p0 = scmp.ne.s32.totalorder %s7315_s23, %s6524_s17  ;;  %s6529_s15 = sshll.u32 %s6971_s18, 4  ;;  %s6530_s15 = int_to_ptr.vmem [resolvable:$false] %s6529_s15 }
  0xec   : > { %s6531_s26 = scalar_lea.vmem %s6530_s15, 14336  ;;  %p6532_p6 = scmp.lt.s32.totalorder %s7315_s23, %s6530_s15 }
  0xed   : > { %p6527_p5 = pnand %p6525_p0, %p7322_p2  ;;  %p6533_p8 = scmp.lt.s32.totalorder %s6531_s26, %s6524_s17 }
  0xef   : > { %p6528_p12 = pneg %p6527_p5  ;;  %p6534_p9 = por %p6533_p8, %p6532_p6 }
  0xf1   : > { %p6535_p3 = pnand %p6534_p9, %p6528_p12 }
  0xf3   : > { %6538 = shalt.err (!%p6535_p3)
}
  0xf4   : > { %s8394_s5 = smov 4   ;;  %s8395_s22 = smov 64  }
  0xf5   : > { %5899 = dma.hbm_to_vmem [thread:$0]  (!%p7305_p13), %s7313_s24, 7168, %s7315_s23, %s8340_s3, %s8395_s22, %s8395_s22, %s8394_s5  }
  0xf6   : > { %s5166_s10 = sshll.u32 %s6959_s30, 12  ;;  %s8396_s26 = sshll.u32 %s7301_s25, 8 }
  0xf7   : > { %s7354_s15 = scalar_lea.hbm %s8305_s12, %s5166_s10  ;;  %s665_s9 = scalar_lea.vmem [#allocation29], %s8396_s26 }
  0xf8   : > { %s672_s11 = sshll.u32 %s665_s9, 4  ;;  %s8397_s13 = sld [smem:[#allocation69_spill]]  ;;  %s7358_s11 = int_to_ptr.vmem [resolvable:$true] %s672_s11 }
  0xf9   : > { %s8398_s19 = smov %s8396_s26  ;;  %s6972_s17 = smov [#allocation9]  }
  0xfa   : > { %s686_s23 = scalar_lea.vmem [#allocation30], %s8398_s19  ;;  %s7369_s18 = sshll.u32 %s6972_s17, 4  ;;  %s487_s18 = int_to_ptr.vmem [resolvable:$true] %s7369_s18 }
  0xfb   : > { %s693_s24 = sshll.u32 %s686_s23, 4  ;;  %s8345_s9 = scalar_lea.sflag [#allocation31], %s7298_s14  ;;  %s7367_s24 = int_to_ptr.vmem [resolvable:$true] %s693_s24 }
  0xfe   : > { %s7363_s29 = scalar_lea.hbm %s8397_s13, %s5166_s10  ;;  %s6544_s10 = scalar_lea.hbm %s8397_s13, 8192 }
  0xff   : > { %s6539_s26 = scalar_lea.hbm %s7363_s29, 4096  ;;  %p6545_p7 = scmp.lt.u32.totalorder %s7363_s29, %s8397_s13 }
 0x100   : > { %p6540_p6 = scmp.ne.s32.totalorder %s7363_s29, %s6539_s26  ;;  %p6546_p1 = scmp.lt.u32.totalorder %s6544_s10, %s6539_s26 }
 0x101   : > { %p6548_p10 = scmp.lt.u32.totalorder %s6539_s26, %s7363_s29 }
 0x102   : > { %p6542_p8 = pnand %p6540_p6, %p7322_p2  ;;  %p6547_p4 = por %p6546_p1, %p6545_p7 }
 0x104   : > { %p6543_p12 = pneg %p6542_p8  ;;  %p6549_p11 = por %p6548_p10, %p6547_p4 }
 0x106   : > { %p6550_p0 = pnand %p6549_p11, %p6543_p12 }
 0x108   : > { %6553 = shalt.err (!%p6550_p0)
}
 0x109   : > { %s6554_s19 = scalar_lea.vmem %s7367_s24, 4096  ;;  %s6973_s23 = smov [#allocation30]  }
 0x10a   : > { %p6555_p5 = scmp.ne.s32.totalorder %s7367_s24, %s6554_s19  ;;  %s6559_s17 = sshll.u32 %s6973_s23, 4  ;;  %s6560_s17 = int_to_ptr.vmem [resolvable:$false] %s6559_s17 }
 0x10b   : > { %s6561_s3 = scalar_lea.vmem %s6560_s17, 8192  ;;  %p6562_p6 = scmp.lt.s32.totalorder %s7367_s24, %s6560_s17 }
 0x10c   : > { %p6557_p9 = pnand %p6555_p5, %p7322_p2  ;;  %p6563_p8 = scmp.lt.s32.totalorder %s6561_s3, %s6554_s19 }
 0x10e   : > { %p6558_p3 = pneg %p6557_p9  ;;  %p6564_p7 = por %p6563_p8, %p6562_p6 }
 0x110   : > { %p6565_p1 = pnand %p6564_p7, %p6558_p3 }
 0x112   : > { %6568 = shalt.err (!%p6565_p1)
}
 0x113   : > { %5905 = dma.hbm_to_vmem [thread:$0]  (!%p7305_p13), %s7363_s29, 4096, %s7367_s24, %s8345_s9, %s8395_s22, %s8395_s22, %s8394_s5  }
 0x114   : > { %s8399_s16 = sld [smem:[#allocation59_spill]]  ;;  %p8400_p4 = scmp.ne.s32.totalorder %s8380_s21, 0 }
 0x11a   : > { %s6569_s0 = scalar_lea.hbm %s8399_s16, 256 }
 0x11b   : > { %p6570_p12 = scmp.ne.s32.totalorder %s8399_s16, %s6569_s0  ;;  %p6576_p0 = scmp.lt.u32.totalorder %s6569_s0, %s8399_s16 }
 0x11d   : > { %p6572_p10 = pnand %p6570_p12, %p8400_p4 }
 0x11f   : > { %p6573_p11 = pneg %p6572_p10 }
 0x121   : > { %p6578_p5 = pnand %p6576_p0, %p6573_p11 }
 0x123   : > { %6581 = shalt.err (!%p6578_p5)
}
 0x124   : > { %s6582_s3 = scalar_lea.vmem %s487_s18, 256  ;;  %p6590_p8 = scmp.lt.s32.totalorder %s487_s18, %s487_s18 }
 0x125   : > { %p6583_p9 = scmp.ne.s32.totalorder %s487_s18, %s6582_s3  ;;  %p6591_p7 = scmp.lt.s32.totalorder %s6582_s3, %s6582_s3 }
 0x127   : > { %p6585_p3 = pnand %p6583_p9, %p8400_p4  ;;  %p6592_p1 = por %p6591_p7, %p6590_p8 }
 0x129   : > { %p6586_p6 = pneg %p6585_p3 }
 0x12b   : > { %p6593_p13 = pnand %p6592_p1, %p6586_p6 }
 0x12d   : > { %6596 = shalt.err (!%p6593_p13)
}
 0x12e   : > { %p8401_p12 = scmp.ne.s32.totalorder %s8378_s2, 0  ;;  %s8402_s29 = smov 8  }
 0x12f   : > { %s8403_s24 = smov 128   ;;  %s6974_s0 = smov [#allocation14]  }
 0x130   : > { %5859 = dma.hbm_to_vmem [thread:$0]  (!%p8401_p12), %s8399_s16, 256, %s487_s18, [#allocation10], %s8403_s24, %s8403_s24, %s8402_s29  }
 0x131   : > { %s511_s10 = sshll.u32 %s6974_s0, 4  ;;  %s6975_s19 = smov [#allocation17]   ;;  %s512_s10 = int_to_ptr.vmem [resolvable:$true] %s511_s10 }
 0x132   : > { %s535_s23 = sshll.u32 %s6975_s19, 4  ;;  %s8404_s9 = sld [smem:[#allocation61_spill]]  ;;  %s536_s23 = int_to_ptr.vmem [resolvable:$true] %s535_s23 }
 0x138   : > { %s6597_s13 = scalar_lea.hbm %s8404_s9, 64 }
 0x139   : > { %p6598_p13 = scmp.ne.s32.totalorder %s8404_s9, %s6597_s13  ;;  %p6604_p0 = scmp.lt.u32.totalorder %s6597_s13, %s8404_s9 }
 0x13b   : > { %p6600_p10 = pnand %p6598_p13, %p8400_p4 }
 0x13d   : > { %p6601_p11 = pneg %p6600_p10 }
 0x13f   : > { %p6606_p5 = pnand %p6604_p0, %p6601_p11 }
 0x141   : > { %6609 = shalt.err (!%p6606_p5)
}
 0x142   : > { %s6610_s18 = scalar_lea.vmem %s512_s10, 64  ;;  %p6618_p8 = scmp.lt.s32.totalorder %s512_s10, %s512_s10 }
 0x143   : > { %p6611_p9 = scmp.ne.s32.totalorder %s512_s10, %s6610_s18  ;;  %p6619_p7 = scmp.lt.s32.totalorder %s6610_s18, %s6610_s18 }
 0x145   : > { %p6613_p3 = pnand %p6611_p9, %p8400_p4  ;;  %p6620_p1 = por %p6619_p7, %p6618_p8 }
 0x147   : > { %p6614_p6 = pneg %p6613_p3 }
 0x149   : > { %p6621_p2 = pnand %p6620_p1, %p6614_p6 }
 0x14b   : > { %6624 = shalt.err (!%p6621_p2)
}
 0x14c   : > { %5865 = dma.hbm_to_vmem [thread:$0]  (!%p8401_p12), %s8404_s9, 64, %s512_s10, [#allocation13]  }
 0x14d   : > { %s8405_s4 = sld [smem:[#allocation63_spill]] }
 0x153   : > { %s6625_s26 = scalar_lea.hbm %s8405_s4, 16 }
 0x154   : > { %p6626_p13 = scmp.ne.s32.totalorder %s8405_s4, %s6625_s26  ;;  %p6632_p2 = scmp.lt.u32.totalorder %s6625_s26, %s8405_s4 }
 0x156   : > { %p6628_p10 = pnand %p6626_p13, %p8400_p4 }
 0x158   : > { %p6629_p11 = pneg %p6628_p10 }
 0x15a   : > { %p6634_p0 = pnand %p6632_p2, %p6629_p11 }
 0x15c   : > { %6637 = shalt.err (!%p6634_p0)
}
 0x15d   : > { %s6638_s20 = scalar_lea.vmem %s536_s23, 16  ;;  %s6645_s10 = scalar_lea.vmem %s536_s23, 32 }
 0x15e   : > { %p6639_p5 = scmp.ne.s32.totalorder %s536_s23, %s6638_s20  ;;  %p6646_p6 = scmp.lt.s32.totalorder %s536_s23, %s536_s23 }
 0x15f   : > { %p6647_p8 = scmp.lt.s32.totalorder %s6645_s10, %s6638_s20 }
 0x160   : > { %p6641_p9 = pnand %p6639_p5, %p8400_p4 }
 0x161   : > { %p6648_p7 = por %p6647_p8, %p6646_p6 }
 0x162   : > { %p6642_p3 = pneg %p6641_p9 }
 0x164   : > { %p6649_p1 = pnand %p6648_p7, %p6642_p3 }
 0x166   : > { %6652 = shalt.err (!%p6649_p1)
}
 0x167   : > { %5871 = dma.hbm_to_vmem [thread:$0]  (!%p8401_p12), %s8405_s4, 16, %s536_s23, [#allocation16]  }
 0x168   : > { %s6976_s1 = smov [#allocation20]   ;;  %s6977_s30 = smov [#allocation23]  }
 0x169   : > { %s557_s13 = sshll.u32 %s6976_s1, 4  ;;  %s578_s26 = sshll.u32 %s6977_s30, 4  ;;  %s558_s13 = int_to_ptr.vmem [resolvable:$true] %s557_s13  ;;  %s579_s26 = int_to_ptr.vmem [resolvable:$true] %s578_s26 }
 0x16a   : > { %s6653_s17 = scalar_lea.hbm %s8299_s6, 16 }
 0x16b   : > { %p6654_p13 = scmp.ne.s32.totalorder %s8299_s6, %s6653_s17  ;;  %p6660_p2 = scmp.lt.u32.totalorder %s6653_s17, %s8299_s6 }
 0x16d   : > { %p6656_p10 = pnand %p6654_p13, %p8400_p4 }
 0x16f   : > { %p6657_p11 = pneg %p6656_p10 }
 0x171   : > { %p6662_p0 = pnand %p6660_p2, %p6657_p11 }
 0x173   : > { %6665 = shalt.err (!%p6662_p0)
}
 0x174   : > { %s6666_s23 = scalar_lea.vmem %s558_s13, 16  ;;  %s6673_s28 = scalar_lea.vmem %s558_s13, 32 }
 0x175   : > { %p6667_p5 = scmp.ne.s32.totalorder %s558_s13, %s6666_s23  ;;  %p6674_p6 = scmp.lt.s32.totalorder %s558_s13, %s558_s13 }
 0x176   : > { %p6675_p8 = scmp.lt.s32.totalorder %s6673_s28, %s6666_s23 }
 0x177   : > { %p6669_p9 = pnand %p6667_p5, %p8400_p4 }
 0x178   : > { %p6676_p7 = por %p6675_p8, %p6674_p6 }
 0x179   : > { %p6670_p3 = pneg %p6669_p9 }
 0x17b   : > { %p6677_p1 = pnand %p6676_p7, %p6670_p3 }
 0x17d   : > { %6680 = shalt.err (!%p6677_p1)
}
 0x17e   : > { %5877 = dma.hbm_to_vmem [thread:$0]  (!%p8401_p12), %s8299_s6, 16, %s558_s13, [#allocation19]  }
 0x17f   : > { %s6681_s17 = scalar_lea.hbm %s8301_s8, 128 }
 0x180   : > { %p6682_p13 = scmp.ne.s32.totalorder %s8301_s8, %s6681_s17  ;;  %p6688_p2 = scmp.lt.u32.totalorder %s6681_s17, %s8301_s8 }
 0x182   : > { %p6684_p10 = pnand %p6682_p13, %p8400_p4 }
 0x184   : > { %p6685_p11 = pneg %p6684_p10 }
 0x186   : > { %p6690_p0 = pnand %p6688_p2, %p6685_p11 }
 0x188   : > { %6693 = shalt.err (!%p6690_p0)
}
 0x189   : > { %s6694_s23 = scalar_lea.vmem %s579_s26, 128  ;;  %p6702_p6 = scmp.lt.s32.totalorder %s579_s26, %s579_s26 }
 0x18a   : > { %p6695_p5 = scmp.ne.s32.totalorder %s579_s26, %s6694_s23  ;;  %p6703_p8 = scmp.lt.s32.totalorder %s6694_s23, %s6694_s23 }
 0x18c   : > { %p6697_p9 = pnand %p6695_p5, %p8400_p4  ;;  %p6704_p7 = por %p6703_p8, %p6702_p6 }
 0x18e   : > { %p6698_p3 = pneg %p6697_p9 }
 0x190   : > { %p6705_p1 = pnand %p6704_p7, %p6698_p3 }
 0x192   : > { %6708 = shalt.err (!%p6705_p1)
}
 0x193   : > { %5883 = dma.hbm_to_vmem [thread:$0]  (!%p8401_p12), %s8301_s8, 128, %s579_s26, [#allocation22], %s8395_s22, %s8395_s22, %s8394_s5  }
 0x194   : > { %s6978_s1 = smov [#allocation26]   ;;  %s6979_s0 = smov [#allocation36]  }
 0x195   : > { %s605_s30 = sshll.u32 %s6978_s1, 4  ;;  %s629_s19 = sshll.u32 %s6979_s0, 4  ;;  %s606_s30 = int_to_ptr.vmem [resolvable:$true] %s605_s30  ;;  %s630_s19 = int_to_ptr.vmem [resolvable:$true] %s629_s19 }
 0x196   : > { %s8406_s20 = sld [smem:[#allocation67_spill]] }
 0x19c   : > { %s6709_s10 = scalar_lea.hbm %s8406_s20, 128 }
 0x19d   : > { %p6710_p13 = scmp.ne.s32.totalorder %s8406_s20, %s6709_s10  ;;  %p6716_p2 = scmp.lt.u32.totalorder %s6709_s10, %s8406_s20 }
 0x19f   : > { %p6712_p10 = pnand %p6710_p13, %p8400_p4 }
 0x1a1   : > { %p6713_p11 = pneg %p6712_p10 }
 0x1a3   : > { %p6718_p0 = pnand %p6716_p2, %p6713_p11 }
 0x1a5   : > { %6721 = shalt.err (!%p6718_p0)
}
 0x1a6   : > { %s6722_s5 = scalar_lea.vmem %s606_s30, 128  ;;  %p6730_p6 = scmp.lt.s32.totalorder %s606_s30, %s606_s30 }
 0x1a7   : > { %p6723_p5 = scmp.ne.s32.totalorder %s606_s30, %s6722_s5  ;;  %p6731_p8 = scmp.lt.s32.totalorder %s6722_s5, %s6722_s5 }
 0x1a9   : > { %p6725_p9 = pnand %p6723_p5, %p8400_p4  ;;  %p6732_p7 = por %p6731_p8, %p6730_p6 }
 0x1ab   : > { %p6726_p3 = pneg %p6725_p9 }
 0x1ad   : > { %p6733_p1 = pnand %p6732_p7, %p6726_p3 }
 0x1af   : > { %6736 = shalt.err (!%p6733_p1)
}
 0x1b0   : > { %5889 = dma.hbm_to_vmem [thread:$0]  (!%p8401_p12), %s8406_s20, 128, %s606_s30, [#allocation25]  }
 0x1b1   : > { %s4756_s4 = sshll.u32 %s7301_s25, 4  ;;  %s8407_s0 = sld [smem:[#allocation73_spill]] }
 0x1b7   : > { %s6737_s17 = scalar_lea.hbm %s8407_s0, 32 }
 0x1b8   : > { %p6738_p13 = scmp.ne.s32.totalorder %s8407_s0, %s6737_s17  ;;  %p6744_p2 = scmp.lt.u32.totalorder %s6737_s17, %s8407_s0 }
 0x1ba   : > { %p6740_p10 = pnand %p6738_p13, %p8400_p4 }
 0x1bc   : > { %p6741_p11 = pneg %p6740_p10 }
 0x1be   : > { %p6746_p0 = pnand %p6744_p2, %p6741_p11 }
 0x1c0   : > { %6749 = shalt.err (!%p6746_p0)
}
 0x1c1   : > { %s6750_s30 = scalar_lea.vmem %s630_s19, 32  ;;  %p6758_p6 = scmp.lt.s32.totalorder %s630_s19, %s630_s19 }
 0x1c2   : > { %p6751_p5 = scmp.ne.s32.totalorder %s630_s19, %s6750_s30  ;;  %p6759_p8 = scmp.lt.s32.totalorder %s6750_s30, %s6750_s30 }
 0x1c4   : > { %p6753_p9 = pnand %p6751_p5, %p8400_p4  ;;  %p6760_p7 = por %p6759_p8, %p6758_p6 }
 0x1c6   : > { %p6754_p3 = pneg %p6753_p9 }
 0x1c8   : > { %p6761_p1 = pnand %p6760_p7, %p6754_p3 }
 0x1ca   : > { %6764 = shalt.err (!%p6761_p1)
}
 0x1cb   : > { %5895 = dma.hbm_to_vmem [thread:$0]  (!%p8401_p12), %s8407_s0, 32, %s630_s19, [#allocation37]  }
 0x1cc   : > { %s6765_s22 = scalar_lea.hbm %s7354_s15, 4096  ;;  %p8408_p4 = scmp.ne.s32.totalorder %s8393_s7, 0 }
 0x1cd   : > { %p6766_p13 = scmp.ne.s32.totalorder %s7354_s15, %s6765_s22  ;;  %s6770_s28 = scalar_lea.hbm %s8305_s12, 8192 }
 0x1ce   : > { %p6771_p2 = scmp.lt.u32.totalorder %s7354_s15, %s8305_s12  ;;  %p6772_p0 = scmp.lt.u32.totalorder %s6770_s28, %s6765_s22 }
 0x1cf   : > { %p6768_p10 = pnand %p6766_p13, %p8408_p4  ;;  %p6774_p9 = scmp.lt.u32.totalorder %s6765_s22, %s7354_s15 }
 0x1d0   : > { %p6773_p5 = por %p6772_p0, %p6771_p2 }
 0x1d1   : > { %p6769_p11 = pneg %p6768_p10 }
 0x1d2   : > { %p6775_p3 = por %p6774_p9, %p6773_p5 }
 0x1d4   : > { %p6776_p6 = pnand %p6775_p3, %p6769_p11 }
 0x1d6   : > { %6779 = shalt.err (!%p6776_p6)
}
 0x1d7   : > { %s6780_s19 = scalar_lea.vmem %s7358_s11, 4096  ;;  %s6980_s17 = smov [#allocation29]  }
 0x1d8   : > { %p6781_p12 = scmp.ne.s32.totalorder %s7358_s11, %s6780_s19  ;;  %s6785_s3 = sshll.u32 %s6980_s17, 4  ;;  %s6786_s3 = int_to_ptr.vmem [resolvable:$false] %s6785_s3 }
 0x1d9   : > { %s6787_s10 = scalar_lea.vmem %s6786_s3, 8192  ;;  %p6788_p1 = scmp.lt.s32.totalorder %s7358_s11, %s6786_s3 }
 0x1da   : > { %p6783_p8 = pnand %p6781_p12, %p8408_p4  ;;  %p6789_p13 = scmp.lt.s32.totalorder %s6787_s10, %s6780_s19 }
 0x1dc   : > { %p6784_p7 = pneg %p6783_p8  ;;  %p6790_p10 = por %p6789_p13, %p6788_p1 }
 0x1de   : > { %p6791_p2 = pnand %p6790_p10, %p6784_p7 }
 0x1e0   : > { %6794 = shalt.err (!%p6791_p2)
}
 0x1e1   : > { %p8409_p11 = scmp.ne.s32.totalorder %s8391_s27, 0  ;;  %s8410_s18 = scalar_lea.sflag [#allocation28], %s7298_s14 }
 0x1e2   : > { %s8411_s23 = sld [smem:[#allocation53_spill]]  ;;  %s8412_s22 = sld [smem:[#allocation70_spill]] }
 0x1e3   : > { %5902 = dma.hbm_to_vmem [thread:$0]  (!%p8409_p11), %s7354_s15, 4096, %s7358_s11, %s8410_s18, %s8403_s24, %s8403_s24, %s8402_s29  }
 0x1e4   : > { %s707_s26 = scalar_lea.vmem [#allocation32], %s4756_s4 }
 0x1e5   : > { %s714_s28 = sshll.u32 %s707_s26, 4  ;;  %s7566_s28 = int_to_ptr.vmem [resolvable:$true] %s714_s28 }
 0x1e8   : > { %s5168_s30 = sshll.u32 %s8411_s23, 8  ;;  %s6800_s2 = scalar_lea.hbm %s8412_s22, 512 }
 0x1e9   : > { %s7562_s21 = scalar_lea.hbm %s8412_s22, %s5168_s30 }
 0x1ea   : > { %s6795_s1 = scalar_lea.hbm %s7562_s21, 256  ;;  %p6801_p3 = scmp.lt.u32.totalorder %s7562_s21, %s8412_s22 }
 0x1eb   : > { %p6796_p0 = scmp.ne.s32.totalorder %s7562_s21, %s6795_s1  ;;  %p6802_p6 = scmp.lt.u32.totalorder %s6800_s2, %s6795_s1 }
 0x1ec   : > { %p6804_p8 = scmp.lt.u32.totalorder %s6795_s1, %s7562_s21 }
 0x1ed   : > { %p6798_p5 = pnand %p6796_p0, %p8408_p4  ;;  %p6803_p12 = por %p6802_p6, %p6801_p3 }
 0x1ef   : > { %p6799_p9 = pneg %p6798_p5  ;;  %p6805_p7 = por %p6804_p8, %p6803_p12 }
 0x1f1   : > { %p6806_p1 = pnand %p6805_p7, %p6799_p9 }
 0x1f3   : > { %6809 = shalt.err (!%p6806_p1)
}
 0x1f4   : > { %s6810_s4 = scalar_lea.vmem %s7566_s28, 256  ;;  %s6981_s3 = smov [#allocation32]  }
 0x1f5   : > { %p6811_p13 = scmp.ne.s32.totalorder %s7566_s28, %s6810_s4  ;;  %s6815_s10 = sshll.u32 %s6981_s3, 4  ;;  %s6816_s10 = int_to_ptr.vmem [resolvable:$false] %s6815_s10 }
 0x1f6   : > { %s6817_s18 = scalar_lea.vmem %s6816_s10, 512  ;;  %p6818_p0 = scmp.lt.s32.totalorder %s7566_s28, %s6816_s10 }
 0x1f7   : > { %p6813_p10 = pnand %p6811_p13, %p8408_p4  ;;  %p6819_p5 = scmp.lt.s32.totalorder %s6817_s18, %s6810_s4 }
 0x1f9   : > { %p6814_p2 = pneg %p6813_p10  ;;  %p6820_p3 = por %p6819_p5, %p6818_p0 }
 0x1fb   : > { %p6821_p6 = pnand %p6820_p3, %p6814_p2 }
 0x1fd   : > { %6824 = shalt.err (!%p6821_p6)
}
 0x1fe   : > { %s8413_s30 = scalar_lea.sflag [#allocation31], %s7298_s14  ;;  %s4759_s13 = sshll.u32 %s7301_s25, 2 }
 0x1ff   : > { %5908 = dma.hbm_to_vmem [thread:$0]  (!%p8409_p11), %s7562_s21, 256, %s7566_s28, %s8413_s30, %s8403_s24, %s8403_s24, %s8402_s29  }
 0x200   : > { %s5169_s5 = sshll.u32 %s8411_s23, 6  ;;  %s8414_s11 = sld [smem:[#allocation71_spill]] }
 0x201   : > { %s728_s2 = scalar_lea.vmem [#allocation33], %s4759_s13  ;;  %s725_s17 = scalar_lea.sflag [#allocation34], %s7298_s14 }
 0x202   : > { %s736_s19 = sshll.u32 %s728_s2, 4  ;;  %s737_s19 = int_to_ptr.vmem [resolvable:$true] %s736_s19 }
 0x206   : > { %s7599_s15 = scalar_lea.hbm %s8414_s11, %s5169_s5  ;;  %s6830_s24 = scalar_lea.hbm %s8414_s11, 128 }
 0x207   : > { %s6825_s4 = scalar_lea.hbm %s7599_s15, 64  ;;  %p6831_p7 = scmp.lt.u32.totalorder %s7599_s15, %s8414_s11 }
 0x208   : > { %p6826_p9 = scmp.ne.s32.totalorder %s7599_s15, %s6825_s4  ;;  %p6832_p1 = scmp.lt.u32.totalorder %s6830_s24, %s6825_s4 }
 0x209   : > { %p6834_p10 = scmp.lt.u32.totalorder %s6825_s4, %s7599_s15 }
 0x20a   : > { %p6828_p12 = pnand %p6826_p9, %p8408_p4  ;;  %p6833_p13 = por %p6832_p1, %p6831_p7 }
 0x20c   : > { %p6829_p8 = pneg %p6828_p12  ;;  %p6835_p2 = por %p6834_p10, %p6833_p13 }
 0x20e   : > { %p6836_p0 = pnand %p6835_p2, %p6829_p8 }
 0x210   : > { %6839 = shalt.err (!%p6836_p0)
}
 0x211   : > { %s6840_s14 = scalar_lea.vmem %s737_s19, 64  ;;  %s6982_s28 = smov [#allocation33]  }
 0x212   : > { %p6841_p5 = scmp.ne.s32.totalorder %s737_s19, %s6840_s14  ;;  %s6845_s3 = sshll.u32 %s6982_s28, 4  ;;  %s6846_s3 = int_to_ptr.vmem [resolvable:$false] %s6845_s3 }
 0x213   : > { %s6847_s10 = scalar_lea.vmem %s6846_s3, 128  ;;  %p6848_p9 = scmp.lt.s32.totalorder %s737_s19, %s6846_s3 }
 0x214   : > { %p6843_p3 = pnand %p6841_p5, %p8408_p4  ;;  %p6849_p12 = scmp.lt.s32.totalorder %s6847_s10, %s6840_s14 }
 0x216   : > { %p6844_p6 = pneg %p6843_p3  ;;  %p6850_p11 = por %p6849_p12, %p6848_p9 }
 0x218   : > { %p6851_p1 = pnand %p6850_p11, %p6844_p6 }
 0x21a   : > { %6854 = shalt.err (!%p6851_p1)
}
 0x21b   : > { %p8415_p7 = scmp.ne.s32.totalorder %s8391_s27, 0  ;;  %s8416_s18 = sld [smem:[#allocation55_spill]] }
 0x21d   : > { %5911 = dma.hbm_to_vmem [thread:$0]  (!%p8415_p7), %s7599_s15, 64, %s737_s19, %s725_s17  }
 0x221   : > { %p8417_p8 = scmp.ne.s32.totalorder %s8416_s18, 0 }
 0x222   : > { %s8418_s30 = sld [smem:[#allocation54_spill]] (!%p8417_p8) }
 0x223   : > { %745 = sbr.rel (%p8417_p8) target bundleno = 6272 (0x1880), region = 92 }
 0x228   : > { %p8419_p13 = scmp.eq.s32.totalorder (!%p8417_p8), %s8418_s30, 0 }
 0x22a   : > { %6898 = dma.done.wait (%p8419_p13), [#allocation10], 256   ;;  %p8420_p4 = pmov %p8419_p13 }
 0x22c   : > { %6900 = vsyncadd (%p8420_p4), [#allocation10], 4294967040  ;;  %p8421_p10 = pmov %p8420_p4 }
 0x22d   : > { %p8422_p2 = pmov %p8420_p4 }
 0x22e   : > { %6902 = dma.done.wait (%p8421_p10), [#allocation13], 80  }
 0x22f   : > { %6904 = vsyncadd (%p8422_p2), [#allocation13], 4294967216  ;;  %p8423_p11 = pmov %p8422_p2 }
 0x230   : > { %p8424_p0 = pmov %p8422_p2 }
 0x231   : > { %6906 = dma.done.wait (%p8423_p11), [#allocation16], 272  }
 0x232   : > { %6908 = vsyncadd (%p8424_p0), [#allocation16], 4294967024  ;;  %p8425_p5 = pmov %p8424_p0 }
 0x233   : > { %p8426_p3 = pmov %p8424_p0 }
 0x234   : > { %6910 = dma.done.wait (%p8425_p5), [#allocation19], 144  }
 0x235   : > { %6912 = vsyncadd (%p8426_p3), [#allocation19], 4294967152  ;;  %p8427_p6 = pmov %p8424_p0 }
 0x236   : > { %p8428_p9 = pmov %p8424_p0 }
 0x237   : > { %6914 = dma.done.wait (%p8427_p6), [#allocation22], 144  }
 0x238   : > { %6916 = vsyncadd (%p8428_p9), [#allocation22], 4294967152  ;;  %p8429_p12 = pmov %p8424_p0 }
 0x239   : > { %p8430_p1 = pmov %p8424_p0 }
 0x23a   : > { %6918 = dma.done.wait (%p8429_p12), [#allocation25], 8320  }
 0x23b   : > { %6920 = vsyncadd (%p8430_p1), [#allocation25], 4294958976  ;;  %s8431_s7 = sld [smem:[#allocation51_spill]]  ;;  %s8432_s27 = sld [smem:[#allocation58_spill]] }
 0x23c   : > { %s791_s13 = sand.u32 1, %s8418_s30  }
 0x23d   : > { %s792_s1 = scalar_lea.sflag [#allocation28], %s791_s13 }
 0x241   : > { %s793_s5 = sand.u32 1, %s8431_s7   ;;  %p8433_p7 = scmp.ne.s32.totalorder %s8432_s27, 0 }
 0x242   : > { %s5789_s26 = smul.u32 448, %s793_s5 }
 0x244   : > { %s7647_s15 = scalar_lea.vmem [#allocation27], %s5789_s26 }
 0x245   : > { %6922 = dma.done.wait (%p8433_p7), %s792_s1, 11264  }
 0x246   : > { %6924 = vsyncadd (%p8433_p7), %s792_s1, 4294956032  ;;  %s4774_s2 = sshll.u32 %s793_s5, 8  ;;  %s810_s17 = scalar_lea.sflag [#allocation31], %s791_s13 }
 0x247   : > { %s7653_s19 = scalar_lea.vmem [#allocation29], %s4774_s2  ;;  %s7655_s4 = scalar_lea.vmem [#allocation30], %s4774_s2 }
 0x248   : > { %6926 = dma.done.wait (%p8433_p7), %s810_s17, 4352  }
 0x249   : > { %6928 = vsyncadd (%p8433_p7), %s810_s17, 4294962944  ;;  %s4776_s25 = sshll.u32 %s793_s5, 4  ;;  %s4777_s29 = sshll.u32 %s793_s5, 2 }
 0x24a   : > { %s7661_s24 = scalar_lea.vmem [#allocation32], %s4776_s25  ;;  %s828_s23 = scalar_lea.sflag [#allocation34], %s791_s13 }
 0x24b   : > { %s7663_s21 = scalar_lea.vmem [#allocation33], %s4777_s29 }
 0x24c   : > { %6930 = dma.done.wait (%p8433_p7), %s828_s23, 64  }
 0x24d   : > { %6932 = vsyncadd (%p8433_p7), %s828_s23, 4294967232  ;;  %p8434_p8 = pmov %p8424_p0 }
 0x24e   : > { %p8435_p13 = pmov %p8424_p0 }
 0x24f   : > { %6934 = dma.done.wait (%p8434_p8), [#allocation34], 2048  }
 0x250   : > { %6936 = vsyncadd (%p8435_p13), [#allocation34], 4294965248  ;;  %p8436_p4 = pmov %p8424_p0 }
 0x251   : > { %p8437_p10 = pmov %p8424_p0 }
 0x252   : > { %6938 = dma.done.wait (%p8436_p4), [#allocation37], 32  }
 0x253   : > { %6940 = vsyncadd (%p8437_p10), [#allocation37], 4294967264  ;;  %p8438_p2 = scmp.ne.s32.totalorder %s8418_s30, 0 }
 0x254   : > { %v7679_v0 = vld [vmem:[#allocation9] sm:$0xff] (!%p8438_p2)  ;;  %v7681_v1 = vld [vmem:[#allocation9 + $0x8] sm:$0xff] (!%p8438_p2)  ;;  %s6983_s14 = smov (!%p8438_p2), 127   ;;  %s6984_s28 = smov (!%p8438_p2), 126   ;;  %v6985_v4 = vmov (!%p8438_p2), 0   ;;  %v6986_v7 = vmov (!%p8438_p2), 0.0  }
 0x255   : > { %911 = sbr.rel (%p8438_p2) target bundleno = 3077 (0xc05), region = 168  ;;  %v966_v2 = vmul.f32 (!%p8438_p2), %v7679_v0, %v7679_v0  ;;  %v967_v3 = vmul.f32 (!%p8438_p2), %v7681_v1, %v7681_v1  ;;  %6005 = vset.pattern.permute.xlu0 (!%p8438_p2), %v6985_v4  ;;  %6006 = vset.pattern.permute.xlu1 (!%p8438_p2), %v6985_v4  ;;  %v6053_v5 = vld [vmem:[#allocation24] sm:$0xff] (!%p8438_p2)   ;;  %v6054_v6 = vld [vmem:[#allocation24 + $0x8] sm:$0xff] (!%p8438_p2)   ;;  %2399 = vst [vmem:[#allocation38] sm:$0x3] (!%p8438_p2), %v6986_v7  ;;  %v6055_v20 = vld [vmem:[#allocation24 + $0x10] sm:$0xff] (!%p8438_p2)  }
 0x256   : > { %5393 = vmatprep.subr.bf16.mxu1 (!%p8438_p2), %v6986_v7  ;;  %5387 = vmatprep.subr.bf16.mxu0 (!%p8438_p2), %v6986_v7  ;;  %v6056_v25 = vld [vmem:[#allocation24 + $0x18] sm:$0xff] (!%p8438_p2)   ;;  %s6987_s3 = smov (!%p8438_p2), 1   ;;  %v6057_v29 = vld [vmem:[#allocation24 + $0x20] sm:$0xff] (!%p8438_p2)   ;;  %s6988_s10 = smov (!%p8438_p2), 2   ;;  %v6058_v30 = vld [vmem:[#allocation24 + $0x28] sm:$0xff] (!%p8438_p2)   ;;  %v6989_v33 = vmov (!%p8438_p2), 2  }
 0x257   : > { %970 = vrot.lane.b32.xlu0 (!%p8438_p2), %v966_v2, %s6983_s14  ;;  %978 = vrot.lane.b32.xlu1 (!%p8438_p2), %v966_v2, %s6984_s28  ;;  %v6059_v31 = vld [vmem:[#allocation24 + $0x30] sm:$0xff] (!%p8438_p2)   ;;  %v6060_v32 = vld [vmem:[#allocation24 + $0x38] sm:$0xff] (!%p8438_p2)   ;;  %vm6990_vm0 = vmmov (!%p8438_p2), 0   ;;  %v6061_v62 = vld [vmem:[#allocation24 + $0xc0] sm:$0xff] (!%p8438_p2)   ;;  %vm1218_vm10 = vcmask (!%p8438_p2), 130048   ;;  %vm929_vm13 = vcmask (!%p8438_p2), 64512  }
 0x258   : > { %5394 = vmatpush3.bf16.msra.mxu1 (!%p8438_p2), %v6053_v5  ;;  %5409 = vmatprep.mubr.msk.bf16.mxu1 (!%p8438_p2), %vm6990_vm0, %v6986_v7  ;;  %v4788_v34 = vld [vmem:[#allocation12] ss:$0 sm:$0xff] (!%p8438_p2)  ;;  %vm1505_vm14 = vcmask (!%p8438_p2), 1043456  }
 0x259   : > { %5395 = vmatprep.subr.bf16.mxu1 (!%p8438_p2), %v6986_v7  ;;  %5389 = vmatprep.mubr.msk.bf16.mxu0 (!%p8438_p2), %vm6990_vm0, %v6986_v7 }
 0x25b   : > { %972 = vrot.lane.b32.xlu0 (!%p8438_p2), %v967_v3, %s6983_s14  ;;  %980 = vrot.lane.b32.xlu1 (!%p8438_p2), %v967_v3, %s6984_s28 }
 0x25c   : > { %5396 = vmatpush3.bf16.msra.mxu1 %v6054_v6 }
 0x25d   : > { %5397 = vmatprep.subr.bf16.mxu1 %v6986_v7 }
 0x260   : > { %5398 = vmatpush3.bf16.msra.mxu1 %v6055_v20 }
 0x261   : > { %5399 = vmatprep.subr.bf16.mxu1 %v6986_v7 }
 0x264   : > { %5400 = vmatpush3.bf16.msra.mxu1 %v6056_v25 }
 0x265   : > { %5401 = vmatprep.subr.bf16.mxu1 %v6986_v7 }
 0x268   : > { %5402 = vmatpush3.bf16.msra.mxu1 %v6057_v29 }
 0x269   : > { %5403 = vmatprep.subr.bf16.mxu1 %v6986_v7 }
 0x26c   : > { %5404 = vmatpush3.bf16.msra.mxu1 %v6058_v30 }
 0x26d   : > { %5405 = vmatprep.subr.bf16.mxu1 %v6986_v7 }
 0x270   : > { %5406 = vmatpush3.bf16.msra.mxu1 %v6059_v31 }
 0x271   : > { %5407 = vmatprep.subr.bf16.mxu1 %v6986_v7 }
 0x274   : > { %5408 = vmatpush3.bf16.msra.mxu1 %v6060_v32 }
 0x275   : > { %5459 = vmatprep.subr.bf16.mxu1 %v6986_v7 }
 0x2c9   : > { %v971_v8 = vpop.permute.xlu0 %970  ;;  %v979_v9 = vpop.permute.xlu1 %978 }
 0x2ca   : > { %v976_v10 = vadd.f32 %v971_v8, %v966_v2 }
 0x2cc   : > { %v984_v11 = vadd.f32 %v979_v9, %v976_v10  ;;  %v6991_v9 = vmov 1  }
 0x2cd   : > { %v973_v12 = vpop.permute.xlu0 %972  ;;  %v981_v13 = vpop.permute.xlu1 %980 }
 0x2ce   : > { %v986_v14 = vadd.f32 1e-12, %v984_v11  ;;  %v977_v15 = vadd.f32 %v973_v12, %v967_v3  ;;  %v6062_v3 = vld [vmem:[#allocation24 + $0xc8] sm:$0xff]  }
 0x2d0   : > { %6118 = vrsqrt.f32 %v986_v14  ;;  %v985_v16 = vadd.f32 %v981_v13, %v977_v15  ;;  %v6064_v15 = vld [vmem:[#allocation24 + $0xd8] sm:$0xff]  }
 0x2d2   : > { %v987_v17 = vadd.f32 1e-12, %v985_v16 }
 0x2d4   : > { %6120 = vrsqrt.f32 %v987_v17  ;;  %v6066_v17 = vld [vmem:[#allocation24 + $0xe8] sm:$0xff]  }
 0x2da   : > { %v6119_v18 = vpop.eup %6118 }
 0x2db   : > { %v990_v19 = vmul.f32 %v6119_v18, %v984_v11  ;;  %v7699_v21 = vmul.f32 %v6119_v18, %v7679_v0  ;;  %v6063_v11 = vld [vmem:[#allocation24 + $0xd0] sm:$0xff]  }
 0x2dd   : > { %1015 = vperm.xlu0 %6005, %v990_v19   ;;  %v7706_v26 = vmul.f32 1.7320508, %v7699_v21  ;;  %v6068_v19 = vld [vmem:[#allocation24 + $0xf8] sm:$0xff]  }
 0x2de   : > { %v6121_v22 = vpop.eup %6120 }
 0x2df   : > { %v991_v23 = vmul.f32 %v6121_v22, %v985_v16  ;;  %v7703_v24 = vmul.f32 %v6121_v22, %v7681_v1  ;;  %v6065_v16 = vld [vmem:[#allocation24 + $0xe0] sm:$0xff]  }
 0x2e1   : > { %1020 = vperm.xlu1 %6006, %v991_v23   ;;  %998 = vrot.lane.b32.xlu0 %v6121_v22, %s6987_s3  ;;  %v7709_v27 = vmul.f32 1.7320508, %v7703_v24  ;;  %v1047_v23 = vmul.f32 3.8729835, %v7699_v21 }
 0x2e2   : > { %6018 = vset.pattern.permute.xlu0 %v6989_v33 }
 0x2e3   : > { %v6007_v28 = vpack.i.bf16 %v7709_v27, %v7706_v26 }
 0x2e5   : > { %996 = vrot.lane.b32.xlu1 %v6119_v18, %s6987_s3  ;;  %1006 = vrot.lane.b32.xlu0 %v6121_v22, %s6988_s10  ;;  %v1048_v22 = vmul.f32 3.8729835, %v7703_v24 }
 0x2e9   : > { %1004 = vrot.lane.b32.xlu1 %v6119_v18, %s6988_s10  ;;  %v6067_v18 = vld [vmem:[#allocation24 + $0xf0] sm:$0xff]  }
 0x35c   : > { %v1016_v35 = vpop.permute.xlu0 %1015 }
 0x35d   : > { %v1029_v36 = vsub.f32 %v1016_v35, %v4788_v34 }
 0x35f   : > { %v1031_v37 = vmul.f32 -327.68, %v1029_v36 }
 0x360   : > { %v1021_v38 = vpop.permute.xlu1 %1020  ;;  %v999_v39 = vpop.permute.xlu0 %998 }
 0x361   : > { %v1033_v40 = vmul.f32 %v1031_v37, %v1029_v36  ;;  %v1030_v41 = vsub.f32 %v1021_v38, %v4788_v34  ;;  %v7724_v42 = vmul.f32 %v999_v39, %v7681_v1  ;;  %v1088_v36 = vmul.f32 %v7703_v24, %v7703_v24  ;;  %v912_v24 = vld [vmem:[#allocation15] sm:$0xff] }
 0x362   : > { %v1087_v39 = vmul.f32 %v7699_v21, %v7699_v21  ;;  %v913_v21 = vld [vmem:[#allocation15 + $0x8] sm:$0xff] }
 0x363   : > { %v1032_v43 = vmul.f32 -327.68, %v1030_v41  ;;  %1053 = vrot.lane.b32.xlu0 %v7724_v42, %s6983_s14  ;;  %v1035_v44 = vmul.f32 1.442695, %v1033_v40  ;;  %v1090_v53 = vmul.f32 %v7724_v42, %v7724_v42  ;;  %v1042_v6 = vmul.f32 1.7320508, %v7724_v42 }
 0x364   : > { %v997_v45 = vpop.permute.xlu1 %996  ;;  %v1007_v46 = vpop.permute.xlu0 %1006  ;;  %v1060_v30 = vmul.f32 3.8729835, %v7724_v42 }
 0x365   : > { %v1034_v47 = vmul.f32 %v1032_v43, %v1030_v41  ;;  %v7729_v48 = vmul.f32 %v997_v45, %v7679_v0  ;;  %v1011_v49 = vmul.f32 %v1007_v46, %v7681_v1  ;;  %6122 = vpow2.f32 %v1035_v44 }
 0x367   : > { %v1037_v50 = vmul.f32 1.442695, %v1034_v47  ;;  %1051 = vrot.lane.b32.xlu1 %v7729_v48, %s6983_s14  ;;  %1065 = vrot.lane.b32.xlu0 %v1011_v49, %s6983_s14  ;;  %v1089_v54 = vmul.f32 %v7729_v48, %v7729_v48  ;;  %v1044_v56 = vmul.f32 1.7320508, %v1011_v49  ;;  %v1072_v59 = vmul.f32 3.0, %v1011_v49 }
 0x368   : > { %v1005_v51 = vpop.permute.xlu1 %1004  ;;  %v1041_v2 = vmul.f32 1.7320508, %v7729_v48  ;;  %v1059_v31 = vmul.f32 3.8729835, %v7729_v48 }
 0x369   : > { %6124 = vpow2.f32 %v1037_v50  ;;  %v1010_v52 = vmul.f32 %v1005_v51, %v7679_v0  ;;  %v1074_v1 = vmul.f32 %v1072_v59, %v1011_v49  ;;  %v6069_v50 = vld [vmem:[#allocation23] sm:$0xff]   ;;  %v914_v51 = vlaneseq }
 0x36a   : > { %v6013_v10 = vpack.i.bf16 %v1042_v6, %v1041_v2  ;;  %5388 = vmatpush3.bf16.msra.mxu0 %v6069_v50 }
 0x36b   : > { %1063 = vrot.lane.b32.xlu1 %v1010_v52, %s6983_s14  ;;  %1095 = vrot.lane.b32.xlu0 %v1090_v53, %s6983_s14  ;;  %v1043_v55 = vmul.f32 1.7320508, %v1010_v52  ;;  %v1071_v57 = vmul.f32 3.0, %v1010_v52  ;;  %v4790_v8 = vadd.f32 -1.0, %v1074_v1  ;;  %v7780_v1 = vand.u32 127, %v914_v51 }
 0x36c   : > { %5413 = vmatprep.subr.bf16.mxu0 %v6986_v7 }
 0x36d   : > { %v6019_v58 = vpack.i.bf16 %v1044_v56, %v1043_v55  ;;  %v1073_v63 = vmul.f32 %v1071_v57, %v1010_v52  ;;  %v1078_v13 = vmul.f32 1.118034, %v4790_v8  ;;  %vm1103_vm1 = vcmp.eq.s32.totalorder %v7780_v1, 0 }
 0x36e   : > { %vm1105_vm2 = vcmp.eq.s32.totalorder %v7780_v1, 1  ;;  %vm1118_vm3 = vcmp.eq.s32.totalorder %v7780_v1, 2  ;;  %vm1131_vm4 = vcmp.eq.s32.totalorder %v7780_v1, 3  ;;  %vm1144_vm5 = vcmp.eq.s32.totalorder %v7780_v1, 4 }
 0x36f   : > { %1093 = vrot.lane.b32.xlu1 %v1089_v54, %s6983_s14  ;;  %1081 = vrot.lane.b32.xlu0 %v1011_v49, %s6984_s28  ;;  %v6123_v60 = vpop.eup %6122  ;;  %v4789_v5 = vadd.f32 -1.0, %v1073_v63  ;;  %v7777_v54 = vld [vmem:[#allocation26] sm:$0xff]  ;;  %vm1157_vm6 = vcmp.eq.s32.totalorder %v7780_v1, 5  ;;  %vm1170_vm7 = vcmp.eq.s32.totalorder %v7780_v1, 6  ;;  %vm1183_vm8 = vcmp.eq.s32.totalorder %v7780_v1, 7 }
 0x370   : > { %vm1196_vm9 = vcmp.eq.s32.totalorder %v7780_v1, 8 }
 0x371   : > { %v1077_v12 = vmul.f32 1.118034, %v4789_v5 }
 0x373   : > { %v6125_v61 = vpop.eup %6124  ;;  %1079 = vrot.lane.b32.xlu1 %v1010_v52, %s6984_s28  ;;  %6020 = vperm.xlu0 %6018, %v6019_v58   ;;  %v6025_v14 = vpack.i.bf16 %v1078_v13, %v1077_v12  ;;  %v7774_v52 = vshrl.u32 %v914_v51, 7  ;;  %v1104_v12 = vsel %vm1103_vm1, 1.0, %v6986_v7  ;;  %vm942_vm1 = vcmask 125952  }
 0x374   : > { %v1039_v0 = vpack.c.bf16 %v6125_v61, %v6123_v60 }
 0x375   : > { %v1299_v53 = vsub.s32 0, %v7774_v52 }
 0x376   : > { %1040 = vst [vmem:[#allocation4] sm:$0xff] %v1039_v0  ;;  %5410 = vmatmul.mubr.bf16.vlgmr.msra.gmra.mrb[0].mxu1 %v1039_v0 }
 0x377   : > { %5460 = vmatpush3.bf16.msra.mxu1 %v6061_v62  ;;  %6008 = vperm.xlu1 %6006, %v6007_v28  }
 0x378   : > { %5461 = vmatprep.subr.bf16.mxu1 %v6986_v7  ;;  %5475 = vmatprep.mubr.msk.bf16.mxu1 %vm6990_vm0, %v6986_v7 }
 0x379   : > { %6036 = vset.pattern.permute.xlu0 %v6991_v9 }
 0x37b   : > { %5462 = vmatpush3.bf16.msra.mxu1 %v6062_v3  ;;  %6012 = vset.pattern.permute.xlu1 %v6991_v9 }
 0x37c   : > { %6014 = vperm.xlu1 %6012, %v6013_v10   ;;  %5463 = vmatprep.subr.bf16.mxu1 %v6986_v7 }
 0x37f   : > { %5464 = vmatpush3.bf16.msra.mxu1 %v6063_v11 }
 0x380   : > { %6024 = vset.pattern.permute.xlu1 %v6989_v33  ;;  %5465 = vmatprep.subr.bf16.mxu1 %v6986_v7 }
 0x381   : > { %6026 = vperm.xlu1 %6024, %v6025_v14  }
 0x383   : > { %5466 = vmatpush3.bf16.msra.mxu1 %v6064_v15 }
 0x384   : > { %5467 = vmatprep.subr.bf16.mxu1 %v6986_v7 }
 0x385   : > { %6030 = vset.pattern.permute.xlu1 %v6985_v4 }
 0x387   : > { %5468 = vmatpush3.bf16.msra.mxu1 %v6065_v16 }
 0x388   : > { %5469 = vmatprep.subr.bf16.mxu1 %v6986_v7 }
 0x38b   : > { %5470 = vmatpush3.bf16.msra.mxu1 %v6066_v17 }
 0x38c   : > { %5471 = vmatprep.subr.bf16.mxu1 %v6986_v7 }
 0x38f   : > { %5472 = vmatpush3.bf16.msra.mxu1 %v6067_v18 }
 0x390   : > { %5473 = vmatprep.subr.bf16.mxu1 %v6986_v7 }
 0x393   : > { %5474 = vmatpush3.bf16.msra.mxu1 %v6068_v19  ;;  %v1693_v19 = vsub.s32 2, %v7774_v52 }
 0x394   : > { %5499 = vmatprep.subr.bf16.mxu1 %v6986_v7 }
 0x396   : > { %5476 = vmatmul.mubr.bf16.vlgmr.msra.gmra.mrb[4].mxu1 %v1039_v0 }
 0x397   : > { %5501 = vmatprep.mubr.msk.bf16.mxu1 %vm6990_vm0, %v6986_v7 }
 0x3d5   : > { %v1054_v20 = vpop.permute.xlu0 %1053 }
 0x3d6   : > { %v1058_v27 = vmul.f32 %v1054_v20, %v1048_v22 }
 0x3d9   : > { %v1052_v25 = vpop.permute.xlu1 %1051  ;;  %v1066_v26 = vpop.permute.xlu0 %1065 }
 0x3da   : > { %v1057_v28 = vmul.f32 %v1052_v25, %v1047_v23  ;;  %v1070_v34 = vmul.f32 %v1066_v26, %v1060_v30 }
 0x3dc   : > { %v6031_v29 = vpack.i.bf16 %v1058_v27, %v1057_v28 }
 0x3dd   : > { %v1064_v32 = vpop.permute.xlu1 %1063  ;;  %v1096_v33 = vpop.permute.xlu0 %1095 }
 0x3de   : > { %v1069_v35 = vmul.f32 %v1064_v32, %v1059_v31  ;;  %6032 = vperm.xlu1 %6030, %v6031_v29   ;;  %v1100_v38 = vsub.f32 %v1088_v36, %v1096_v33  ;;  %v1694_v33 = vrot.slane %v7777_v54, %v1693_v19  ;;  %v6076_v19 = vld [vmem:[#allocation24 + $0x70] sm:$0xff]  }
 0x3e0   : > { %v6037_v37 = vpack.i.bf16 %v1070_v34, %v1069_v35  ;;  %v1102_v42 = vmul.f32 1.9364917, %v1100_v38 }
 0x3e1   : > { %v1094_v40 = vpop.permute.xlu1 %1093  ;;  %v1082_v43 = vpop.permute.xlu0 %1081 }
 0x3e2   : > { %v1099_v41 = vsub.f32 %v1087_v39, %v1094_v40  ;;  %6038 = vperm.xlu0 %6036, %v6037_v37   ;;  %v1086_v47 = vmul.f32 %v1082_v43, %v1048_v22 }
 0x3e4   : > { %v1101_v44 = vmul.f32 1.9364917, %v1099_v41 }
 0x3e5   : > { %v1080_v45 = vpop.permute.xlu1 %1079 }
 0x3e6   : > { %v6048_v46 = vpack.i.bf16 %v1102_v42, %v1101_v44  ;;  %v1085_v48 = vmul.f32 %v1080_v45, %v1047_v23  ;;  %6047 = vset.pattern.permute.xlu0 %v6985_v4  ;;  %v1300_v4 = vrot.slane %v7777_v54, %v1299_v53 }
 0x3e8   : > { %v6042_v49 = vpack.i.bf16 %v1086_v47, %v1085_v48  ;;  %6049 = vperm.xlu0 %6047, %v6048_v46  }
 0x3ea   : > { %6043 = vperm.xlu1 %6030, %v6042_v49  }
 0x3ee   : > { %917 = vperm.xlu1 %6030, %v912_v24  }
 0x3f2   : > { %920 = vperm.xlu1 %6030, %v913_v21   ;;  %v6021_v11 = vpop.permute.xlu0 %6020 }
 0x3f3   : > { %v6023_v16 = vunpack.i.h.bf16 %v6021_v11  ;;  %v6022_v17 = vunpack.i.l.bf16 %v6021_v11 }
 0x3f6   : > { %v6009_v63 = vpop.permute.xlu1 %6008 }
 0x3f7   : > { %v6011_v26 = vunpack.i.h.bf16 %v6009_v63  ;;  %v6010_v27 = vunpack.i.l.bf16 %v6009_v63  ;;  %v6070_v63 = vld [vmem:[#allocation24 + $0x40] sm:$0xff]  }
 0x3fb   : > { %v6015_v0 = vpop.permute.xlu1 %6014 }
 0x3fc   : > { %v6017_v8 = vunpack.i.h.bf16 %v6015_v0  ;;  %v6016_v9 = vunpack.i.l.bf16 %v6015_v0 }
 0x3fe   : > { %v1116_v13 = vsel %vm1105_vm2, %v6016_v9, %v1104_v12  ;;  %v1117_v14 = vsel %vm1105_vm2, %v6017_v8, %v1104_v12 }
 0x3ff   : > { %v1129_v20 = vsel %vm1118_vm3, %v6022_v17, %v1116_v13  ;;  %v1130_v22 = vsel %vm1118_vm3, %v6023_v16, %v1117_v14  ;;  %v6073_v13 = vld [vmem:[#allocation24 + $0x58] sm:$0xff]   ;;  %v6074_v16 = vld [vmem:[#allocation24 + $0x60] sm:$0xff]   ;;  %v6075_v17 = vld [vmem:[#allocation24 + $0x68] sm:$0xff]   ;;  %vm952_vm3 = vcmask 60416  }
 0x400   : > { %v6027_v10 = vpop.permute.xlu1 %6026  ;;  %v1142_v31 = vsel %vm1131_vm4, %v6010_v27, %v1129_v20  ;;  %v1143_v32 = vsel %vm1131_vm4, %v6011_v26, %v1130_v22  ;;  %v1501_v27 = vld [vmem:[#allocation14] sm:$0xf] }
 0x401   : > { %v6029_v43 = vunpack.i.h.bf16 %v6027_v10  ;;  %v6028_v42 = vunpack.i.l.bf16 %v6027_v10  ;;  %v6072_v10 = vld [vmem:[#allocation24 + $0x50] sm:$0xff]  }
 0x449   : > { %v1383_v55 = vpop.f32.mrb[0].mxu1 }
 0x44a   : > { %v1384_v56 = vadd.f32 %v1383_v55, %v1300_v4  ;;  %v5411_v57 = vpop.f32.mrb[1].mxu1 }
 0x44b   : > { %v1386_v58 = vpop.f32.mrb[2].mxu1 }
 0x44c   : > { %v4801_v59 = vmul.f32 -1.442695, %v1384_v56  ;;  %v1387_v60 = vadd.f32 %v1386_v58, %v1300_v4  ;;  %v5412_v61 = vpop.f32.mrb[3].mxu1 }
 0x44e   : > { %6126 = vpow2.f32 %v4801_v59  ;;  %v4802_v62 = vmul.f32 -1.442695, %v1387_v60 }
 0x450   : > { %6128 = vpow2.f32 %v4802_v62 }
 0x458   : > { %v6127_v2 = vpop.eup %6126 }
 0x459   : > { %v1396_v3 = vadd.f32 1.0, %v6127_v2 }
 0x45a   : > { %v6129_v5 = vpop.eup %6128 }
 0x45b   : > { %6130 = vrcp.f32 %v1396_v3  ;;  %v1397_v6 = vadd.f32 1.0, %v6129_v5  ;;  %v6071_v5 = vld [vmem:[#allocation24 + $0x48] sm:$0xff]  }
 0x45d   : > { %6132 = vrcp.f32 %v1397_v6  ;;  %v6033_v15 = vpop.permute.xlu1 %6032 }
 0x45e   : > { %v6035_v23 = vunpack.i.h.bf16 %v6033_v15  ;;  %v6034_v25 = vunpack.i.l.bf16 %v6033_v15 }
 0x460   : > { %v1155_v35 = vsel %vm1144_vm5, %v6034_v25, %v1142_v31  ;;  %v1156_v36 = vsel %vm1144_vm5, %v6035_v23, %v1143_v32  ;;  %v6077_v25 = vld [vmem:[#allocation24 + $0x78] sm:$0xff]   ;;  %v6079_v31 = vld [vmem:[#allocation24 + $0x88] sm:$0xff]   ;;  %v6080_v32 = vld [vmem:[#allocation24 + $0x90] sm:$0xff]  }
 0x461   : > { %v6039_v18 = vpop.permute.xlu0 %6038 }
 0x462   : > { %v6041_v28 = vunpack.i.h.bf16 %v6039_v18  ;;  %v6040_v29 = vunpack.i.l.bf16 %v6039_v18 }
 0x464   : > { %v1168_v39 = vsel %vm1157_vm6, %v6040_v29, %v1155_v35  ;;  %v1169_v40 = vsel %vm1157_vm6, %v6041_v28, %v1156_v36  ;;  %v1507_v28 = vsel %vm1505_vm14, %v1501_v27, 0  ;;  %v6083_v35 = vld [vmem:[#allocation24 + $0xa8] sm:$0xff]   ;;  %v6084_v36 = vld [vmem:[#allocation24 + $0xb0] sm:$0xff]  }
 0x465   : > { %v6131_v30 = vpop.eup %6130  ;;  %v1181_v51 = vsel %vm1170_vm7, %v6028_v42, %v1168_v39  ;;  %v1182_v53 = vsel %vm1170_vm7, %v6029_v43, %v1169_v40  ;;  %v1407_v43 = vsub.s32 1, %v7774_v52 }
 0x466   : > { %v7796_v37 = vmul.f32 %v6131_v30, %v1384_v56  ;;  %v6078_v30 = vld [vmem:[#allocation24 + $0x80] sm:$0xff]  }
 0x467   : > { %v6133_v34 = vpop.eup %6132  ;;  %v6050_v41 = vpop.permute.xlu0 %6049  ;;  %v1408_v42 = vrot.slane %v7777_v54, %v1407_v43  ;;  %v6095_v43 = vld [vmem:[#allocation24 + $0x180] sm:$0xff]  }
 0x468   : > { %v7798_v38 = vmul.f32 %v6133_v34, %v1387_v60  ;;  %v6052_v50 = vunpack.i.h.bf16 %v6050_v41  ;;  %v6051_v21 = vunpack.i.l.bf16 %v6050_v41  ;;  %v6082_v34 = vld [vmem:[#allocation24 + $0xa0] sm:$0xff]  }
 0x469   : > { %v1777_v44 = vpop.f32.mrb[4].mxu1  ;;  %v6044_v45 = vpop.permute.xlu1 %6043 }
 0x46a   : > { %v1404_v46 = vpack.c.bf16 %v7798_v38, %v7796_v37  ;;  %v1778_v47 = vadd.f32 %v1777_v44, %v1694_v33  ;;  %v5477_v48 = vpop.f32.mrb[5].mxu1  ;;  %v6046_v49 = vunpack.i.h.bf16 %v6044_v45  ;;  %v6045_v24 = vunpack.i.l.bf16 %v6044_v45  ;;  %v6085_v37 = vld [vmem:[#allocation24 + $0xb8] sm:$0xff]  }
 0x46b   : > { %v1780_v4 = vpop.f32.mrb[6].mxu1 }
 0x46c   : > { %v4828_v55 = vmul.f32 -1.442695, %v1778_v47  ;;  %v1194_v56 = vsel %vm1183_vm8, %v6045_v24, %v1181_v51  ;;  %v1195_v57 = vsel %vm1183_vm8, %v6046_v49, %v1182_v53  ;;  %v1781_v58 = vadd.f32 %v1780_v4, %v1694_v33  ;;  %v5478_v59 = vpop.f32.mrb[7].mxu1  ;;  %v6081_v33 = vld [vmem:[#allocation24 + $0x98] sm:$0xff]   ;;  %v6086_v4 = vld [vmem:[#allocation24 + $0x100] sm:$0xff]  }
 0x46d   : > { %v918_v60 = vpop.permute.xlu1 %917  ;;  %v1207_v61 = vsel %vm1196_vm9, %v6051_v21, %v1194_v56  ;;  %v1208_v62 = vsel %vm1196_vm9, %v6052_v50, %v1195_v57  ;;  %v6087_v57 = vld [vmem:[#allocation24 + $0x108] sm:$0xff]   ;;  %v6089_v59 = vld [vmem:[#allocation24 + $0x118] sm:$0xff]  }
 0x46e   : > { %6134 = vpow2.f32 %v4828_v55  ;;  %v4829_v0 = vmul.f32 -1.442695, %v1781_v58  ;;  %v1209_v2 = vpack.c.bf16 %v1208_v62, %v1207_v61  ;;  %vm922_vm11 = vcmp.eq.s32.totalorder %v7780_v1, %v918_v60  ;;  %v6090_v60 = vld [vmem:[#allocation24 + $0x120] sm:$0xff]   ;;  %v6091_v61 = vld [vmem:[#allocation24 + $0x128] sm:$0xff]   ;;  %v6092_v62 = vld [vmem:[#allocation24 + $0x130] sm:$0xff]  }
 0x46f   : > { %v4781_v6 = vsel %vm922_vm11, 1.0, %v6986_v7 }
 0x470   : > { %6136 = vpow2.f32 %v4829_v0  ;;  %5390 = vmatmul.mubr.msk.bf16.vlgmr.msra.gmra.mrb[0].mxu0 %vm1218_vm10, %v1209_v2  ;;  %v4783_v0 = vld [vmem:[#allocation17] ss:$0 sm:$0xff] }
 0x471   : > { %5414 = vmatpush3.bf16.msra.mxu0 %v6070_v63  ;;  %v921_v3 = vpop.permute.xlu1 %920  ;;  %5429 = vmatprep.mubr.msk.bf16.mxu0 %vm6990_vm0, %v6986_v7  ;;  %v6093_v63 = vld [vmem:[#allocation24 + $0x138] sm:$0xff]   ;;  %vm938_vm15 = vcmp.eq.s32.totalorder %v7774_v52, %v4783_v0 }
 0x472   : > { %vm923_vm12 = vcmp.eq.s32.totalorder %v7780_v1, %v921_v3  ;;  %5415 = vmatprep.subr.bf16.mxu0 %v6986_v7  ;;  %v4784_v2 = vsel %vm938_vm15, 1.0, %v6986_v7  ;;  %v6100_v0 = vld [vmem:[#allocation24 + $0x158] sm:$0xff]  }
 0x473   : > { %v4782_v8 = vsel %vm923_vm12, 1.0, %v6986_v7  ;;  %v941_v3 = vpack.c.bf16 %v4784_v2, %v4784_v2  ;;  %v6102_v2 = vld [vmem:[#allocation24 + $0x160] sm:$0xff]  }
 0x474   : > { %v928_v9 = vpack.c.bf16 %v4782_v8, %v4781_v6 }
 0x475   : > { %5416 = vmatpush3.bf16.msra.mxu0 %v6071_v5  ;;  %943 = vst.msk [vmem:[#allocation6] sm:$0xf] %vm942_vm1, %v941_v3  ;;  %v6104_v3 = vld [vmem:[#allocation24 + $0x168] sm:$0xff]  }
 0x476   : > { %930 = vst.msk [vmem:[#allocation5] sm:$0xff] %vm929_vm13, %v928_v9  ;;  %5417 = vmatprep.subr.bf16.mxu0 %v6986_v7 }
 0x478   : > { %v6135_v11 = vpop.eup %6134 }
 0x479   : > { %v1790_v12 = vadd.f32 1.0, %v6135_v11  ;;  %5418 = vmatpush3.bf16.msra.mxu0 %v6072_v10  ;;  %v1801_v10 = vsub.s32 3, %v7774_v52 }
 0x47a   : > { %v6137_v14 = vpop.eup %6136  ;;  %5419 = vmatprep.subr.bf16.mxu0 %v6986_v7 }
 0x47b   : > { %6138 = vrcp.f32 %v1790_v12  ;;  %v1791_v15 = vadd.f32 1.0, %v6137_v14  ;;  %v1802_v11 = vrot.slane %v7777_v54, %v1801_v10 }
 0x47d   : > { %6140 = vrcp.f32 %v1791_v15  ;;  %5420 = vmatpush3.bf16.msra.mxu0 %v6073_v13  ;;  %v1500_v29 = vld [vmem:[#allocation5] sm:$0xff] }
 0x47e   : > { %5421 = vmatprep.subr.bf16.mxu0 %v6986_v7 }
 0x481   : > { %5422 = vmatpush3.bf16.msra.mxu0 %v6074_v16 }
 0x482   : > { %5423 = vmatprep.subr.bf16.mxu0 %v6986_v7 }
 0x485   : > { %v6139_v18 = vpop.eup %6138  ;;  %5424 = vmatpush3.bf16.msra.mxu0 %v6075_v17 }
 0x486   : > { %5425 = vmatprep.subr.bf16.mxu0 %v6986_v7  ;;  %v7826_v22 = vmul.f32 %v6139_v18, %v1778_v47 }
 0x487   : > { %v6141_v20 = vpop.eup %6140 }
 0x488   : > { %v7828_v23 = vmul.f32 %v6141_v20, %v1781_v58  ;;  %v6088_v58 = vld [vmem:[#allocation24 + $0x110] sm:$0xff]  }
 0x489   : > { %5426 = vmatpush3.bf16.msra.mxu0 %v6076_v19 }
 0x48a   : > { %v1798_v26 = vpack.c.bf16 %v7828_v23, %v7826_v22  ;;  %5427 = vmatprep.subr.bf16.mxu0 %v6986_v7 }
 0x48d   : > { %5428 = vmatpush3.bf16.msra.mxu0 %v6077_v25  ;;  %v1896_v25 = vld [vmem:[#allocation6] sm:$0xf] }
 0x48e   : > { %5433 = vmatprep.subr.bf16.mxu0 %v6986_v7 }
 0x490   : > { %5430 = vmatmul.mubr.bf16.vlgmr.msra.gmra.mrb[4].mxu0 %v1404_v46 }
 0x491   : > { %5434 = vmatpush3.bf16.msra.mxu0 %v1507_v28  ;;  %5435 = vmatprep.mubr.msk.bf16.mxu0 %vm6990_vm0, %v6986_v7 }
 0x492   : > { %5439 = vmatprep.subr.bf16.mxu0 %v6986_v7 }
 0x498   : > { %5436 = vmatmul.mubr.msk.bf16.vlgmr.msra.gmra.mrb[8].mxu0 %vm929_vm13, %v1500_v29 }
 0x499   : > { %5455 = vmatprep.mubr.msk.bf16.mxu0 %vm6990_vm0, %v6986_v7  ;;  %5440 = vmatpush3.bf16.msra.mxu0 %v6078_v30 }
 0x49a   : > { %5441 = vmatprep.subr.bf16.mxu0 %v6986_v7 }
 0x49d   : > { %5442 = vmatpush3.bf16.msra.mxu0 %v6079_v31  ;;  %v944_v31 = vld [vmem:[#allocation18] sm:$0xff] }
 0x49e   : > { %5443 = vmatprep.subr.bf16.mxu0 %v6986_v7 }
 0x4a1   : > { %5444 = vmatpush3.bf16.msra.mxu0 %v6080_v32  ;;  %v4786_v32 = vld [vmem:[#allocation20] ss:$0 sm:$0xff] }
 0x4a2   : > { %5445 = vmatprep.subr.bf16.mxu0 %v6986_v7  ;;  %vm959_vm2 = vcmp.eq.s32.totalorder %v7774_v52, %v4786_v32 }
 0x4a5   : > { %5446 = vmatpush3.bf16.msra.mxu0 %v6081_v33  ;;  %v4787_v33 = vsel %vm959_vm2, 1.0, %v6986_v7 }
 0x4a6   : > { %5447 = vmatprep.subr.bf16.mxu0 %v6986_v7 }
 0x4a9   : > { %5448 = vmatpush3.bf16.msra.mxu0 %v6082_v34  ;;  %v962_v34 = vpack.c.bf16 %v4787_v33, %v4787_v33 }
 0x4aa   : > { %5449 = vmatprep.subr.bf16.mxu0 %v6986_v7 }
 0x4ab   : > { %963 = vst.msk [vmem:[#allocation8] sm:$0xf] %vm952_vm3, %v962_v34 }
 0x4ad   : > { %5450 = vmatpush3.bf16.msra.mxu0 %v6083_v35 }
 0x4ae   : > { %5451 = vmatprep.subr.bf16.mxu0 %v6986_v7 }
 0x4b1   : > { %5452 = vmatpush3.bf16.msra.mxu0 %v6084_v36 }
 0x4b2   : > { %5453 = vmatprep.subr.bf16.mxu0 %v6986_v7 }
 0x4b5   : > { %5454 = vmatpush3.bf16.msra.mxu0 %v6085_v37 }
 0x4b6   : > { %5479 = vmatprep.subr.bf16.mxu0 %v6986_v7 }
 0x543   : > { %v1256_v38 = vpop.f32.mrb[0].mxu0 }
 0x544   : > { %v5391_v39 = vpop.f32.mrb[1].mxu0 }
 0x545   : > { %v1259_v40 = vpop.f32.mrb[2].mxu0 }
 0x546   : > { %v5392_v41 = vpop.f32.mrb[3].mxu0 }
 0x563   : > { %v1491_v44 = vpop.f32.mrb[4].mxu0 }
 0x564   : > { %v1492_v45 = vadd.f32 %v1491_v44, %v1408_v42  ;;  %v5431_v46 = vpop.f32.mrb[5].mxu0  ;;  %v6099_v44 = vld [vmem:[#allocation24 + $0x190] sm:$0xff]  }
 0x565   : > { %v1494_v47 = vpop.f32.mrb[6].mxu0  ;;  %v6105_v46 = vld [vmem:[#allocation24 + $0x1a8] sm:$0xff]  }
 0x566   : > { %v1498_v48 = vmul.f32 %v1492_v45, %v1256_v38  ;;  %v1495_v49 = vadd.f32 %v1494_v47, %v1408_v42  ;;  %v5432_v24 = vpop.f32.mrb[7].mxu0  ;;  %v6097_v42 = vld [vmem:[#allocation24 + $0x188] sm:$0xff]   ;;  %v6101_v45 = vld [vmem:[#allocation24 + $0x198] sm:$0xff]   ;;  %v6107_v47 = vld [vmem:[#allocation24 + $0x1b0] sm:$0xff]  }
 0x568   : > { %v1499_v50 = vmul.f32 %v1495_v49, %v1259_v40 }
 0x56b   : > { %v1543_v21 = vpop.f32.mrb[8].mxu0 }
 0x56c   : > { %v5437_v51 = vpop.f32.mrb[9].mxu0 }
 0x56d   : > { %v1546_v53 = vpop.f32.mrb[10].mxu0 }
 0x56e   : > { %v1550_v55 = vpack.c.bf16 %v1546_v53, %v1543_v21  ;;  %v5438_v56 = vpop.f32.mrb[11].mxu0  ;;  %v1962_v21 = vsub.s32 7, %v7774_v52 }
 0x570   : > { %5456 = vmatmul.mubr.bf16.vlgmr.msra.gmra.mrb[12].mxu0 %v1550_v55  ;;  %v1963_v55 = vrot.slane %v7777_v54, %v1962_v21 }
 0x571   : > { %5480 = vmatpush3.bf16.msra.mxu0 %v6086_v4  ;;  %5495 = vmatprep.mubr.msk.bf16.mxu0 %vm6990_vm0, %v6986_v7 }
 0x572   : > { %5481 = vmatprep.subr.bf16.mxu0 %v6986_v7 }
 0x575   : > { %5482 = vmatpush3.bf16.msra.mxu0 %v6087_v57 }
 0x576   : > { %5483 = vmatprep.subr.bf16.mxu0 %v6986_v7 }
 0x579   : > { %5484 = vmatpush3.bf16.msra.mxu0 %v6088_v58 }
 0x57a   : > { %5485 = vmatprep.subr.bf16.mxu0 %v6986_v7 }
 0x57d   : > { %5486 = vmatpush3.bf16.msra.mxu0 %v6089_v59 }
 0x57e   : > { %5487 = vmatprep.subr.bf16.mxu0 %v6986_v7 }
 0x581   : > { %5488 = vmatpush3.bf16.msra.mxu0 %v6090_v60  ;;  %v6094_v60 = vld [vmem:[#allocation24 + $0x140] sm:$0xff]  }
 0x582   : > { %5489 = vmatprep.subr.bf16.mxu0 %v6986_v7 }
 0x585   : > { %5490 = vmatpush3.bf16.msra.mxu0 %v6091_v61 }
 0x586   : > { %5491 = vmatprep.subr.bf16.mxu0 %v6986_v7 }
 0x589   : > { %5492 = vmatpush3.bf16.msra.mxu0 %v6092_v62  ;;  %v6096_v62 = vld [vmem:[#allocation24 + $0x148] sm:$0xff]  }
 0x58a   : > { %5493 = vmatprep.subr.bf16.mxu0 %v6986_v7 }
 0x58d   : > { %5494 = vmatpush3.bf16.msra.mxu0 %v6093_v63  ;;  %v6098_v63 = vld [vmem:[#allocation24 + $0x150] sm:$0xff]  }
 0x58e   : > { %5531 = vmatprep.subr.bf16.mxu0 %v6986_v7 }
 0x590   : > { %5496 = vmatmul.mubr.bf16.vlgmr.msra.gmra.mrb[16].mxu0 %v1798_v26 }
 0x591   : > { %5547 = vmatprep.mubr.msk.bf16.mxu0 %vm6990_vm0, %v6986_v7  ;;  %5532 = vmatpush3.bf16.msra.mxu0 %v6095_v43 }
 0x592   : > { %5533 = vmatprep.subr.bf16.mxu0 %v6986_v7 }
 0x595   : > { %5534 = vmatpush3.bf16.msra.mxu0 %v6097_v42 }
 0x596   : > { %5535 = vmatprep.subr.bf16.mxu0 %v6986_v7 }
 0x599   : > { %5536 = vmatpush3.bf16.msra.mxu0 %v6099_v44 }
 0x59a   : > { %5537 = vmatprep.subr.bf16.mxu0 %v6986_v7 }
 0x59d   : > { %5538 = vmatpush3.bf16.msra.mxu0 %v6101_v45 }
 0x59e   : > { %5539 = vmatprep.subr.bf16.mxu0 %v6986_v7 }
 0x643   : > { %v1650_v5 = vpop.f32.mrb[12].mxu0 }
 0x644   : > { %v5457_v6 = vpop.f32.mrb[13].mxu0 }
 0x645   : > { %v1653_v8 = vpop.f32.mrb[14].mxu0  ;;  %v6108_v6 = vld [vmem:[#allocation24 + $0x178] sm:$0xff]  }
 0x646   : > { %v5458_v9 = vpop.f32.mrb[15].mxu0 }
 0x663   : > { %v1885_v12 = vpop.f32.mrb[16].mxu0 }
 0x664   : > { %v1886_v13 = vadd.f32 %v1885_v12, %v1802_v11  ;;  %v5497_v14 = vpop.f32.mrb[17].mxu0 }
 0x665   : > { %v1888_v15 = vpop.f32.mrb[18].mxu0  ;;  %v6110_v14 = vld [vmem:[#allocation24 + $0x1c0] sm:$0xff]  }
 0x666   : > { %v1892_v16 = vmul.f32 %v1886_v13, %v1650_v5  ;;  %v1889_v17 = vadd.f32 %v1888_v15, %v1802_v11  ;;  %v5498_v18 = vpop.f32.mrb[19].mxu0  ;;  %v6106_v5 = vld [vmem:[#allocation24 + $0x170] sm:$0xff]   ;;  %v6111_v15 = vld [vmem:[#allocation24 + $0x1c8] sm:$0xff]  }
 0x667   : > { %v6114_v18 = vld [vmem:[#allocation24 + $0x1e0] sm:$0xff]  }
 0x668   : > { %v1894_v19 = vadd.f32 %v1892_v16, %v1498_v48  ;;  %v1893_v20 = vmul.f32 %v1889_v17, %v1653_v8  ;;  %v6109_v8 = vld [vmem:[#allocation24 + $0x1b8] sm:$0xff]   ;;  %v6112_v16 = vld [vmem:[#allocation24 + $0x1d0] sm:$0xff]  }
 0x669   : > { %v6113_v17 = vld [vmem:[#allocation24 + $0x1d8] sm:$0xff]  }
 0x66a   : > { %v1895_v22 = vadd.f32 %v1893_v20, %v1499_v50  ;;  %v1957_v50 = vsub.s32 6, %v7774_v52  ;;  %v6116_v20 = vld [vmem:[#allocation24 + $0x1f0] sm:$0xff]  }
 0x66c   : > { %v1897_v23 = vpack.c.bf16 %v1895_v22, %v1894_v19  ;;  %v1958_v51 = vrot.slane %v7777_v54, %v1957_v50  ;;  %v6115_v19 = vld [vmem:[#allocation24 + $0x1e8] sm:$0xff]   ;;  %v6117_v22 = vld [vmem:[#allocation24 + $0x1f8] sm:$0xff]  }
 0x66e   : > { %5500 = vmatpush3.bf16.msra.mxu1 %v1897_v23  ;;  %v2155_v23 = vsub.s32 4, %v7774_v52 }
 0x66f   : > { %5505 = vmatprep.subr.bf16.mxu1 %v6986_v7 }
 0x671   : > { %5502 = vmatmul.mubr.msk.bf16.vlgmr.msra.gmra.mrb[8].mxu1 %vm1218_vm10, %v1896_v25  ;;  %v2156_v25 = vrot.slane %v7777_v54, %v2155_v23 }
 0x672   : > { %5507 = vmatprep.mubr.msk.bf16.mxu1 %vm6990_vm0, %v6986_v7 }
 0x744   : > { %v1935_v26 = vpop.f32.mrb[8].mxu1 }
 0x745   : > { %v1941_v27 = vmul.f32 0.70710677, %v1935_v26  ;;  %v5503_v28 = vpop.f32.mrb[9].mxu1 }
 0x746   : > { %v1938_v29 = vpop.f32.mrb[10].mxu1 }
 0x747   : > { %1942 = vst [vmem:[#allocation3] sm:$0xff] %v1941_v27  ;;  %1943 = vadd.xlane.f32.xlu0 %v1941_v27  ;;  %v5504_v30 = vpop.f32.mrb[11].mxu1 }
 0x75d   : > { %946 = vperm.xlu0 %6047, %v944_v31  }
 0x7d4   : > { %v1944_v35 = vpop.xlane.xlu0 %1943 }
 0x7d5   : > { %v1946_v36 = vmul.f32 0.0078125, %v1944_v35 }
 0x7d7   : > { %v1947_v37 = vsub.f32 %v1941_v27, %v1946_v36 }
 0x7d9   : > { %v1948_v38 = vmul.f32 %v1947_v37, %v1947_v37 }
 0x7db   : > { %1949 = vadd.xlane.f32.xlu1 %v1948_v38 }
 0x7dc   : > { %v947_v39 = vpop.permute.xlu0 %946 }
 0x7dd   : > { %vm948_vm4 = vcmp.eq.s32.totalorder %v7780_v1, %v947_v39  ;;  %v6103_v1 = vld [vmem:[#allocation24 + $0x1a0] sm:$0xff]  }
 0x7de   : > { %v4785_v40 = vsel %vm948_vm4, 1.0, %v6986_v7  ;;  %5540 = vmatpush3.bf16.msra.mxu0 %v6103_v1 }
 0x7df   : > { %v951_v41 = vpack.c.bf16 %v4785_v40, %v4785_v40  ;;  %5541 = vmatprep.subr.bf16.mxu0 %v6986_v7  ;;  %v2255_v40 = vsub.s32 5, %v7774_v52 }
 0x7e1   : > { %953 = vst.msk [vmem:[#allocation7] sm:$0xf] %vm952_vm3, %v951_v41  ;;  %v2256_v41 = vrot.slane %v7777_v54, %v2255_v40 }
 0x7e2   : > { %5542 = vmatpush3.bf16.msra.mxu0 %v6105_v46 }
 0x7e3   : > { %5543 = vmatprep.subr.bf16.mxu0 %v6986_v7 }
 0x7e6   : > { %5544 = vmatpush3.bf16.msra.mxu0 %v6107_v47 }
 0x7e7   : > { %5545 = vmatprep.subr.bf16.mxu0 %v6986_v7 }
 0x7e8   : > { %v1965_v61 = vld [vmem:[#allocation7] sm:$0xf] }
 0x7ea   : > { %5546 = vmatpush3.bf16.msra.mxu0 %v6109_v8 }
 0x7eb   : > { %5571 = vmatprep.subr.bf16.mxu0 %v6986_v7 }
 0x868   : > { %v1950_v48 = vpop.xlane.xlu1 %1949 }
 0x869   : > { %v1951_v49 = vmul.f32 0.0078125, %v1950_v48 }
 0x86b   : > { %v1952_v24 = vadd.f32 1e-05, %v1951_v49  ;;  %v2348_v49 = vld [vmem:[#allocation8] sm:$0xf] }
 0x86d   : > { %6142 = vrsqrt.f32 %v1952_v24  ;;  %v2346_v24 = vld [vmem:[#allocation14] sm:$0xf] }
 0x86e   : > { %v2347_v50 = vunpack.c.l.bf16 %v2346_v24 }
 0x877   : > { %v6143_v53 = vpop.eup %6142 }
 0x878   : > { %v1954_v4 = vmul.f32 %v6143_v53, %v1947_v37 }
 0x87a   : > { %v1959_v56 = vmul.f32 %v1958_v51, %v1954_v4 }
 0x87c   : > { %v1964_v57 = vadd.f32 %v1963_v55, %v1959_v56 }
 0x87e   : > { %v1966_v58 = vpack.c.bf16 %v1964_v57, %v1964_v57 }
 0x880   : > { %v1971_v59 = vsel %vm1505_vm14, %v1966_v58, 0 }
 0x881   : > { %5506 = vmatpush3.bf16.msra.mxu1 %v1971_v59 }
 0x882   : > { %5511 = vmatprep.subr.bf16.mxu1 %v6986_v7 }
 0x884   : > { %5508 = vmatmul.mubr.msk.bf16.vlgmr.msra.gmra.mrb[12].mxu1 %vm929_vm13, %v1965_v61 }
 0x885   : > { %5512 = vmatpush3.bf16.msra.mxu1 %v6094_v60  ;;  %5527 = vmatprep.mubr.msk.bf16.mxu1 %vm6990_vm0, %v6986_v7 }
 0x886   : > { %5513 = vmatprep.subr.bf16.mxu1 %v6986_v7 }
 0x889   : > { %5514 = vmatpush3.bf16.msra.mxu1 %v6096_v62 }
 0x88a   : > { %5515 = vmatprep.subr.bf16.mxu1 %v6986_v7 }
 0x88d   : > { %5516 = vmatpush3.bf16.msra.mxu1 %v6098_v63 }
 0x88e   : > { %5517 = vmatprep.subr.bf16.mxu1 %v6986_v7 }
 0x891   : > { %5518 = vmatpush3.bf16.msra.mxu1 %v6100_v0 }
 0x892   : > { %5519 = vmatprep.subr.bf16.mxu1 %v6986_v7 }
 0x895   : > { %5520 = vmatpush3.bf16.msra.mxu1 %v6102_v2 }
 0x896   : > { %5521 = vmatprep.subr.bf16.mxu1 %v6986_v7 }
 0x899   : > { %5522 = vmatpush3.bf16.msra.mxu1 %v6104_v3 }
 0x89a   : > { %5523 = vmatprep.subr.bf16.mxu1 %v6986_v7 }
 0x89d   : > { %5524 = vmatpush3.bf16.msra.mxu1 %v6106_v5 }
 0x89e   : > { %5525 = vmatprep.subr.bf16.mxu1 %v6986_v7 }
 0x8a1   : > { %5526 = vmatpush3.bf16.msra.mxu1 %v6108_v6 }
 0x8a2   : > { %5551 = vmatprep.subr.bf16.mxu1 %v6986_v7 }
 0x957   : > { %v2007_v9 = vpop.f32.mrb[12].mxu1 }
 0x958   : > { %v2013_v10 = vpack.c.bf16 %v2007_v9, %v2007_v9  ;;  %v5509_v11 = vpop.f32.mrb[13].mxu1 }
 0x959   : > { %v2010_v12 = vpop.f32.mrb[14].mxu1 }
 0x95a   : > { %v5510_v13 = vpop.f32.mrb[15].mxu1  ;;  %5528 = vmatmul.mubr.bf16.vlgmr.msra.gmra.mrb[16].mxu1 %v2013_v10  ;;  %5548 = vmatmul.mubr.bf16.vlgmr.msra.gmra.mrb[20].mxu0 %v2013_v10 }
 0x95b   : > { %5567 = vmatprep.mubr.msk.bf16.mxu1 %vm6990_vm0, %v6986_v7  ;;  %5573 = vmatprep.mubr.msk.bf16.mxu0 %vm6990_vm0, %v6986_v7 }
 0x95c   : > { %5552 = vmatpush3.bf16.msra.mxu1 %v6110_v14 }
 0x95d   : > { %5553 = vmatprep.subr.bf16.mxu1 %v6986_v7 }
 0x960   : > { %5554 = vmatpush3.bf16.msra.mxu1 %v6111_v15 }
 0x961   : > { %5555 = vmatprep.subr.bf16.mxu1 %v6986_v7 }
 0x964   : > { %5556 = vmatpush3.bf16.msra.mxu1 %v6112_v16 }
 0x965   : > { %5557 = vmatprep.subr.bf16.mxu1 %v6986_v7 }
 0x968   : > { %5558 = vmatpush3.bf16.msra.mxu1 %v6113_v17 }
 0x969   : > { %5559 = vmatprep.subr.bf16.mxu1 %v6986_v7 }
 0x96c   : > { %5560 = vmatpush3.bf16.msra.mxu1 %v6114_v18 }
 0x96d   : > { %5561 = vmatprep.subr.bf16.mxu1 %v6986_v7 }
 0x970   : > { %5562 = vmatpush3.bf16.msra.mxu1 %v6115_v19 }
 0x971   : > { %5563 = vmatprep.subr.bf16.mxu1 %v6986_v7 }
 0x974   : > { %5564 = vmatpush3.bf16.msra.mxu1 %v6116_v20 }
 0x975   : > { %5565 = vmatprep.subr.bf16.mxu1 %v6986_v7 }
 0x978   : > { %5566 = vmatpush3.bf16.msra.mxu1 %v6117_v22 }
 0xa2d   : > { %v2113_v26 = vpop.f32.mrb[16].mxu1  ;;  %v2239_v27 = vpop.f32.mrb[20].mxu0 }
 0xa2e   : > { %v2240_v28 = vadd.f32 %v2239_v27, %v2156_v25  ;;  %v5529_v29 = vpop.f32.mrb[17].mxu1  ;;  %v5549_v30 = vpop.f32.mrb[21].mxu0 }
 0xa2f   : > { %v2116_v31 = vpop.f32.mrb[18].mxu1  ;;  %v2242_v32 = vpop.f32.mrb[22].mxu0 }
 0xa30   : > { %v4856_v33 = vmul.f32 -1.442695, %v2240_v28  ;;  %v5530_v34 = vpop.f32.mrb[19].mxu1  ;;  %v5550_v35 = vpop.f32.mrb[23].mxu0 }
 0xa32   : > { %6144 = vpow2.f32 %v4856_v33 }
 0xa3c   : > { %v6145_v36 = vpop.eup %6144 }
 0xa3d   : > { %v2248_v37 = vadd.f32 1.0, %v6145_v36 }
 0xa3f   : > { %6146 = vrcp.f32 %v2248_v37 }
 0xa49   : > { %v6147_v7 = vpop.eup %6146 }
 0xa4a   : > { %v2251_v38 = vmul.f32 %v6147_v7, %v2240_v28 }
 0xa4c   : > { %v2252_v39 = vpack.c.bf16 %v2251_v38, %v2251_v38 }
 0xa4e   : > { %5568 = vmatmul.mubr.bf16.vlgmr.msra.gmra.mrb[20].mxu1 %v2252_v39 }
 0xb21   : > { %v2339_v43 = vpop.f32.mrb[20].mxu1 }
 0xb22   : > { %v2340_v42 = vadd.f32 %v2339_v43, %v2256_v41  ;;  %v5569_v44 = vpop.f32.mrb[21].mxu1 }
 0xb23   : > { %v2342_v45 = vpop.f32.mrb[22].mxu1 }
 0xb24   : > { %v2345_v1 = vmul.f32 %v2340_v42, %v2113_v26  ;;  %v5570_v46 = vpop.f32.mrb[23].mxu1 }
 0xb26   : > { %v2349_v47 = vpack.c.bf16 %v2345_v1, %v2345_v1 }
 0xb28   : > { %v2354_v48 = vsel %vm1505_vm14, %v2349_v47, 0 }
 0xb29   : > { %5572 = vmatpush3.bf16.msra.mxu0 %v2354_v48 }
 0xb2c   : > { %5574 = vmatmul.mubr.msk.bf16.vlgmr.msra.gmra.mrb[24].mxu0 %vm929_vm13, %v2348_v49 }
 0xbff   : > { %v2390_v21 = vpop.f32.mrb[24].mxu0 }
 0xc00   : > { %v2396_v51 = vmul.f32 0.70710677, %v2390_v21  ;;  %v5575_v52 = vpop.f32.mrb[25].mxu0 }
 0xc01   : > { %v2393_v53 = vpop.f32.mrb[26].mxu0 }
 0xc02   : > { %v2397_v54 = vadd.f32 %v2396_v51, %v2347_v50  ;;  %v5576_v4 = vpop.f32.mrb[27].mxu0 }
 0xc04   : > { %2398 = vst [vmem:[#allocation2] sm:$0xff] %v2397_v54 }
 0xc05 PF: > { %v2401_v55 = vld [vmem:[#allocation3] sm:$0xff]  ;;  %v6992_v60 = vmov 0.0   ;;  %vm6993_vm0 = vmmov 0   ;;  %v6148_v61 = vld [vmem:[%s7647_s15] sm:$0xff]   ;;  %v6150_v62 = vld [vmem:[%s7647_s15 + $0x8] sm:$0xff]   ;;  %v2418_v9 = vlaneseq  ;;  %vm2455_vm5 = vcmask 1043456  }
 0xc06   : > { %2428 = vadd.xlane.f32.xlu0 %v2401_v55  ;;  %5577 = vmatprep.subr.bf16.mxu0 %v6992_v60  ;;  %v6152_v63 = vld [vmem:[%s7647_s15 + $0x10] sm:$0xff]   ;;  %v6154_v0 = vld [vmem:[%s7647_s15 + $0x18] sm:$0xff]   ;;  %v6156_v2 = vld [vmem:[%s7647_s15 + $0x20] sm:$0xff]   ;;  %vm2451_vm6 = vcmask 64512   ;;  %vm3276_vm7 = vcmask 130048   ;;  %s8439_s18 = sld [smem:[#allocation54_spill]] }
 0xc07   : > { %5583 = vmatprep.subr.bf16.mxu1 %v6992_v60  ;;  %5579 = vmatprep.mubr.msk.bf16.mxu0 %vm6993_vm0, %v6992_v60  ;;  %v6158_v3 = vld [vmem:[%s7647_s15 + $0x28] sm:$0xff]   ;;  %v6160_v5 = vld [vmem:[%s7647_s15 + $0x30] sm:$0xff]   ;;  %v7943_v11 = vshrl.u32 %v2418_v9, 7  ;;  %v6149_v26 = vld [vmem:[%s7647_s15 + $0x40] sm:$0xff]  }
 0xc08   : > { %5599 = vmatprep.mubr.msk.bf16.mxu1 %vm6993_vm0, %v6992_v60  ;;  %5584 = vmatpush3.bf16.msra.mxu1 %v6148_v61  ;;  %v7949_v13 = vld [vmem:[%s7661_s24] sm:$0xff]  ;;  %v6151_v27 = vld [vmem:[%s7647_s15 + $0x48] sm:$0xff]   ;;  %v6155_v29 = vld [vmem:[%s7647_s15 + $0x58] sm:$0xff]  }
 0xc09   : > { %5585 = vmatprep.subr.bf16.mxu1 %v6992_v60  ;;  %v7946_v12 = vsub.s32 2, %v7943_v11  ;;  %v7952_v14 = vsub.s32 3, %v7943_v11  ;;  %v2449_v25 = vld [vmem:[#allocation7] sm:$0xf]  ;;  %v6157_v30 = vld [vmem:[%s7647_s15 + $0x60] sm:$0xff]   ;;  %v6159_v31 = vld [vmem:[%s7647_s15 + $0x68] sm:$0xff]  }
 0xc0a   : > { %v6153_v28 = vld [vmem:[%s7647_s15 + $0x50] sm:$0xff]   ;;  %v6162_v33 = vld [vmem:[%s7647_s15 + $0x38] sm:$0xff]   ;;  %v6164_v44 = vld [vmem:[%s7647_s15 + $0x80] sm:$0xff]   ;;  %v8010_v50 = vsub.s32 0, %v7943_v11 }
 0xc0b   : > { %v2442_v15 = vrot.slane %v7949_v13, %v7946_v12  ;;  %v2447_v18 = vrot.slane %v7949_v13, %v7952_v14  ;;  %v6161_v32 = vld [vmem:[%s7647_s15 + $0x70] sm:$0xff]   ;;  %v6163_v34 = vld [vmem:[%s7647_s15 + $0x78] sm:$0xff]   ;;  %v6165_v45 = vld [vmem:[%s7647_s15 + $0x88] sm:$0xff]  }
 0xc0c   : > { %5586 = vmatpush3.bf16.msra.mxu1 %v6150_v62  ;;  %v7979_v35 = vld [vmem:[#allocation2] sm:$0xff]  ;;  %v6167_v46 = vld [vmem:[%s7647_s15 + $0x98] sm:$0xff]   ;;  %v6168_v47 = vld [vmem:[%s7647_s15 + $0xa0] sm:$0xff]   ;;  %p4055_p11 = scmp.eq.s32.totalorder %s8439_s18, 1  ;;  %p5141_p0 = scmp.ne.s32.totalorder %s8439_s18, 1 }
 0xc0d   : > { %5587 = vmatprep.subr.bf16.mxu1 %v6992_v60  ;;  %2406 = vadd.xlane.f32.xlu1 %v7979_v35  ;;  %v6166_v1 = vld [vmem:[%s7647_s15 + $0x90] sm:$0xff]   ;;  %v6169_v48 = vld [vmem:[%s7647_s15 + $0xa8] sm:$0xff]   ;;  %v6171_v24 = vld [vmem:[%s7647_s15 + $0xb8] sm:$0xff]   ;;  %vm6996_vm8 = vmmov (!%p5141_p0), 0  }
 0xc0e   : > { %v6170_v49 = vld [vmem:[%s7647_s15 + $0xb0] sm:$0xff]   ;;  %v8013_v21 = vld [vmem:[%s7661_s24 + $0x8] sm:$0x3f]  ;;  %s4056_s30 = scalar_select %p4055_p11, 1, 0 }
 0xc0f   : > { %v2641_v51 = vrot.slane %v8013_v21, %v8010_v50  ;;  %v6175_v9 = vld [vmem:[%s7647_s15 + $0x118] sm:$0xff]  }
 0xc10   : > { %5588 = vmatpush3.bf16.msra.mxu1 %v6152_v63  ;;  %s4057_s7 = scvt.s32.f32 %s4056_s30 }
 0xc11   : > { %5589 = vmatprep.subr.bf16.mxu1 %v6992_v60 }
 0xc12   : > { %s4166_s27 = ssub.f32 1.0, %s4057_s7 }
 0xc14   : > { %5590 = vmatpush3.bf16.msra.mxu1 %v6154_v0 }
 0xc15   : > { %5591 = vmatprep.subr.bf16.mxu1 %v6992_v60 }
 0xc18   : > { %5592 = vmatpush3.bf16.msra.mxu1 %v6156_v2 }
 0xc19   : > { %5593 = vmatprep.subr.bf16.mxu1 %v6992_v60 }
 0xc1c   : > { %5594 = vmatpush3.bf16.msra.mxu1 %v6158_v3  ;;  %v6172_v3 = vld [vmem:[%s7647_s15 + $0x100] sm:$0xff]  }
 0xc1d   : > { %5595 = vmatprep.subr.bf16.mxu1 %v6992_v60 }
 0xc20   : > { %5596 = vmatpush3.bf16.msra.mxu1 %v6160_v5 }
 0xc21   : > { %5597 = vmatprep.subr.bf16.mxu1 %v6992_v60 }
 0xc24   : > { %5598 = vmatpush3.bf16.msra.mxu1 %v6162_v33 }
 0xc25   : > { %5623 = vmatprep.subr.bf16.mxu1 %v6992_v60 }
 0xc93   : > { %v2429_v56 = vpop.xlane.xlu0 %2428 }
 0xc94   : > { %v2430_v57 = vmul.f32 0.0078125, %v2429_v56 }
 0xc96   : > { %v2431_v58 = vsub.f32 %v2401_v55, %v2430_v57 }
 0xc98   : > { %v2432_v59 = vmul.f32 %v2431_v58, %v2431_v58 }
 0xc9a   : > { %2433 = vadd.xlane.f32.xlu0 %v2432_v59  ;;  %v2407_v40 = vpop.xlane.xlu1 %2406 }
 0xc9b   : > { %v2409_v41 = vmul.f32 0.0078125, %v2407_v40 }
 0xc9d   : > { %v7989_v43 = vsub.f32 %v7979_v35, %v2409_v41  ;;  %v2831_v41 = vld [vmem:[#allocation8] sm:$0xf] }
 0xc9f   : > { %v2411_v42 = vmul.f32 %v7989_v43, %v7989_v43 }
 0xca1   : > { %2412 = vadd.xlane.f32.xlu1 %v2411_v42  ;;  %v2881_v42 = vld [vmem:[#allocation5] sm:$0xff] }
 0xd27   : > { %v2434_v6 = vpop.xlane.xlu0 %2433 }
 0xd28   : > { %v2435_v8 = vmul.f32 0.0078125, %v2434_v6  ;;  %v6173_v6 = vld [vmem:[%s7647_s15 + $0x108] sm:$0xff]  }
 0xd2a   : > { %v2436_v10 = vadd.f32 1e-05, %v2435_v8  ;;  %v6174_v8 = vld [vmem:[%s7647_s15 + $0x110] sm:$0xff]  }
 0xd2c   : > { %6284 = vrsqrt.f32 %v2436_v10  ;;  %v6176_v10 = vld [vmem:[%s7647_s15 + $0x120] sm:$0xff]  }
 0xd36   : > { %v6285_v16 = vpop.eup %6284 }
 0xd37   : > { %v2438_v17 = vmul.f32 %v6285_v16, %v2431_v58  ;;  %v6178_v16 = vld [vmem:[%s7647_s15 + $0x130] sm:$0xff]  }
 0xd39   : > { %v2443_v19 = vmul.f32 %v2442_v15, %v2438_v17  ;;  %v6177_v15 = vld [vmem:[%s7647_s15 + $0x128] sm:$0xff]   ;;  %v6179_v17 = vld [vmem:[%s7647_s15 + $0x138] sm:$0xff]  }
 0xd3b   : > { %v2448_v20 = vadd.f32 %v2447_v18, %v2443_v19  ;;  %v2402_v18 = vld [vmem:[#allocation4] sm:$0xff]  ;;  %v2413_v19 = vpop.xlane.xlu1 %2412 }
 0xd3d   : > { %v2450_v22 = vpack.c.bf16 %v2448_v20, %v2448_v20  ;;  %v2414_v20 = vmul.f32 0.0078125, %v2413_v19 }
 0xd3f   : > { %v2457_v23 = vsel %vm2455_vm5, %v2450_v22, 0  ;;  %v2415_v22 = vadd.f32 1e-05, %v2414_v20 }
 0xd40   : > { %5578 = vmatpush3.bf16.msra.mxu0 %v2457_v23 }
 0xd41   : > { %5603 = vmatprep.subr.bf16.mxu0 %v6992_v60 }
 0xd43   : > { %5580 = vmatmul.mubr.msk.bf16.vlgmr.msra.gmra.mrb[0].mxu0 %vm2451_vm6, %v2449_v25  ;;  %v8035_v25 = vsub.s32 1, %v7943_v11 }
 0xd44   : > { %5604 = vmatpush3.bf16.msra.mxu0 %v6149_v26  ;;  %5619 = vmatprep.mubr.msk.bf16.mxu0 %vm6993_vm0, %v6992_v60 }
 0xd45   : > { %5605 = vmatprep.subr.bf16.mxu0 %v6992_v60 }
 0xd48   : > { %5606 = vmatpush3.bf16.msra.mxu0 %v6151_v27  ;;  %v2421_v27 = vrot.slane %v7949_v13, %v8010_v50 }
 0xd49   : > { %5607 = vmatprep.subr.bf16.mxu0 %v6992_v60 }
 0xd4c   : > { %5608 = vmatpush3.bf16.msra.mxu0 %v6153_v28  ;;  %v2741_v28 = vrot.slane %v8013_v21, %v8035_v25 }
 0xd4d   : > { %5609 = vmatprep.subr.bf16.mxu0 %v6992_v60 }
 0xd50   : > { %5610 = vmatpush3.bf16.msra.mxu0 %v6155_v29 }
 0xd51   : > { %5611 = vmatprep.subr.bf16.mxu0 %v6992_v60 }
 0xd54   : > { %5612 = vmatpush3.bf16.msra.mxu0 %v6157_v30  ;;  %v2426_v30 = vrot.slane %v7949_v13, %v8035_v25 }
 0xd55   : > { %5613 = vmatprep.subr.bf16.mxu0 %v6992_v60 }
 0xd58   : > { %5614 = vmatpush3.bf16.msra.mxu0 %v6159_v31 }
 0xd59   : > { %5615 = vmatprep.subr.bf16.mxu0 %v6992_v60 }
 0xd5c   : > { %5616 = vmatpush3.bf16.msra.mxu0 %v6161_v32 }
 0xd5d   : > { %5617 = vmatprep.subr.bf16.mxu0 %v6992_v60 }
 0xd60   : > { %5618 = vmatpush3.bf16.msra.mxu0 %v6163_v34 }
 0xd61   : > { %5643 = vmatprep.subr.bf16.mxu0 %v6992_v60 }
 0xe16   : > { %v2493_v36 = vpop.f32.mrb[0].mxu0 }
 0xe17   : > { %v2499_v37 = vpack.c.bf16 %v2493_v36, %v2493_v36  ;;  %v5581_v7 = vpop.f32.mrb[1].mxu0 }
 0xe18   : > { %v2496_v38 = vpop.f32.mrb[2].mxu0 }
 0xe19   : > { %v5582_v39 = vpop.f32.mrb[3].mxu0  ;;  %5600 = vmatmul.mubr.bf16.vlgmr.msra.gmra.mrb[0].mxu1 %v2499_v37  ;;  %5620 = vmatmul.mubr.bf16.vlgmr.msra.gmra.mrb[4].mxu0 %v2499_v37 }
 0xe1a   : > { %5639 = vmatprep.mubr.msk.bf16.mxu1 %vm6993_vm0, %v6992_v60  ;;  %5645 = vmatprep.mubr.msk.bf16.mxu0 %vm6993_vm0, %v6992_v60 }
 0xe1b   : > { %5624 = vmatpush3.bf16.msra.mxu1 %v6164_v44  ;;  %v6180_v44 = vld [vmem:[%s7647_s15 + $0xc0] sm:$0xff]  }
 0xe1c   : > { %5625 = vmatprep.subr.bf16.mxu1 %v6992_v60 }
 0xe1f   : > { %5626 = vmatpush3.bf16.msra.mxu1 %v6165_v45  ;;  %v6181_v45 = vld [vmem:[%s7647_s15 + $0xc8] sm:$0xff]  }
 0xe20   : > { %5627 = vmatprep.subr.bf16.mxu1 %v6992_v60 }
 0xe23   : > { %5628 = vmatpush3.bf16.msra.mxu1 %v6166_v1  ;;  %v6182_v1 = vld [vmem:[%s7647_s15 + $0xd0] sm:$0xff]  }
 0xe24   : > { %5629 = vmatprep.subr.bf16.mxu1 %v6992_v60 }
 0xe27   : > { %5630 = vmatpush3.bf16.msra.mxu1 %v6167_v46  ;;  %v6183_v46 = vld [vmem:[%s7647_s15 + $0xd8] sm:$0xff]  }
 0xe28   : > { %5631 = vmatprep.subr.bf16.mxu1 %v6992_v60 }
 0xe2b   : > { %5632 = vmatpush3.bf16.msra.mxu1 %v6168_v47  ;;  %v3074_v47 = vrot.slane %v8013_v21, %v7946_v12 }
 0xe2c   : > { %5633 = vmatprep.subr.bf16.mxu1 %v6992_v60 }
 0xe2f   : > { %5634 = vmatpush3.bf16.msra.mxu1 %v6169_v48 }
 0xe30   : > { %5635 = vmatprep.subr.bf16.mxu1 %v6992_v60 }
 0xe33   : > { %5636 = vmatpush3.bf16.msra.mxu1 %v6170_v49  ;;  %v6184_v49 = vld [vmem:[%s7647_s15 + $0xe0] sm:$0xff]  }
 0xe34   : > { %5637 = vmatprep.subr.bf16.mxu1 %v6992_v60 }
 0xe37   : > { %5638 = vmatpush3.bf16.msra.mxu1 %v6171_v24 }
 0xe38   : > { %5675 = vmatprep.subr.bf16.mxu1 %v6992_v60 }
 0xeec   : > { %v2598_v52 = vpop.f32.mrb[0].mxu1  ;;  %v2724_v53 = vpop.f32.mrb[4].mxu0 }
 0xeed   : > { %v2725_v54 = vadd.f32 %v2724_v53, %v2641_v51  ;;  %v5601_v4 = vpop.f32.mrb[1].mxu1  ;;  %v5621_v55 = vpop.f32.mrb[5].mxu0 }
 0xeee   : > { %v2601_v56 = vpop.f32.mrb[2].mxu1  ;;  %v2727_v57 = vpop.f32.mrb[6].mxu0 }
 0xeef   : > { %v4915_v58 = vmul.f32 -1.442695, %v2725_v54  ;;  %v5602_v59 = vpop.f32.mrb[3].mxu1  ;;  %v5622_v61 = vpop.f32.mrb[7].mxu0 }
 0xef1   : > { %6286 = vpow2.f32 %v4915_v58 }
 0xefb   : > { %v6287_v62 = vpop.eup %6286 }
 0xefc   : > { %v2733_v63 = vadd.f32 1.0, %v6287_v62 }
 0xefe   : > { %6288 = vrcp.f32 %v2733_v63 }
 0xeff   : > { %6290 = vrsqrt.f32 %v2415_v22  ;;  %v6188_v22 = vld [vmem:[%s7647_s15 + $0x140] sm:$0xff]  }
 0xf08   : > { %v6289_v0 = vpop.eup %6288 }
 0xf09   : > { %v2736_v2 = vmul.f32 %v6289_v0, %v2725_v54  ;;  %v6291_v23 = vpop.eup %6290 }
 0xf0a   : > { %v2417_v26 = vmul.f32 %v6291_v23, %v7989_v43 }
 0xf0b   : > { %v2737_v5 = vpack.c.bf16 %v2736_v2, %v2736_v2 }
 0xf0c   : > { %v2422_v29 = vmul.f32 %v2421_v27, %v2417_v26  ;;  %v6189_v27 = vld [vmem:[%s7647_s15 + $0x148] sm:$0xff]  }
 0xf0d   : > { %5640 = vmatmul.mubr.bf16.vlgmr.msra.gmra.mrb[4].mxu1 %v2737_v5  ;;  %v6186_v5 = vld [vmem:[%s7647_s15 + $0xf0] sm:$0xff]  }
 0xf0e   : > { %5676 = vmatpush3.bf16.msra.mxu1 %v6172_v3  ;;  %5691 = vmatprep.mubr.msk.bf16.mxu1 %vm6993_vm0, %v6992_v60  ;;  %v2427_v7 = vadd.f32 %v2426_v30, %v2422_v29  ;;  %v6185_v3 = vld [vmem:[%s7647_s15 + $0xe8] sm:$0xff]   ;;  %v6192_v29 = vld [vmem:[%s7647_s15 + $0x160] sm:$0xff]  }
 0xf0f   : > { %5677 = vmatprep.subr.bf16.mxu1 %v6992_v60  ;;  %v6193_v30 = vld [vmem:[%s7647_s15 + $0x168] sm:$0xff]  }
 0xf10   : > { %v2882_v40 = vpack.c.bf16 %v2427_v7, %v2427_v7  ;;  %v6204_v7 = vld [vmem:[%s7653_s19 + $0x24] ss:$8 sps:$4 sm:$0xff]  }
 0xf12   : > { %5678 = vmatpush3.bf16.msra.mxu1 %v6173_v6  ;;  %v2887_v43 = vsel %vm2455_vm5, %v2882_v40, 0  ;;  %v6187_v6 = vld [vmem:[%s7647_s15 + $0xf8] sm:$0xff]   ;;  %v6202_v40 = vld [vmem:[%s7653_s19 + $0x20] ss:$8 sps:$4 sm:$0xff]  }
 0xf13   : > { %5679 = vmatprep.subr.bf16.mxu1 %v6992_v60 }
 0xf16   : > { %5680 = vmatpush3.bf16.msra.mxu1 %v6174_v8 }
 0xf17   : > { %5681 = vmatprep.subr.bf16.mxu1 %v6992_v60 }
 0xf1a   : > { %5682 = vmatpush3.bf16.msra.mxu1 %v6175_v9 }
 0xf1b   : > { %5683 = vmatprep.subr.bf16.mxu1 %v6992_v60 }
 0xf1e   : > { %5684 = vmatpush3.bf16.msra.mxu1 %v6176_v10 }
 0xf1f   : > { %5685 = vmatprep.subr.bf16.mxu1 %v6992_v60 }
 0xf22   : > { %5686 = vmatpush3.bf16.msra.mxu1 %v6177_v15 }
 0xf23   : > { %5687 = vmatprep.subr.bf16.mxu1 %v6992_v60 }
 0xf26   : > { %5688 = vmatpush3.bf16.msra.mxu1 %v6178_v16 }
 0xf27   : > { %5689 = vmatprep.subr.bf16.mxu1 %v6992_v60 }
 0xf2a   : > { %5690 = vmatpush3.bf16.msra.mxu1 %v6179_v17 }
 0xf2d   : > { %5692 = vmatmul.mubr.bf16.vlgmr.msra.gmra.mrb[8].mxu1 %v2402_v18 }
 0xfe0   : > { %v2824_v31 = vpop.f32.mrb[4].mxu1 }
 0xfe1   : > { %v2825_v32 = vadd.f32 %v2824_v31, %v2741_v28  ;;  %v5641_v33 = vpop.f32.mrb[5].mxu1  ;;  %v6191_v28 = vld [vmem:[%s7647_s15 + $0x158] sm:$0xff]   ;;  %v6194_v31 = vld [vmem:[%s7647_s15 + $0x170] sm:$0xff]  }
 0xfe2   : > { %v2827_v34 = vpop.f32.mrb[6].mxu1  ;;  %v6196_v33 = vld [vmem:[%s7653_s19] ss:$8 sps:$4 sm:$0xff]  }
 0xfe3   : > { %v2830_v36 = vmul.f32 %v2825_v32, %v2598_v52  ;;  %v5642_v37 = vpop.f32.mrb[7].mxu1  ;;  %v6195_v32 = vld [vmem:[%s7647_s15 + $0x178] sm:$0xff]   ;;  %v6198_v34 = vld [vmem:[%s7653_s19 + $0x4] ss:$8 sps:$4 sm:$0xff]  }
 0xfe4   : > { %3512 = vmatprep.subr.bf16.mxu1 %v6198_v34  ;;  %v6199_v37 = vld [vmem:[%s7653_s19 + $0x10] ss:$8 sps:$4 sm:$0xff]   ;;  %v6228_v34 = vld [vmem:[%s7655_s4 + $0x60] sm:$0xff]  }
 0xfe5   : > { %v2832_v38 = vpack.c.bf16 %v2830_v36, %v2830_v36  ;;  %v6201_v36 = vld [vmem:[%s7653_s19 + $0x14] ss:$8 sps:$4 sm:$0xff]   ;;  %3513 = vmatpush1.bf16.msra.mxu1 %v6196_v33 }
 0xfe6   : > { %3514 = vmatprep.subr.bf16.mxu1 %v6201_v36  ;;  %v6227_v33 = vld [vmem:[%s7655_s4 + $0x18] sm:$0xff]   ;;  %v6229_v36 = vld [vmem:[%s7655_s4 + $0x20] sm:$0xff]  }
 0xfe7   : > { %v2837_v39 = vsel %vm2455_vm5, %v2832_v38, 0 }
 0xfe8   : > { %5644 = vmatpush3.bf16.msra.mxu0 %v2837_v39 }
 0xfe9   : > { %5649 = vmatprep.subr.bf16.mxu0 %v6992_v60  ;;  %3515 = vmatpush1.bf16.msra.mxu1 %v6199_v37  ;;  %v6230_v37 = vld [vmem:[%s7655_s4 + $0x68] sm:$0xff]  }
 0xfea   : > { %3516 = vmatprep.subr.bf16.mxu1 %v6204_v7  ;;  %v6231_v7 = vld [vmem:[%s7655_s4 + $0x28] sm:$0xff]  }
 0xfeb   : > { %5646 = vmatmul.mubr.msk.bf16.vlgmr.msra.gmra.mrb[8].mxu0 %vm2451_vm6, %v2831_v41 }
 0xfec   : > { %5650 = vmatpush3.bf16.msra.mxu0 %v2887_v43  ;;  %5651 = vmatprep.mubr.msk.bf16.mxu0 %vm6993_vm0, %v6992_v60 }
 0xfed   : > { %5655 = vmatprep.subr.bf16.mxu0 %v6992_v60  ;;  %3517 = vmatpush1.bf16.msra.mxu1 %v6202_v40  ;;  %v6234_v40 = vld [vmem:[%s7655_s4 + $0x78] sm:$0xff]  }
 0xff3   : > { %5652 = vmatmul.mubr.msk.bf16.vlgmr.msra.gmra.mrb[12].mxu0 %vm2451_vm6, %v2881_v42  ;;  %v6207_v42 = vld [vmem:[%s7653_s19 + $0x34] ss:$8 sps:$4 sm:$0xff]  }
 0xff4   : > { %5656 = vmatpush3.bf16.msra.mxu0 %v6180_v44  ;;  %5671 = vmatprep.mubr.msk.bf16.mxu0 %vm6993_vm0, %v6992_v60  ;;  %v6205_v44 = vld [vmem:[%s7653_s19 + $0x30] ss:$8 sps:$4 sm:$0xff]  }
 0xff5   : > { %5657 = vmatprep.subr.bf16.mxu0 %v6992_v60  ;;  %3518 = vmatprep.subr.bf16.mxu1 %v6207_v42 }
 0xff6   : > { %3519 = vmatpush1.bf16.msra.mxu1 %v6205_v44 }
 0xff8   : > { %5658 = vmatpush3.bf16.msra.mxu0 %v6181_v45  ;;  %v6210_v45 = vld [vmem:[%s7653_s19 + $0x44] ss:$8 sps:$4 sm:$0xff]  }
 0xff9   : > { %5659 = vmatprep.subr.bf16.mxu0 %v6992_v60  ;;  %3520 = vmatprep.subr.bf16.mxu1 %v6210_v45 }
 0xffc   : > { %5660 = vmatpush3.bf16.msra.mxu0 %v6182_v1  ;;  %v6208_v1 = vld [vmem:[%s7653_s19 + $0x40] ss:$8 sps:$4 sm:$0xff]  }
 0xffd   : > { %5661 = vmatprep.subr.bf16.mxu0 %v6992_v60  ;;  %3521 = vmatpush1.bf16.msra.mxu1 %v6208_v1  ;;  %v6320_v1 = vld [vmem:[#allocation3] sm:$0xff] }
0x1000   : > { %v3157_v48 = vpop.f32.mrb[8].mxu1  ;;  %5662 = vmatpush3.bf16.msra.mxu0 %v6183_v46  ;;  %v6213_v46 = vld [vmem:[%s7653_s19 + $0x54] ss:$8 sps:$4 sm:$0xff]  }
0x1001   : > { %v3158_v24 = vadd.f32 %v3157_v48, %v3074_v47  ;;  %v5693_v51 = vpop.f32.mrb[9].mxu1  ;;  %5663 = vmatprep.subr.bf16.mxu0 %v6992_v60  ;;  %3522 = vmatprep.subr.bf16.mxu1 %v6213_v46  ;;  %v6216_v48 = vld [vmem:[%s7653_s19 + $0x64] ss:$8 sps:$4 sm:$0xff]  }
0x1002   : > { %v3160_v52 = vpop.f32.mrb[10].mxu1  ;;  %v6217_v51 = vld [vmem:[%s7653_s19 + $0x70] ss:$8 sps:$4 sm:$0xff]  }
0x1003   : > { %v4990_v53 = vmul.f32 -1.442695, %v3158_v24  ;;  %v3161_v54 = vadd.f32 %v3160_v52, %v3074_v47  ;;  %v5694_v4 = vpop.f32.mrb[11].mxu1  ;;  %v6211_v47 = vld [vmem:[%s7653_s19 + $0x50] ss:$8 sps:$4 sm:$0xff]   ;;  %v6994_v52 = vmov 0  }
0x1004   : > { %5664 = vmatpush3.bf16.msra.mxu0 %v6184_v49  ;;  %3523 = vmatpush1.bf16.msra.mxu1 %v6211_v47  ;;  %v6214_v49 = vld [vmem:[%s7653_s19 + $0x60] ss:$8 sps:$4 sm:$0xff]  }
0x1005   : > { %6292 = vpow2.f32 %v4990_v53  ;;  %v4991_v55 = vmul.f32 -1.442695, %v3161_v54  ;;  %5665 = vmatprep.subr.bf16.mxu0 %v6992_v60  ;;  %3524 = vmatprep.subr.bf16.mxu1 %v6216_v48  ;;  %v6236_v48 = vld [vmem:[%s7653_s19 + $0x80] ss:$8 sps:$4 sm:$0xff]  }
0x1006   : > { %3544 = vmatprep.mubr.bf16.mxu1 %v6994_v52 }
0x1007   : > { %6294 = vpow2.f32 %v4991_v55 }
0x1008   : > { %5666 = vmatpush3.bf16.msra.mxu0 %v6185_v3  ;;  %3525 = vmatpush1.bf16.msra.mxu1 %v6214_v49  ;;  %v6238_v49 = vld [vmem:[%s7653_s19 + $0x84] ss:$8 sps:$4 sm:$0xff]  }
0x1009   : > { %5667 = vmatprep.subr.bf16.mxu0 %v6992_v60 }
0x100c   : > { %5668 = vmatpush3.bf16.msra.mxu0 %v6186_v5  ;;  %v3274_v5 = vld [vmem:[#allocation6] sm:$0xf] }
0x100d   : > { %5669 = vmatprep.subr.bf16.mxu0 %v6992_v60 }
0x100f   : > { %v6293_v56 = vpop.eup %6292 }
0x1010   : > { %v3170_v57 = vadd.f32 1.0, %v6293_v56  ;;  %5670 = vmatpush3.bf16.msra.mxu0 %v6187_v6  ;;  %v3182_v56 = vrot.slane %v8013_v21, %v7952_v14 }
0x1011   : > { %v6295_v58 = vpop.eup %6294  ;;  %5695 = vmatprep.subr.bf16.mxu0 %v6992_v60 }
0x1012   : > { %6296 = vrcp.f32 %v3170_v57  ;;  %v3171_v59 = vadd.f32 1.0, %v6295_v58 }
0x1014   : > { %6298 = vrcp.f32 %v3171_v59 }
0x101c   : > { %v6297_v61 = vpop.eup %6296 }
0x101d   : > { %v3176_v62 = vmul.f32 %v6297_v61, %v3158_v24  ;;  %v6219_v24 = vld [vmem:[%s7653_s19 + $0x74] ss:$8 sps:$4 sm:$0xff]  }
0x101e   : > { %v6299_v63 = vpop.eup %6298  ;;  %3526 = vmatprep.subr.bf16.mxu1 %v6219_v24  ;;  %v6241_v24 = vld [vmem:[%s7653_s19 + $0x94] ss:$8 sps:$4 sm:$0xff]  }
0x101f   : > { %v3177_v0 = vmul.f32 %v6299_v63, %v3161_v54  ;;  %3527 = vmatpush1.bf16.msra.mxu1 %v6217_v51  ;;  %v6239_v51 = vld [vmem:[%s7653_s19 + $0x90] ss:$8 sps:$4 sm:$0xff]  }
0x1020   : > { %3858 = vmatprep.subr.bf16.mxu1 %v6238_v49 }
0x1021   : > { %v3178_v2 = vpack.c.bf16 %v3177_v0, %v3176_v62 }
0x10be   : > { %v2873_v8 = vpop.f32.mrb[8].mxu0 }
0x10bf   : > { %v2879_v9 = vmul.f32 0.70710677, %v2873_v8  ;;  %v5647_v10 = vpop.f32.mrb[9].mxu0 }
0x10c0   : > { %v2876_v15 = vpop.f32.mrb[10].mxu0  ;;  %v3335_v10 = vsub.s32 4, %v7943_v11 }
0x10c1   : > { %v8073_v16 = vadd.f32 %v2879_v9, %v7979_v35  ;;  %v5648_v17 = vpop.f32.mrb[11].mxu0  ;;  %v6190_v35 = vld [vmem:[%s7647_s15 + $0x150] sm:$0xff]   ;;  %v3340_v15 = vsub.s32 5, %v7943_v11 }
0x10c2   : > { %v3336_v17 = vrot.slane %v7949_v13, %v3335_v10 }
0x10c3   : > { %3322 = vadd.xlane.f32.xlu0 %v8073_v16 }
0x10c6   : > { %v2923_v18 = vpop.f32.mrb[12].mxu0 }
0x10c7   : > { %v5653_v19 = vpop.f32.mrb[13].mxu0 }
0x10c8   : > { %v2926_v20 = vpop.f32.mrb[14].mxu0 }
0x10c9   : > { %v2930_v23 = vpack.c.bf16 %v2926_v20, %v2923_v18  ;;  %v5654_v26 = vpop.f32.mrb[15].mxu0  ;;  %v3341_v20 = vrot.slane %v7949_v13, %v3340_v15 }
0x10cb   : > { %5672 = vmatmul.mubr.bf16.vlgmr.msra.gmra.mrb[16].mxu0 %v2930_v23 }
0x10cc   : > { %5696 = vmatpush3.bf16.msra.mxu0 %v6188_v22  ;;  %5711 = vmatprep.mubr.msk.bf16.mxu0 %vm6993_vm0, %v6992_v60 }
0x10cd   : > { %5697 = vmatprep.subr.bf16.mxu0 %v6992_v60 }
0x10d0   : > { %5698 = vmatpush3.bf16.msra.mxu0 %v6189_v27  ;;  %v6220_v27 = vld [vmem:[%s7655_s4 + $0x40] sm:$0xff]  }
0x10d1   : > { %5699 = vmatprep.subr.bf16.mxu0 %v6992_v60 }
0x10d4   : > { %5700 = vmatpush3.bf16.msra.mxu0 %v6190_v35  ;;  %v6221_v35 = vld [vmem:[%s7655_s4] sm:$0xff]  }
0x10d5   : > { %5701 = vmatprep.subr.bf16.mxu0 %v6992_v60 }
0x10d8   : > { %5702 = vmatpush3.bf16.msra.mxu0 %v6191_v28  ;;  %v6222_v28 = vld [vmem:[%s7655_s4 + $0x48] sm:$0xff]  }
0x10d9   : > { %5703 = vmatprep.subr.bf16.mxu0 %v6992_v60 }
0x10dc   : > { %5704 = vmatpush3.bf16.msra.mxu0 %v6192_v29  ;;  %v6223_v29 = vld [vmem:[%s7655_s4 + $0x8] sm:$0xff]  }
0x10dd   : > { %5705 = vmatprep.subr.bf16.mxu0 %v6992_v60 }
0x10e0   : > { %5706 = vmatpush3.bf16.msra.mxu0 %v6193_v30  ;;  %v6224_v30 = vld [vmem:[%s7655_s4 + $0x50] sm:$0xff]  }
0x10e1   : > { %5707 = vmatprep.subr.bf16.mxu0 %v6992_v60 }
0x10e4   : > { %5708 = vmatpush3.bf16.msra.mxu0 %v6194_v31  ;;  %v6225_v31 = vld [vmem:[%s7655_s4 + $0x10] sm:$0xff]  }
0x10e5   : > { %5709 = vmatprep.subr.bf16.mxu0 %v6992_v60 }
0x10e8   : > { %5710 = vmatpush3.bf16.msra.mxu0 %v6195_v32  ;;  %v6226_v32 = vld [vmem:[%s7655_s4 + $0x58] sm:$0xff]  }
0x10e9   : > { %5715 = vmatprep.subr.bf16.mxu0 %v6992_v60 }
0x10eb   : > { %5712 = vmatmul.mubr.bf16.vlgmr.msra.gmra.mrb[20].mxu0 %v3178_v2 }
0x10ec   : > { %5717 = vmatprep.mubr.msk.bf16.mxu0 %vm6993_vm0, %v6992_v60 }
0x1150   : > { %v3323_v38 = vpop.xlane.xlu0 %3322 }
0x1151   : > { %v3324_v39 = vmul.f32 0.0078125, %v3323_v38  ;;  %v6232_v38 = vld [vmem:[%s7655_s4 + $0x70] sm:$0xff]  }
0x1153   : > { %v3325_v41 = vsub.f32 %v8073_v16, %v3324_v39  ;;  %v6233_v39 = vld [vmem:[%s7655_s4 + $0x30] sm:$0xff]  }
0x1155   : > { %v3326_v43 = vmul.f32 %v3325_v41, %v3325_v41 }
0x1157   : > { %3327 = vadd.xlane.f32.xlu0 %v3326_v43 }
0x119e   : > { %v3030_v53 = vpop.f32.mrb[16].mxu0 }
0x119f   : > { %v5673_v54 = vpop.f32.mrb[17].mxu0 }
0x11a0   : > { %v3033_v4 = vpop.f32.mrb[18].mxu0  ;;  %v8149_v54 = vld [vmem:[%s7663_s21] sm:$0xf] }
0x11a1   : > { %v5674_v55 = vpop.f32.mrb[19].mxu0 }
0x11a2   : > { %v3421_v55 = vrot.slane %v8149_v54, %v7946_v12 }
0x11be   : > { %v3265_v57 = vpop.f32.mrb[20].mxu0 }
0x11bf   : > { %v3266_v58 = vadd.f32 %v3265_v57, %v3182_v56  ;;  %v5713_v59 = vpop.f32.mrb[21].mxu0  ;;  %v3431_v57 = vrot.slane %v3421_v55, %v8010_v50 }
0x11c0   : > { %v3268_v61 = vpop.f32.mrb[22].mxu0 }
0x11c1   : > { %v3272_v62 = vmul.f32 %v3266_v58, %v3030_v53  ;;  %v3269_v63 = vadd.f32 %v3268_v61, %v3182_v56  ;;  %v5714_v0 = vpop.f32.mrb[23].mxu0  ;;  %v6242_v53 = vld [vmem:[%s7653_s19 + $0xa0] ss:$8 sps:$4 sm:$0xff]  }
0x11c3   : > { %v3273_v2 = vmul.f32 %v3269_v63, %v3033_v4  ;;  %v3417_v4 = vrot.slane %v8149_v54, %v8010_v50 }
0x11c5   : > { %v3275_v3 = vpack.c.bf16 %v3273_v2, %v3272_v62  ;;  %v3427_v56 = vrot.slane %v3417_v4, %v8010_v50  ;;  %v6260_v4 = vld [vmem:[%s7647_s15 + $0x180] sm:$0xff]  }
0x11c7   : > { %5716 = vmatpush3.bf16.msra.mxu0 %v3275_v3 }
0x11c8   : > { %5314 = vmatprep.subr.bf16.mxu0 %v6220_v27 }
0x11ca   : > { %5718 = vmatmul.mubr.msk.bf16.vlgmr.msra.gmra.mrb[24].mxu0 %vm3276_vm7, %v3274_v5 }
0x11cb   : > { %5315 = vmatpush3.bf16.msra.mxu0 %v6221_v35 }
0x11cc   : > { %5316 = vmatprep.subr.bf16.mxu0 %v6222_v28  ;;  %v6247_v28 = vld [vmem:[%s7653_s19 + $0xb4] ss:$8 sps:$4 sm:$0xff]  }
0x11cf   : > { %5317 = vmatpush3.bf16.msra.mxu0 %v6223_v29  ;;  %v6245_v29 = vld [vmem:[%s7653_s19 + $0xb0] ss:$8 sps:$4 sm:$0xff]  }
0x11d0   : > { %5318 = vmatprep.subr.bf16.mxu0 %v6224_v30  ;;  %v6250_v30 = vld [vmem:[%s7653_s19 + $0xc4] ss:$8 sps:$4 sm:$0xff]  }
0x11d3   : > { %5319 = vmatpush3.bf16.msra.mxu0 %v6225_v31  ;;  %v6248_v31 = vld [vmem:[%s7653_s19 + $0xc0] ss:$8 sps:$4 sm:$0xff]  }
0x11d4   : > { %5320 = vmatprep.subr.bf16.mxu0 %v6226_v32  ;;  %v6253_v32 = vld [vmem:[%s7653_s19 + $0xd4] ss:$8 sps:$4 sm:$0xff]  }
0x11d7   : > { %5321 = vmatpush3.bf16.msra.mxu0 %v6227_v33  ;;  %v6251_v33 = vld [vmem:[%s7653_s19 + $0xd0] ss:$8 sps:$4 sm:$0xff]  }
0x11d8   : > { %5322 = vmatprep.subr.bf16.mxu0 %v6228_v34  ;;  %v6256_v34 = vld [vmem:[%s7653_s19 + $0xe4] ss:$8 sps:$4 sm:$0xff]  }
0x11db   : > { %5323 = vmatpush3.bf16.msra.mxu0 %v6229_v36  ;;  %v6254_v36 = vld [vmem:[%s7653_s19 + $0xe0] ss:$8 sps:$4 sm:$0xff]  }
0x11dc   : > { %5324 = vmatprep.subr.bf16.mxu0 %v6230_v37  ;;  %v6257_v37 = vld [vmem:[%s7653_s19 + $0xf0] ss:$8 sps:$4 sm:$0xff]  }
0x11df   : > { %5325 = vmatpush3.bf16.msra.mxu0 %v6231_v7  ;;  %v6259_v7 = vld [vmem:[%s7653_s19 + $0xf4] ss:$8 sps:$4 sm:$0xff]  }
0x11e0   : > { %5326 = vmatprep.subr.bf16.mxu0 %v6232_v38 }
0x11e3   : > { %5327 = vmatpush3.bf16.msra.mxu0 %v6233_v39 }
0x11e4   : > { %v3328_v6 = vpop.xlane.xlu0 %3327  ;;  %5328 = vmatprep.subr.bf16.mxu0 %v6234_v40 }
0x11e5   : > { %v3329_v8 = vmul.f32 0.0078125, %v3328_v6 }
0x11e7   : > { %v3330_v9 = vadd.f32 1e-05, %v3329_v8 }
0x11e9   : > { %6300 = vrsqrt.f32 %v3330_v9 }
0x11f3   : > { %v6301_v18 = vpop.eup %6300 }
0x11f4   : > { %v3332_v19 = vmul.f32 %v6301_v18, %v3325_v41  ;;  %v6235_v41 = vld [vmem:[%s7655_s4 + $0x38] sm:$0xff]  }
0x11f5   : > { %5329 = vmatpush3.bf16.msra.mxu0 %v6235_v41 }
0x11f6   : > { %v3337_v22 = vmul.f32 %v3336_v17, %v3332_v19 }
0x11f8   : > { %v3342_v23 = vadd.f32 %v3341_v20, %v3337_v22 }
0x11fa   : > { %v3412_v26 = vpack.c.bf16 %v3342_v23, %v3342_v23 }
0x11fc   : > { %3545 = vmatmul.mubr.bf16.vlgmr.msra.gmra.mrb[12].mxu1 %v3412_v26 }
0x11fd   : > { %3890 = vmatprep.mubr.bf16.mxu1 %v6994_v52  ;;  %3859 = vmatpush1.bf16.msra.mxu1 %v6236_v48  ;;  %v6244_v52 = vld [vmem:[%s7653_s19 + $0xa4] ss:$8 sps:$4 sm:$0xff]  }
0x11fe   : > { %3860 = vmatprep.subr.bf16.mxu1 %v6241_v24 }
0x1201   : > { %3861 = vmatpush1.bf16.msra.mxu1 %v6239_v51 }
0x1202   : > { %3862 = vmatprep.subr.bf16.mxu1 %v6244_v52 }
0x1205   : > { %3863 = vmatpush1.bf16.msra.mxu1 %v6242_v53 }
0x1206   : > { %3864 = vmatprep.subr.bf16.mxu1 %v6247_v28 }
0x1209   : > { %3865 = vmatpush1.bf16.msra.mxu1 %v6245_v29 }
0x120a   : > { %3866 = vmatprep.subr.bf16.mxu1 %v6250_v30 }
0x120d   : > { %3867 = vmatpush1.bf16.msra.mxu1 %v6248_v31 }
0x120e   : > { %3868 = vmatprep.subr.bf16.mxu1 %v6253_v32 }
0x1211   : > { %3869 = vmatpush1.bf16.msra.mxu1 %v6251_v33 }
0x1212   : > { %3870 = vmatprep.subr.bf16.mxu1 %v6256_v34 }
0x1215   : > { %3871 = vmatpush1.bf16.msra.mxu1 %v6254_v36 }
0x1216   : > { %3872 = vmatprep.subr.bf16.mxu1 %v6259_v7 }
0x1219   : > { %3873 = vmatpush1.bf16.msra.mxu1 %v6257_v37 }
0x121a   : > { %5721 = vmatprep.subr.bf16.mxu1 %v6992_v60 }
0x129d   : > { %v3314_v43 = vpop.f32.mrb[24].mxu0 }
0x129e   : > { %v3320_v42 = vmul.f32 0.70710677, %v3314_v43  ;;  %v5719_v44 = vpop.f32.mrb[25].mxu0 }
0x129f   : > { %v3317_v45 = vpop.f32.mrb[26].mxu0 }
0x12a0   : > { %v8139_v46 = vadd.f32 %v6320_v1, %v3320_v42  ;;  %v5720_v47 = vpop.f32.mrb[27].mxu0  ;;  %v3356_v1 = vsub.s32 6, %v7943_v11 }
0x12a1   : > { %v3361_v47 = vsub.s32 7, %v7943_v11 }
0x12a2   : > { %3343 = vadd.xlane.f32.xlu1 %v8139_v46  ;;  %v3357_v48 = vrot.slane %v7949_v13, %v3356_v1  ;;  %v4167_v1 = vstv %s4166_s27 }
0x12a3   : > { %v3362_v51 = vrot.slane %v7949_v13, %v3361_v47  ;;  %v6263_v13 = vld [vmem:[%s7647_s15 + $0x198] sm:$0xff]   ;;  %v3572_v47 = vrot.slane %v8013_v21, %v3335_v10  ;;  %v3918_v10 = vrot.slane %v8013_v21, %v3340_v15  ;;  %v6324_v15 = vld [vmem:[#allocation35 + $0x18] sm:$0xff] (!%p5141_p0)  }
0x12a4   : > { %v6323_v21 = vld [vmem:[#allocation35 + $0x10] sm:$0xff] (!%p5141_p0)  }
0x12cf   : > { %v3546_v58 = vpop.f32.mrb[12].mxu1 }
0x12d0   : > { %v3547_v59 = vadd.f32 %v3546_v58, %v3427_v56  ;;  %v3548_v61 = vpop.f32.mrb[13].mxu1  ;;  %v6261_v56 = vld [vmem:[%s7647_s15 + $0x188] sm:$0xff]   ;;  %v6264_v58 = vld [vmem:[%s7647_s15 + $0x1a0] sm:$0xff]  }
0x12d1   : > { %v3549_v62 = vadd.f32 %v3548_v61, %v3431_v57  ;;  %v3550_v63 = vpop.f32.mrb[14].mxu1  ;;  %v6262_v57 = vld [vmem:[%s7647_s15 + $0x190] sm:$0xff]  }
0x12d2   : > { %v5017_v0 = vmul.f32 -1.442695, %v3547_v59  ;;  %v3551_v2 = vpop.f32.mrb[15].mxu1  ;;  %v6266_v61 = vld [vmem:[%s7647_s15 + $0x1b0] sm:$0xff]   ;;  %v4058_v63 = vpack.c.bf16 %v8073_v16, %v8073_v16 }
0x12d3   : > { %v5018_v3 = vmul.f32 -1.442695, %v3549_v62  ;;  %v6269_v2 = vld [vmem:[%s7655_s4 + $0x80] sm:$0xff]  }
0x12d4   : > { %6302 = vpow2.f32 %v5017_v0  ;;  %v6268_v0 = vld [vmem:[%s7655_s4 + $0xc0] sm:$0xff]  }
0x12d5   : > { %6304 = vpow2.f32 %v5018_v3  ;;  %5336 = vmatprep.subr.bf16.mxu0 %v6268_v0  ;;  %v6270_v3 = vld [vmem:[%s7655_s4 + $0xc8] sm:$0xff]  }
0x12de   : > { %v6303_v5 = vpop.eup %6302 }
0x12df   : > { %v6305_v6 = vpop.eup %6304  ;;  %v3559_v8 = vadd.f32 1.0, %v6303_v5  ;;  %v6271_v5 = vld [vmem:[%s7655_s4 + $0x88] sm:$0xff]  }
0x12e0   : > { %v3560_v9 = vadd.f32 1.0, %v6305_v6  ;;  %v6273_v6 = vld [vmem:[%s7655_s4 + $0x90] sm:$0xff]  }
0x12e1   : > { %6306 = vrcp.f32 %v3559_v8  ;;  %v6274_v8 = vld [vmem:[%s7655_s4 + $0xd8] sm:$0xff]  }
0x12e2   : > { %6308 = vrcp.f32 %v3560_v9  ;;  %v6275_v9 = vld [vmem:[%s7655_s4 + $0x98] sm:$0xff]  }
0x12eb   : > { %v6307_v12 = vpop.eup %6306 }
0x12ec   : > { %v6309_v17 = vpop.eup %6308  ;;  %v3565_v18 = vmul.f32 %v6307_v12, %v3547_v59  ;;  %v6265_v59 = vld [vmem:[%s7647_s15 + $0x1a8] sm:$0xff]   ;;  %v6276_v12 = vld [vmem:[%s7655_s4 + $0xe0] sm:$0xff]  }
0x12ed   : > { %v3566_v19 = vmul.f32 %v6309_v17, %v3549_v62  ;;  %v6267_v62 = vld [vmem:[%s7647_s15 + $0x1b8] sm:$0xff]   ;;  %v6277_v17 = vld [vmem:[%s7655_s4 + $0xa0] sm:$0xff]  }
0x12ee   : > { %v3567_v22 = vpack.c.bf16 %v3565_v18, %v3565_v18  ;;  %v6278_v18 = vld [vmem:[%s7655_s4 + $0xe8] sm:$0xff]  }
0x12ef   : > { %v3568_v20 = vpack.c.bf16 %v3566_v19, %v3566_v19  ;;  %v6279_v19 = vld [vmem:[%s7655_s4 + $0xa8] sm:$0xff]  }
0x12f1   : > { %3701 = vmatprep.mubr.bf16.mxu0 %v3568_v20  ;;  %v6280_v20 = vld [vmem:[%s7655_s4 + $0xf0] sm:$0xff]  }
0x12f2   : > { %3702 = vmatmul.mubr.bf16.vlgmr.msra.gmra.mrb[28].mxu0 %v3567_v22  ;;  %v6281_v22 = vld [vmem:[%s7655_s4 + $0xb0] sm:$0xff]  }
0x12f3   : > { %5337 = vmatpush3.bf16.msra.mxu0 %v6269_v2  ;;  %v6995_v2 = vmov (!%p5141_p0), 0.0  }
0x12f4   : > { %5338 = vmatprep.subr.bf16.mxu0 %v6270_v3  ;;  %v6322_v3 = vld [vmem:[#allocation35 + $0x8] sm:$0xff] (!%p5141_p0)  }
0x12f7   : > { %5339 = vmatpush3.bf16.msra.mxu0 %v6271_v5  ;;  %v6326_v5 = vld [vmem:[#allocation35 + $0x28] sm:$0xff] (!%p5141_p0)  }
0x132f   : > { %v3344_v23 = vpop.xlane.xlu1 %3343 }
0x1330   : > { %v3345_v26 = vmul.f32 0.0078125, %v3344_v23  ;;  %v6282_v23 = vld [vmem:[%s7655_s4 + $0xf8] sm:$0xff]  }
0x1332   : > { %v3346_v27 = vsub.f32 %v8139_v46, %v3345_v26  ;;  %v6283_v26 = vld [vmem:[%s7655_s4 + $0xb8] sm:$0xff]  }
0x1334   : > { %v3347_v35 = vmul.f32 %v3346_v27, %v3346_v27 }
0x1336   : > { %3348 = vadd.xlane.f32.xlu1 %v3347_v35  ;;  %v3767_v35 = vrot.slane %v8149_v54, %v7952_v14 }
0x1338   : > { %v3777_v29 = vrot.slane %v3767_v35, %v8035_v25 }
0x13c3   : > { %v3349_v38 = vpop.xlane.xlu1 %3348 }
0x13c4   : > { %v3350_v39 = vmul.f32 0.0078125, %v3349_v38 }
0x13c5   : > { %v5330_v40 = vpop.f32.mrb[28].mxu0 }
0x13c6   : > { %v3351_v41 = vadd.f32 1e-05, %v3350_v39  ;;  %v5331_v43 = vpop.f32.mrb[29].mxu0 }
0x13c7   : > { %v8169_v42 = vadd.f32 %v5331_v43, %v5330_v40  ;;  %v5333_v44 = vpop.f32.mrb[30].mxu0 }
0x13c8   : > { %6310 = vrsqrt.f32 %v3351_v41  ;;  %v5334_v45 = vpop.f32.mrb[31].mxu0 }
0x13c9   : > { %v4164_v45 = vstv %s4057_s7 }
0x13d2   : > { %v6311_v49 = vpop.eup %6310 }
0x13d3   : > { %v3353_v24 = vmul.f32 %v6311_v49, %v3346_v27  ;;  %v3763_v27 = vrot.slane %v8149_v54, %v8035_v25 }
0x13d5   : > { %v3358_v52 = vmul.f32 %v3357_v48, %v3353_v24  ;;  %v3773_v28 = vrot.slane %v3763_v27, %v8035_v25 }
0x13d7   : > { %v3363_v53 = vadd.f32 %v3362_v51, %v3358_v52  ;;  %v4168_v52 = vmul.f32 %v4167_v1, %v8073_v16 }
0x13d9   : > { %v3759_v55 = vpack.c.bf16 %v3363_v53, %v3363_v53 }
0x13db   : > { %3891 = vmatmul.mubr.bf16.vlgmr.msra.gmra.mrb[16].mxu1 %v3759_v55  ;;  %v3704_v55 = vadd.f32 %v8169_v42, %v3572_v47  ;;  %v6321_v42 = vld [vmem:[#allocation35] sm:$0xff] (!%p5141_p0)  }
0x13dc   : > { %5722 = vmatpush3.bf16.msra.mxu1 %v6260_v4  ;;  %5737 = vmatprep.mubr.msk.bf16.mxu1 %vm6993_vm0, %v6992_v60 }
0x13dd   : > { %5723 = vmatprep.subr.bf16.mxu1 %v6992_v60 }
0x13e0   : > { %5724 = vmatpush3.bf16.msra.mxu1 %v6261_v56 }
0x13e1   : > { %5725 = vmatprep.subr.bf16.mxu1 %v6992_v60 }
0x13e4   : > { %5726 = vmatpush3.bf16.msra.mxu1 %v6262_v57 }
0x13e5   : > { %5727 = vmatprep.subr.bf16.mxu1 %v6992_v60 }
0x13e8   : > { %5728 = vmatpush3.bf16.msra.mxu1 %v6263_v13 }
0x13e9   : > { %5729 = vmatprep.subr.bf16.mxu1 %v6992_v60 }
0x13ec   : > { %5730 = vmatpush3.bf16.msra.mxu1 %v6264_v58 }
0x13ed   : > { %5731 = vmatprep.subr.bf16.mxu1 %v6992_v60 }
0x13f0   : > { %5732 = vmatpush3.bf16.msra.mxu1 %v6265_v59 }
0x13f1   : > { %5733 = vmatprep.subr.bf16.mxu1 %v6992_v60 }
0x13f4   : > { %5734 = vmatpush3.bf16.msra.mxu1 %v6266_v61 }
0x13f5   : > { %5735 = vmatprep.subr.bf16.mxu1 %v6992_v60  ;;  %v6272_v60 = vld [vmem:[%s7655_s4 + $0xd0] sm:$0xff]  }
0x13f6   : > { %5340 = vmatprep.subr.bf16.mxu0 %v6272_v60  ;;  %v6327_v60 = vld [vmem:[#allocation35 + $0x30] sm:$0xff] (!%p5141_p0)  }
0x13f7   : > { %5341 = vmatpush3.bf16.msra.mxu0 %v6273_v6  ;;  %v6328_v6 = vld [vmem:[#allocation35 + $0x38] sm:$0xff] (!%p5141_p0)  }
0x13f8   : > { %5736 = vmatpush3.bf16.msra.mxu1 %v6267_v62  ;;  %5342 = vmatprep.subr.bf16.mxu0 %v6274_v8 }
0x13f9   : > { %5761 = vmatprep.subr.bf16.mxu1 (!%p5141_p0), %v6995_v2 }
0x13fb   : > { %5738 = vmatmul.mubr.bf16.vlgmr.msra.gmra.mrb[20].mxu1 %v4058_v63  ;;  %5343 = vmatpush3.bf16.msra.mxu0 %v6275_v9  ;;  %v6329_v9 = vld [vmem:[#allocation35 + $0x40] sm:$0xff] (!%p5141_p0)  }
0x13fc   : > { %5344 = vmatprep.subr.bf16.mxu0 %v6276_v12  ;;  %5777 = vmatprep.mubr.msk.bf16.mxu1 (!%p5141_p0), %vm6996_vm8, %v6995_v2  ;;  %v6330_v12 = vld [vmem:[#allocation35 + $0x48] sm:$0xff] (!%p5141_p0)  }
0x13fd   : > { %5762 = vmatpush3.bf16.msra.mxu1 (!%p5141_p0), %v6329_v9 }
0x13fe   : > { %5763 = vmatprep.subr.bf16.mxu1 (!%p5141_p0), %v6995_v2 }
0x13ff   : > { %5345 = vmatpush3.bf16.msra.mxu0 %v6277_v17  ;;  %v6331_v17 = vld [vmem:[#allocation35 + $0x50] sm:$0xff] (!%p5141_p0)  }
0x1400   : > { %5346 = vmatprep.subr.bf16.mxu0 %v6278_v18  ;;  %v6332_v18 = vld [vmem:[#allocation35 + $0x58] sm:$0xff] (!%p5141_p0)  }
0x1401   : > { %5764 = vmatpush3.bf16.msra.mxu1 (!%p5141_p0), %v6330_v12 }
0x1402   : > { %5765 = vmatprep.subr.bf16.mxu1 (!%p5141_p0), %v6995_v2 }
0x1403   : > { %5347 = vmatpush3.bf16.msra.mxu0 %v6279_v19  ;;  %v6333_v19 = vld [vmem:[#allocation35 + $0x60] sm:$0xff] (!%p5141_p0)  }
0x1404   : > { %5348 = vmatprep.subr.bf16.mxu0 %v6280_v20  ;;  %v6334_v20 = vld [vmem:[#allocation35 + $0x68] sm:$0xff] (!%p5141_p0)  }
0x1405   : > { %5766 = vmatpush3.bf16.msra.mxu1 (!%p5141_p0), %v6331_v17 }
0x1406   : > { %5767 = vmatprep.subr.bf16.mxu1 (!%p5141_p0), %v6995_v2 }
0x1407   : > { %5349 = vmatpush3.bf16.msra.mxu0 %v6281_v22  ;;  %v6335_v22 = vld [vmem:[#allocation35 + $0x70] sm:$0xff] (!%p5141_p0)  }
0x1408   : > { %5350 = vmatprep.subr.bf16.mxu0 %v6282_v23  ;;  %v6336_v23 = vld [vmem:[#allocation35 + $0x78] sm:$0xff] (!%p5141_p0)  }
0x1409   : > { %5768 = vmatpush3.bf16.msra.mxu1 (!%p5141_p0), %v6332_v18 }
0x140a   : > { %5769 = vmatprep.subr.bf16.mxu1 (!%p5141_p0), %v6995_v2 }
0x140b   : > { %5351 = vmatpush3.bf16.msra.mxu0 %v6283_v26  ;;  %v4177_v26 = vld [vmem:[#allocation36] sm:$0x3] (!%p5141_p0) }
0x140c   : > { %5741 = vmatprep.subr.bf16.mxu0 (!%p5141_p0), %v6995_v2  ;;  %v4198_v27 = vrot.slane (!%p5141_p0), %v4177_v26, %v8010_v50 }
0x140d   : > { %5770 = vmatpush3.bf16.msra.mxu1 (!%p5141_p0), %v6333_v19 }
0x140e   : > { %5771 = vmatprep.subr.bf16.mxu1 (!%p5141_p0), %v6995_v2 }
0x1411   : > { %5772 = vmatpush3.bf16.msra.mxu1 (!%p5141_p0), %v6334_v20 }
0x1412   : > { %5773 = vmatprep.subr.bf16.mxu1 (!%p5141_p0), %v6995_v2 }
0x1415   : > { %5774 = vmatpush3.bf16.msra.mxu1 (!%p5141_p0), %v6335_v22 }
0x1416   : > { %5775 = vmatprep.subr.bf16.mxu1 (!%p5141_p0), %v6995_v2 }
0x1419   : > { %5776 = vmatpush3.bf16.msra.mxu1 (!%p5141_p0), %v6336_v23 }
0x14ae   : > { %v3892_v30 = vpop.f32.mrb[16].mxu1 }
0x14af   : > { %v3893_v31 = vadd.f32 %v3892_v30, %v3773_v28  ;;  %v3894_v32 = vpop.f32.mrb[17].mxu1 }
0x14b0   : > { %v3895_v33 = vadd.f32 %v3894_v32, %v3777_v29  ;;  %v3896_v34 = vpop.f32.mrb[18].mxu1 }
0x14b1   : > { %v5099_v36 = vmul.f32 -1.442695, %v3893_v31  ;;  %v3897_v37 = vpop.f32.mrb[19].mxu1 }
0x14b2   : > { %v5100_v7 = vmul.f32 -1.442695, %v3895_v33 }
0x14b3   : > { %6312 = vpow2.f32 %v5099_v36 }
0x14b4   : > { %6314 = vpow2.f32 %v5100_v7 }
0x14bd   : > { %v6313_v38 = vpop.eup %6312 }
0x14be   : > { %v6315_v39 = vpop.eup %6314  ;;  %v3905_v40 = vadd.f32 1.0, %v6313_v38  ;;  %v5159_v38 = vld [vmem:[#allocation21] ss:$0 sm:$0xff] (!%p5141_p0) }
0x14bf   : > { %v3906_v14 = vadd.f32 1.0, %v6315_v39  ;;  %v4315_v39 = vrot.slane (!%p5141_p0), %v4177_v26, %v8035_v25  ;;  %vm4411_vm9 = vcmp.eq.s32.totalorder (!%p5141_p0), %v7943_v11, %v5159_v38 }
0x14c0   : > { %6316 = vrcp.f32 %v3905_v40 }
0x14c1   : > { %6318 = vrcp.f32 %v3906_v14 }
0x14ca   : > { %v6317_v54 = vpop.eup %6316 }
0x14cb   : > { %v6319_v41 = vpop.eup %6318  ;;  %v3911_v43 = vmul.f32 %v6317_v54, %v3893_v31 }
0x14cc   : > { %v3912_v44 = vmul.f32 %v6319_v41, %v3895_v33  ;;  %v5160_v41 = vsel (!%p5141_p0), %vm4411_vm9, 1.0, %v6995_v2 }
0x14cd   : > { %v3913_v24 = vpack.c.bf16 %v3911_v43, %v3911_v43  ;;  %v4414_v1 = vpack.c.bf16 (!%p5141_p0), %v5160_v41, %v5160_v41 }
0x14ce   : > { %v3914_v48 = vpack.c.bf16 %v3912_v44, %v3912_v44  ;;  %v4158_v49 = vpop.f32.mrb[20].mxu1 }
0x14cf   : > { %v4165_v51 = vmul.f32 %v4164_v45, %v4158_v49  ;;  %v5739_v53 = vpop.f32.mrb[21].mxu1 }
0x14d0   : > { %v4161_v4 = vpop.f32.mrb[22].mxu1  ;;  %4047 = vmatprep.mubr.bf16.mxu0 %v3914_v48 }
0x14d1   : > { %v4169_v56 = vadd.f32 %v4168_v52, %v4165_v51  ;;  %v5740_v57 = vpop.f32.mrb[23].mxu1  ;;  %4048 = vmatmul.mubr.bf16.vlgmr.msra.gmra.mrb[32].mxu0 %v3913_v24 }
0x14d2   : > { %5742 = vmatpush3.bf16.msra.mxu0 (!%p5141_p0), %v6321_v42  ;;  %5757 = vmatprep.mubr.msk.bf16.mxu0 (!%p5141_p0), %vm6996_vm8, %v6995_v2 }
0x14d3   : > { %v4170_v13 = vadd.f32 %v4169_v56, %v3704_v55  ;;  %5743 = vmatprep.subr.bf16.mxu0 (!%p5141_p0), %v6995_v2 }
0x14d5   : > { %4172 = vst [vmem:[#allocation2] sm:$0xff] %v4170_v13  ;;  %v4178_v8 = vpack.c.bf16 (!%p5141_p0), %v4170_v13, %v4170_v13 }
0x14d6   : > { %5744 = vmatpush3.bf16.msra.mxu0 (!%p5141_p0), %v6322_v3 }
0x14d7   : > { %5745 = vmatprep.subr.bf16.mxu0 (!%p5141_p0), %v6995_v2 }
0x14da   : > { %5746 = vmatpush3.bf16.msra.mxu0 (!%p5141_p0), %v6323_v21 }
0x14db   : > { %5747 = vmatprep.subr.bf16.mxu0 (!%p5141_p0), %v6995_v2 }
0x14de   : > { %5748 = vmatpush3.bf16.msra.mxu0 (!%p5141_p0), %v6324_v15 }
0x14df   : > { %5749 = vmatprep.subr.bf16.mxu0 (!%p5141_p0), %v6995_v2 }
0x15a4   : > { %v5352_v58 = vpop.f32.mrb[32].mxu0 }
0x15a5   : > { %v5353_v59 = vpop.f32.mrb[33].mxu0 }
0x15a6   : > { %v5354_v61 = vadd.f32 %v5353_v59, %v5352_v58  ;;  %v5355_v62 = vpop.f32.mrb[34].mxu0  ;;  %4176 = sbr.rel (%p5141_p0) target bundleno = 6241 (0x1861), region = 172 }
0x15a7   : > { %v5356_v63 = vpop.f32.mrb[35].mxu0 }
0x15a8   : > { %v4050_v16 = vadd.f32 %v5354_v61, %v3918_v10 }
0x15aa   : > { %v4171_v0 = vadd.f32 %v4050_v16, %v8139_v46  ;;  %v6325_v46 = vld [vmem:[#allocation35 + $0x20] sm:$0xff] (!%p5141_p0)  }
0x15ab   : > { %5750 = vmatpush3.bf16.msra.mxu0 (!%p5141_p0), %v6325_v46 }
0x15ac   : > { %4173 = vst [vmem:[#allocation3] sm:$0xff] %v4171_v0  ;;  %5751 = vmatprep.subr.bf16.mxu0 (!%p5141_p0), %v6995_v2 }
0x15af   : > { %5752 = vmatpush3.bf16.msra.mxu0 %v6326_v5 }
0x15b0   : > { %5753 = vmatprep.subr.bf16.mxu0 %v6995_v2 }
0x15b3   : > { %5754 = vmatpush3.bf16.msra.mxu0 %v6327_v60 }
0x15b4   : > { %5755 = vmatprep.subr.bf16.mxu0 %v6995_v2 }
0x15b7   : > { %5756 = vmatpush3.bf16.msra.mxu0 %v6328_v6 }
0x15b8   : > { %5781 = vmatprep.subr.bf16.mxu0 %v6995_v2 }
0x15ba   : > { %5758 = vmatmul.mubr.bf16.vlgmr.msra.gmra.mrb[0].mxu0 %v4178_v8 }
0x15bb   : > { %5783 = vmatprep.mubr.msk.bf16.mxu0 %vm6996_vm8, %v6995_v2 }
0x168d   : > { %v4281_v35 = vpop.f32.mrb[0].mxu0 }
0x168e   : > { %v4282_v28 = vadd.f32 %v4281_v35, %v4198_v27  ;;  %v5759_v29 = vpop.f32.mrb[1].mxu0 }
0x168f   : > { %v4284_v30 = vpop.f32.mrb[2].mxu0 }
0x1690   : > { %v5150_v31 = vmul.f32 -1.442695, %v4282_v28  ;;  %v5760_v32 = vpop.f32.mrb[3].mxu0 }
0x1692   : > { %6337 = vpow2.f32 %v5150_v31 }
0x169c   : > { %v6338_v33 = vpop.eup %6337 }
0x169d   : > { %v4290_v34 = vadd.f32 1.0, %v6338_v33 }
0x169f   : > { %6339 = vrcp.f32 %v4290_v34 }
0x16a9   : > { %v6340_v36 = vpop.eup %6339 }
0x16aa   : > { %v4293_v37 = vmul.f32 %v6340_v36, %v4282_v28 }
0x16ac   : > { %v4294_v7 = vpack.c.bf16 %v4293_v37, %v4293_v37 }
0x16ae   : > { %5778 = vmatmul.mubr.bf16.vlgmr.msra.gmra.mrb[0].mxu1 %v4294_v7 }
0x1781   : > { %v4398_v50 = vpop.f32.mrb[0].mxu1 }
0x1782   : > { %v4399_v40 = vadd.f32 %v4398_v50, %v4315_v39  ;;  %v5779_v14 = vpop.f32.mrb[1].mxu1 }
0x1783   : > { %v4401_v54 = vpop.f32.mrb[2].mxu1 }
0x1784   : > { %v4415_v43 = vpack.c.bf16 %v4399_v40, %v4399_v40  ;;  %v5780_v44 = vpop.f32.mrb[3].mxu1 }
0x1786   : > { %v4420_v45 = vsel %vm2455_vm5, %v4415_v43, 0 }
0x1787   : > { %5782 = vmatpush3.bf16.msra.mxu0 %v4420_v45 }
0x178a   : > { %5784 = vmatmul.mubr.msk.bf16.vlgmr.msra.gmra.mrb[4].mxu0 %vm2451_vm6, %v4414_v1 }
0x185d   : > { %v4456_v47 = vpop.f32.mrb[4].mxu0 }
0x185e   : > { %v4462_v48 = vmul.f32 0.5, %v4456_v47  ;;  %v5785_v49 = vpop.f32.mrb[5].mxu0 }
0x185f   : > { %v4459_v25 = vpop.f32.mrb[6].mxu0 }
0x1860   : > { %4463 = vst [vmem:[#allocation38] sm:$0x3] %v4462_v48  ;;  %v5786_v11 = vpop.f32.mrb[7].mxu0 }
0x1861 PF: > { %s6997_s13 = smov [#allocation38]  }
0x1862   : > { %s4471_s26 = sshll.u32 %s6997_s13, 4  ;;  %s4472_s26 = int_to_ptr.vmem [resolvable:$true] %s4471_s26 }
0x1863   : > { %s6855_s1 = scalar_lea.vmem %s4472_s26, 32  ;;  %p6862_p9 = scmp.lt.s32.totalorder %s4472_s26, %s4472_s26 }
0x1864   : > { %p6856_p5 = scmp.ne.s32.totalorder %s4472_s26, %s6855_s1  ;;  %p6863_p12 = scmp.lt.s32.totalorder %s6855_s1, %s6855_s1 }
0x1866   : > { %p6857_p3 = pnand %p6856_p5, %p4055_p11  ;;  %p6864_p1 = por %p6863_p12, %p6862_p9 }
0x1868   : > { %p6858_p6 = pneg %p6857_p3 }
0x186a   : > { %p6865_p7 = pnand %p6864_p1, %p6858_p6 }
0x186c   : > { %6868 = shalt.err (!%p6865_p7)
}
0x186d   : > { %s8441_s19 = sld [smem:[#allocation74_spill]] }
0x1873   : > { %s6869_s17 = scalar_lea.hbm %s8441_s19, 32 }
0x1874   : > { %p6870_p8 = scmp.ne.s32.totalorder %s8441_s19, %s6869_s17  ;;  %p6875_p10 = scmp.lt.u32.totalorder %s6869_s17, %s8441_s19 }
0x1876   : > { %p6871_p13 = pnand %p6870_p8, %p4055_p11 }
0x1878   : > { %p6872_p4 = pneg %p6871_p13 }
0x187a   : > { %p6877_p2 = pnand %p6875_p10, %p6872_p4 }
0x187c   : > { %6880 = shalt.err (!%p6877_p2)
}
0x187d   : > { %5853 = dma.vmem_to_hbm [thread:$0]  (%p4055_p11), %s4472_s26, 32, %s8441_s19, [#allocation11]  }
0x187e   : > { %6942 = dma.done.wait (%p4055_p11), [#allocation11], 32  }
0x187f   : > { %6944 = vsyncadd (%p4055_p11), [#allocation11], 4294967264 }
0x1880 PF: > { %s8442_s30 = sld [smem:[#allocation56_spill]]  ;;  %s8443_s27 = sld [smem:[#allocation51_spill]] }
0x1881   : > { %s8444_s28 = sld [smem:[#allocation52_spill]]  ;;  %s8445_s29 = sld [smem:[#allocation57_spill]] }
0x1886   : > { %p42_p0 = scmp.ge.s32.totalorder %s8442_s30, 4  }
0x1888   :  { %44 = sbr.rel (!%p42_p0) target bundleno = 32 (0x20), region = 254 }
0x188f   :  { %4484 = vsyncpa [#allocation10], 1 }
0x1890   :  { %4486 = vsyncpa [#allocation10 + $0x1], 1 }
0x1891   :  { %4487 = vsyncpa [#allocation13], 1 }
0x1892   :  { %4488 = vsyncpa [#allocation16], 1 }
0x1893   :  { %4489 = vsyncpa [#allocation19], 1 }
0x1894   :  { %4490 = vsyncpa [#allocation22], 1 }
0x1895   :  { %4491 = vsyncpa [#allocation25], 1 }
0x1896   :  { %4492 = vsyncpa [#allocation28], 1 }
0x1897   :  { %4494 = vsyncpa [#allocation28 + $0x1], 1 }
0x1898   :  { %4495 = vsyncpa [#allocation31], 1 }
0x1899   :  { %4497 = vsyncpa [#allocation31 + $0x1], 1 }
0x189a   :  { %4498 = vsyncpa [#allocation34], 1 }
0x189b   :  { %4500 = vsyncpa [#allocation34 + $0x1], 1 }
0x189c   :  { %4501 = vsyncpa [#allocation37], 1 }
0x189d   :  { %4502 = vsyncpa [#allocation11], 1 }
0x189e   :  { %4504 = vsyncpa [#allocation11 + $0x1], 1 }

</bundles_post_ra>
